<compile_context>
chip_gen: v7x
topology: tpu7x:2x2x1
jax: 0.10.0
libtpu: 0.0.40
codegen_flags: <defaults>
</compile_context>

<pallas_src>
import functools
import math

import jax
import jax.numpy as jnp
from jax.experimental import pallas as pl
from jax.experimental.pallas import tpu as pltpu


def _base_traj_kernel(emb_ref, pe_ref,
                      wqkv_ref, bqkv_ref, wo_ref, bo_ref,
                      ln1w_ref, ln1b_ref, ln2w_ref, ln2b_ref,
                      w1_ref, b1_ref, w2_ref, b2_ref,
                      wout_ref, bout_ref,
                      o_ref, x_ref, *, nhead, eps):
    layer = pl.program_id(1)

    @pl.when(layer == 0)
    def _():
        # dropout p=0 -> identity
        x_ref[...] = emb_ref[...] + pe_ref[...]

    x = x_ref[...]                                   # (T, D) carried in VMEM scratch
    T, D = x.shape
    hd = D // nhead

    # ---- multi-head self-attention (1/sqrt(hd) already folded into Q weights/bias) ----
    qkv = jnp.dot(x, wqkv_ref[...], preferred_element_type=jnp.float32) + bqkv_ref[...]
    q = qkv[:, :D]
    k = qkv[:, D:2 * D]
    v = qkv[:, 2 * D:]

    attn_out = jnp.zeros_like(x)
    for h in range(nhead):                           # static unroll over heads
        sl = slice(h * hd, (h + 1) * hd)
        qh, kh, vh = q[:, sl], k[:, sl], v[:, sl]
        # scores[i, j] = <q_i, k_j>; contract on head dim, no materialized transpose
        s = jax.lax.dot_general(qh, kh, (((1,), (1,)), ((), ())),
                                preferred_element_type=jnp.float32)       # (T, T)
        s = s - jnp.max(s, axis=-1, keepdims=True)
        p = jnp.exp(s)
        denom = jnp.sum(p, axis=-1, keepdims=True)                        # (T, 1)
        oh = jnp.dot(p, vh, preferred_element_type=jnp.float32)           # (T, hd)
        oh = oh * pl.reciprocal(denom, approx=True)                       # EUP, not VPU
        # accumulate this head's slice of the output projection (no concat)
        attn_out = attn_out + jnp.dot(oh, wo_ref[sl, :],
                                      preferred_element_type=jnp.float32)
    x = x + attn_out + bo_ref[...]

    # ---- LayerNorm 1 (post-norm) ----
    mu = jnp.mean(x, axis=-1, keepdims=True)
    xc = x - mu
    var = jnp.mean(xc * xc, axis=-1, keepdims=True)
    x = xc * jax.lax.rsqrt(var + eps) * ln1w_ref[...] + ln1b_ref[...]

    # ---- feed-forward (ReLU) ----
    h1 = jnp.dot(x, w1_ref[...], preferred_element_type=jnp.float32) + b1_ref[...]
    h1 = jnp.maximum(h1, 0.0)
    ff = jnp.dot(h1, w2_ref[...], preferred_element_type=jnp.float32) + b2_ref[...]
    x = x + ff

    # ---- LayerNorm 2 ----
    mu = jnp.mean(x, axis=-1, keepdims=True)
    xc = x - mu
    var = jnp.mean(xc * xc, axis=-1, keepdims=True)
    x = xc * jax.lax.rsqrt(var + eps) * ln2w_ref[...] + ln2b_ref[...]

    x_ref[...] = x                                   # carry to next layer step

    # ---- temporal mean pool + output Linear, fused, only at the last layer ----
    @pl.when(layer == pl.num_programs(1) - 1)
    def _():
        xm = jnp.mean(x, axis=0, keepdims=True)                           # (1, D)
        o_ref[...] = (jnp.dot(xm, wout_ref[...], preferred_element_type=jnp.float32)
                      + bout_ref[...])                                    # (1, latent)


def base_traj_forward(feats, pe, params, *, nhead, ntrans, eps=1e-5):
    """feats: (B, T, d_model) per-frame features; pe: (T, d_model) positional encoding."""
    B, T, D = feats.shape
    hd = D // nhead
    latent = params["w_out"].shape[1]
    dff = params["w1"].shape[2]

    # fold the attention scale into the Q projection once, outside the kernel,
    # and fuse Q/K/V into a single (D, 3D) projection.
    scale = 1.0 / math.sqrt(hd)
    wqkv = jnp.concatenate([params["wq"] * scale, params["wk"], params["wv"]], axis=2)
    bqkv = jnp.concatenate([params["bq"] * scale, params["bk"], params["bv"]], axis=2)

    def layer_spec(shape):
        # per-layer weight block: stacked (ntrans, r, c) -> kernel sees (r, c)
        return pl.BlockSpec((None,) + shape, lambda b, l: (l, 0, 0))

    def const_spec(shape):
        n = len(shape)
        return pl.BlockSpec(shape, lambda b, l, _n=n: (0,) * _n)

    in_specs = [
        pl.BlockSpec((None, T, D), lambda b, l: (b, 0, 0)),   # feats (per batch element)
        const_spec((T, D)),                                   # positional encoding
        layer_spec((D, 3 * D)), layer_spec((1, 3 * D)),       # fused QKV proj
        layer_spec((D, D)), layer_spec((1, D)),               # attn out proj
        layer_spec((1, D)), layer_spec((1, D)),               # LN1 w, b
        layer_spec((1, D)), layer_spec((1, D)),               # LN2 w, b
        layer_spec((D, dff)), layer_spec((1, dff)),           # FFN linear1
        layer_spec((dff, D)), layer_spec((1, D)),             # FFN linear2
        const_spec((D, latent)), const_spec((1, latent)),     # output Linear
    ]

    out = pl.pallas_call(
        functools.partial(_base_traj_kernel, nhead=nhead, eps=eps),
        out_shape=jax.ShapeDtypeStruct((B, 1, latent), jnp.float32),
        grid=(B, ntrans),
        in_specs=in_specs,
        out_specs=pl.BlockSpec((None, 1, latent), lambda b, l: (b, 0, 0)),
        scratch_shapes=[pltpu.VMEM((T, D), jnp.float32)],     # activation carry
        compiler_params=pltpu.CompilerParams(
            dimension_semantics=("parallel", "arbitrary")),
    )(feats, pe, wqkv, bqkv,
      params["wo"], params["bo"],
      params["ln1_w"], params["ln1_b"], params["ln2_w"], params["ln2_b"],
      params["w1"], params["b1"], params["w2"], params["b2"],
      params["w_out"], params["b_out"])
    return out.reshape(B, latent)


def positional_encoding(max_len, d_model):
    pos = jnp.arange(max_len, dtype=jnp.float32)[:, None]
    div = jnp.exp(jnp.arange(0, d_model, 2, dtype=jnp.float32)
                  * (-math.log(10000.0) / d_model))
    ang = pos * div
    pe = jnp.zeros((max_len, d_model), jnp.float32)
    pe = pe.at[:, 0::2].set(jnp.sin(ang))
    pe = pe.at[:, 1::2].set(jnp.cos(ang))
    return pe


def _layernorm(x, w, b, eps):
    mu = jnp.mean(x, axis=-1, keepdims=True)
    var = jnp.mean((x - mu) ** 2, axis=-1, keepdims=True)
    return (x - mu) / jnp.sqrt(var + eps) * w + b


def _reference(feats, pe, params, *, nhead, ntrans, eps=1e-5):
    """Pure-JAX mirror of the PyTorch post-backbone forward, for verification."""
    hp = jax.lax.Precision.HIGHEST
    B, T, D = feats.shape
    hd = D // nhead
    x = feats + pe[None]
    for l in range(ntrans):
        q = jnp.einsum("btd,df->btf", x, params["wq"][l], precision=hp) + params["bq"][l]
        k = jnp.einsum("btd,df->btf", x, params["wk"][l], precision=hp) + params["bk"][l]
        v = jnp.einsum("btd,df->btf", x, params["wv"][l], precision=hp) + params["bv"][l]
        q = q / math.sqrt(hd)
        qh = q.reshape(B, T, nhead, hd).transpose(0, 2, 1, 3)
        kh = k.reshape(B, T, nhead, hd).transpose(0, 2, 1, 3)
        vh = v.reshape(B, T, nhead, hd).transpose(0, 2, 1, 3)
        s = jnp.einsum("bhqc,bhkc->bhqk", qh, kh, precision=hp)
        attn = jax.nn.softmax(s, axis=-1)
        oh = jnp.einsum("bhqk,bhkc->bhqc", attn, vh, precision=hp)
        oh = oh.transpose(0, 2, 1, 3).reshape(B, T, D)
        y = jnp.einsum("btd,df->btf", oh, params["wo"][l], precision=hp) + params["bo"][l]
        x = _layernorm(x + y, params["ln1_w"][l], params["ln1_b"][l], eps)
        h1 = jnp.maximum(
            jnp.einsum("btd,df->btf", x, params["w1"][l], precision=hp) + params["b1"][l],
            0.0)
        ff = jnp.einsum("btf,fd->btd", h1, params["w2"][l], precision=hp) + params["b2"][l]
        x = _layernorm(x + ff, params["ln2_w"][l], params["ln2_b"][l], eps)
    xm = jnp.mean(x, axis=1)
    return jnp.einsum("bd,dl->bl", xm, params["w_out"], precision=hp) + params["b_out"][0]


if __name__ == "__main__":
    # BaseTraj defaults: latent_dim=256, nhead=8, ntrans=3, dropout=0, max_len=500.
    # d_model shrunk 2048 -> 256 (dim_feedforward follows the module's 1:1 ratio).
    B, T = 2, 8
    D_MODEL, N_HEAD, N_TRANS = 256, 8, 3
    DIM_FF, LATENT, MAX_LEN = 256, 256, 500

    key = jax.random.PRNGKey(0)
    ks = jax.random.split(key, 16)
    w = lambda k, shape, s=0.06: s * jax.random.normal(k, shape, dtype=jnp.float32)

    feats = jax.random.normal(ks[0], (B, T, D_MODEL), dtype=jnp.float32)
    params = {
        "wq": w(ks[1], (N_TRANS, D_MODEL, D_MODEL)),
        "bq": w(ks[2], (N_TRANS, 1, D_MODEL), 0.02),
        "wk": w(ks[3], (N_TRANS, D_MODEL, D_MODEL)),
        "bk": w(ks[4], (N_TRANS, 1, D_MODEL), 0.02),
        "wv": w(ks[5], (N_TRANS, D_MODEL, D_MODEL)),
        "bv": w(ks[6], (N_TRANS, 1, D_MODEL), 0.02),
        "wo": w(ks[7], (N_TRANS, D_MODEL, D_MODEL)),
        "bo": w(ks[8], (N_TRANS, 1, D_MODEL), 0.02),
        "ln1_w": jnp.ones((N_TRANS, 1, D_MODEL), jnp.float32),
        "ln1_b": jnp.zeros((N_TRANS, 1, D_MODEL), jnp.float32),
        "ln2_w": jnp.ones((N_TRANS, 1, D_MODEL), jnp.float32),
        "ln2_b": jnp.zeros((N_TRANS, 1, D_MODEL), jnp.float32),
        "w1": w(ks[9], (N_TRANS, D_MODEL, DIM_FF)),
        "b1": w(ks[10], (N_TRANS, 1, DIM_FF), 0.02),
        "w2": w(ks[11], (N_TRANS, DIM_FF, D_MODEL)),
        "b2": w(ks[12], (N_TRANS, 1, D_MODEL), 0.02),
        "w_out": w(ks[13], (D_MODEL, LATENT)),
        "b_out": w(ks[14], (1, LATENT), 0.02),
    }
    pe = positional_encoding(MAX_LEN, D_MODEL)[:T]

    out = base_traj_forward(feats, pe, params, nhead=N_HEAD, ntrans=N_TRANS)
    out = jax.block_until_ready(out)

    ref = _reference(feats, pe, params, nhead=N_HEAD, ntrans=N_TRANS)
    assert out.shape == (B, LATENT)
    assert jnp.allclose(out, ref, rtol=2e-2, atol=2e-2), (
        float(jnp.max(jnp.abs(out - ref))))
    print("KERNEL_OK")
</pallas_src>

<mosaic_0001>
module attributes {stable_mosaic.version = 11 : i64} {
  func.func @_base_traj_kernel(%arg0: i32, %arg1: i32, %arg2: memref<1x8x256xf32, #tpu.memory_space<vmem>>, %arg3: memref<8x256xf32, #tpu.memory_space<vmem>>, %arg4: memref<1x256x768xf32, #tpu.memory_space<vmem>>, %arg5: memref<1x1x768xf32, #tpu.memory_space<vmem>>, %arg6: memref<1x256x256xf32, #tpu.memory_space<vmem>>, %arg7: memref<1x1x256xf32, #tpu.memory_space<vmem>>, %arg8: memref<1x1x256xf32, #tpu.memory_space<vmem>>, %arg9: memref<1x1x256xf32, #tpu.memory_space<vmem>>, %arg10: memref<1x1x256xf32, #tpu.memory_space<vmem>>, %arg11: memref<1x1x256xf32, #tpu.memory_space<vmem>>, %arg12: memref<1x256x256xf32, #tpu.memory_space<vmem>>, %arg13: memref<1x1x256xf32, #tpu.memory_space<vmem>>, %arg14: memref<1x256x256xf32, #tpu.memory_space<vmem>>, %arg15: memref<1x1x256xf32, #tpu.memory_space<vmem>>, %arg16: memref<256x256xf32, #tpu.memory_space<vmem>>, %arg17: memref<1x256xf32, #tpu.memory_space<vmem>>, %arg18: memref<1x1x256xf32, #tpu.memory_space<vmem>>, %arg19: memref<8x256xf32, #tpu.memory_space<vmem>>) attributes {dimension_semantics = [#tpu.dimension_semantics<parallel>, #tpu.dimension_semantics<arbitrary>], iteration_bounds = array<i64: 2, 3>, scalar_prefetch = 0 : i64, scratch_operands = 1 : i64, tpu.core_type = #tpu.core_type<tc>, window_params = [{transform_indices = @transform_0, window_bounds = array<i64: 1, 8, 256>}, {pipeline_mode = #tpu.pipeline_mode<synchronous>, transform_indices = @transform_1, window_bounds = array<i64: 8, 256>}, {transform_indices = @transform_2, window_bounds = array<i64: 1, 256, 768>}, {transform_indices = @transform_3, window_bounds = array<i64: 1, 1, 768>}, {transform_indices = @transform_4, window_bounds = array<i64: 1, 256, 256>}, {transform_indices = @transform_5, window_bounds = array<i64: 1, 1, 256>}, {transform_indices = @transform_6, window_bounds = array<i64: 1, 1, 256>}, {transform_indices = @transform_7, window_bounds = array<i64: 1, 1, 256>}, {transform_indices = @transform_8, window_bounds = array<i64: 1, 1, 256>}, {transform_indices = @transform_9, window_bounds = array<i64: 1, 1, 256>}, {transform_indices = @transform_10, window_bounds = array<i64: 1, 256, 256>}, {transform_indices = @transform_11, window_bounds = array<i64: 1, 1, 256>}, {transform_indices = @transform_12, window_bounds = array<i64: 1, 256, 256>}, {transform_indices = @transform_13, window_bounds = array<i64: 1, 1, 256>}, {pipeline_mode = #tpu.pipeline_mode<synchronous>, transform_indices = @transform_14, window_bounds = array<i64: 256, 256>}, {pipeline_mode = #tpu.pipeline_mode<synchronous>, transform_indices = @transform_15, window_bounds = array<i64: 1, 256>}, {transform_indices = @transform_16, window_bounds = array<i64: 1, 1, 256>}]} {
    %c0_i32 = arith.constant 0 : i32
    %0 = arith.cmpi eq, %arg1, %c0_i32 : i32
    %1 = arith.extui %0 : i1 to i32
    %c0_i32_0 = arith.constant 0 : i32
    %2 = arith.cmpi ne, %1, %c0_i32_0 : i32
    scf.if %2 {
      %c0_109 = arith.constant 0 : index
      %c0_110 = arith.constant 0 : index
      %c0_111 = arith.constant 0 : index
      %241 = vector.load %arg2[%c0_109, %c0_110, %c0_111] : memref<1x8x256xf32, #tpu.memory_space<vmem>>, vector<1x8x256xf32>
      %242 = vector.shape_cast %241 : vector<1x8x256xf32> to vector<8x256xf32>
      %c0_112 = arith.constant 0 : index
      %c0_113 = arith.constant 0 : index
      %243 = vector.load %arg3[%c0_112, %c0_113] : memref<8x256xf32, #tpu.memory_space<vmem>>, vector<8x256xf32>
      %244 = arith.addf %242, %243 : vector<8x256xf32>
      %c0_114 = arith.constant 0 : index
      %c0_115 = arith.constant 0 : index
      %245 = vector.load %arg19[%c0_114, %c0_115] : memref<8x256xf32, #tpu.memory_space<vmem>>, vector<8x256xf32>
      tpu.vector_store %arg19[%c0_114, %c0_115], %244 {strides = array<i32>} : memref<8x256xf32, #tpu.memory_space<vmem>>, vector<8x256xf32>,
    } else {
    }
    %c0 = arith.constant 0 : index
    %c0_1 = arith.constant 0 : index
    %3 = vector.load %arg19[%c0, %c0_1] : memref<8x256xf32, #tpu.memory_space<vmem>>, vector<8x256xf32>
    %c0_2 = arith.constant 0 : index
    %c0_3 = arith.constant 0 : index
    %c0_4 = arith.constant 0 : index
    %4 = vector.load %arg4[%c0_2, %c0_3, %c0_4] : memref<1x256x768xf32, #tpu.memory_space<vmem>>, vector<1x256x768xf32>
    %5 = vector.shape_cast %4 : vector<1x256x768xf32> to vector<256x768xf32>
    %cst = arith.constant dense<0.000000e+00> : vector<8x768xf32>
    %6 = tpu.matmul %3, %5, %cst {dimension_numbers = #tpu.dot_dimension_numbers<[1], [0], [0], [1], [0, 0, 1, 1], [], []>} : vector<8x256xf32>, vector<256x768xf32>, vector<8x768xf32> -> vector<8x768xf32>
    %c0_5 = arith.constant 0 : index
    %c0_6 = arith.constant 0 : index
    %c0_7 = arith.constant 0 : index
    %7 = vector.load %arg5[%c0_5, %c0_6, %c0_7] : memref<1x1x768xf32, #tpu.memory_space<vmem>>, vector<1x1x768xf32>
    %8 = vector.shape_cast %7 : vector<1x1x768xf32> to vector<1x768xf32>
    %9 = vector.broadcast %8 : vector<1x768xf32> to vector<8x768xf32>
    %10 = arith.addf %6, %9 : vector<8x768xf32>
    %11 = vector.extract_strided_slice %10 {offsets = [0, 0], sizes = [8, 256], strides = [1, 1]} : vector<8x768xf32> to vector<8x256xf32>
    %12 = vector.extract_strided_slice %10 {offsets = [0, 256], sizes = [8, 256], strides = [1, 1]} : vector<8x768xf32> to vector<8x256xf32>
    %13 = vector.extract_strided_slice %10 {offsets = [0, 512], sizes = [8, 256], strides = [1, 1]} : vector<8x768xf32> to vector<8x256xf32>
    %cst_8 = arith.constant 0.000000e+00 : f32
    %14 = vector.broadcast %cst_8 : f32 to vector<8x256xf32>
    %15 = vector.extract_strided_slice %11 {offsets = [0, 0], sizes = [8, 32], strides = [1, 1]} : vector<8x256xf32> to vector<8x32xf32>
    %16 = vector.extract_strided_slice %12 {offsets = [0, 0], sizes = [8, 32], strides = [1, 1]} : vector<8x256xf32> to vector<8x32xf32>
    %17 = vector.extract_strided_slice %13 {offsets = [0, 0], sizes = [8, 32], strides = [1, 1]} : vector<8x256xf32> to vector<8x32xf32>
    %cst_9 = arith.constant dense<0.000000e+00> : vector<8x8xf32>
    %18 = tpu.matmul %15, %16, %cst_9 {dimension_numbers = #tpu.dot_dimension_numbers<[1], [1], [0], [0], [0, 0, 1, 0], [], []>} : vector<8x32xf32>, vector<8x32xf32>, vector<8x8xf32> -> vector<8x8xf32>
    %cst_10 = arith.constant dense<0xFF800000> : vector<8xf32>
    %19 = vector.multi_reduction <maximumf>, %18, %cst_10 [1] : vector<8x8xf32> to vector<8xf32>
    %20 = vector.shape_cast %19 : vector<8xf32> to vector<8x1xf32>
    %21 = vector.broadcast %20 : vector<8x1xf32> to vector<8x8xf32>
    %22 = arith.subf %18, %21 : vector<8x8xf32>
    %23 = math.exp %22 : vector<8x8xf32>
    %cst_11 = arith.constant dense<0.000000e+00> : vector<8xf32>
    %24 = vector.multi_reduction <add>, %23, %cst_11 [1] : vector<8x8xf32> to vector<8xf32>
    %25 = vector.shape_cast %24 : vector<8xf32> to vector<8x1xf32>
    %cst_12 = arith.constant dense<0.000000e+00> : vector<8x32xf32>
    %26 = tpu.matmul %23, %17, %cst_12 {dimension_numbers = #tpu.dot_dimension_numbers<[1], [0], [0], [1], [0, 0, 1, 1], [], []>} : vector<8x8xf32>, vector<8x32xf32>, vector<8x32xf32> -> vector<8x32xf32>
    %27 = tpu.reciprocal %25 {approx = true} : vector<8x1xf32> -> vector<8x1xf32>
    %28 = vector.broadcast %27 : vector<8x1xf32> to vector<8x32xf32>
    %29 = arith.mulf %26, %28 : vector<8x32xf32>
    %c0_13 = arith.constant 0 : index
    %c0_14 = arith.constant 0 : index
    %c0_15 = arith.constant 0 : index
    %30 = vector.load %arg6[%c0_13, %c0_14, %c0_15] : memref<1x256x256xf32, #tpu.memory_space<vmem>>, vector<1x32x256xf32>
    %31 = vector.shape_cast %30 : vector<1x32x256xf32> to vector<32x256xf32>
    %cst_16 = arith.constant dense<0.000000e+00> : vector<8x256xf32>
    %32 = tpu.matmul %29, %31, %cst_16 {dimension_numbers = #tpu.dot_dimension_numbers<[1], [0], [0], [1], [0, 0, 1, 1], [], []>} : vector<8x32xf32>, vector<32x256xf32>, vector<8x256xf32> -> vector<8x256xf32>
    %33 = arith.addf %14, %32 : vector<8x256xf32>
    %34 = vector.extract_strided_slice %11 {offsets = [0, 32], sizes = [8, 32], strides = [1, 1]} : vector<8x256xf32> to vector<8x32xf32>
    %35 = vector.extract_strided_slice %12 {offsets = [0, 32], sizes = [8, 32], strides = [1, 1]} : vector<8x256xf32> to vector<8x32xf32>
    %36 = vector.extract_strided_slice %13 {offsets = [0, 32], sizes = [8, 32], strides = [1, 1]} : vector<8x256xf32> to vector<8x32xf32>
    %cst_17 = arith.constant dense<0.000000e+00> : vector<8x8xf32>
    %37 = tpu.matmul %34, %35, %cst_17 {dimension_numbers = #tpu.dot_dimension_numbers<[1], [1], [0], [0], [0, 0, 1, 0], [], []>} : vector<8x32xf32>, vector<8x32xf32>, vector<8x8xf32> -> vector<8x8xf32>
    %cst_18 = arith.constant dense<0xFF800000> : vector<8xf32>
    %38 = vector.multi_reduction <maximumf>, %37, %cst_18 [1] : vector<8x8xf32> to vector<8xf32>
    %39 = vector.shape_cast %38 : vector<8xf32> to vector<8x1xf32>
    %40 = vector.broadcast %39 : vector<8x1xf32> to vector<8x8xf32>
    %41 = arith.subf %37, %40 : vector<8x8xf32>
    %42 = math.exp %41 : vector<8x8xf32>
    %cst_19 = arith.constant dense<0.000000e+00> : vector<8xf32>
    %43 = vector.multi_reduction <add>, %42, %cst_19 [1] : vector<8x8xf32> to vector<8xf32>
    %44 = vector.shape_cast %43 : vector<8xf32> to vector<8x1xf32>
    %cst_20 = arith.constant dense<0.000000e+00> : vector<8x32xf32>
    %45 = tpu.matmul %42, %36, %cst_20 {dimension_numbers = #tpu.dot_dimension_numbers<[1], [0], [0], [1], [0, 0, 1, 1], [], []>} : vector<8x8xf32>, vector<8x32xf32>, vector<8x32xf32> -> vector<8x32xf32>
    %46 = tpu.reciprocal %44 {approx = true} : vector<8x1xf32> -> vector<8x1xf32>
    %47 = vector.broadcast %46 : vector<8x1xf32> to vector<8x32xf32>
    %48 = arith.mulf %45, %47 : vector<8x32xf32>
    %c0_21 = arith.constant 0 : index
    %c32 = arith.constant 32 : index
    %c0_22 = arith.constant 0 : index
    %49 = vector.load %arg6[%c0_21, %c32, %c0_22] : memref<1x256x256xf32, #tpu.memory_space<vmem>>, vector<1x32x256xf32>
    %50 = vector.shape_cast %49 : vector<1x32x256xf32> to vector<32x256xf32>
    %cst_23 = arith.constant dense<0.000000e+00> : vector<8x256xf32>
    %51 = tpu.matmul %48, %50, %cst_23 {dimension_numbers = #tpu.dot_dimension_numbers<[1], [0], [0], [1], [0, 0, 1, 1], [], []>} : vector<8x32xf32>, vector<32x256xf32>, vector<8x256xf32> -> vector<8x256xf32>
    %52 = arith.addf %33, %51 : vector<8x256xf32>
    %53 = vector.extract_strided_slice %11 {offsets = [0, 64], sizes = [8, 32], strides = [1, 1]} : vector<8x256xf32> to vector<8x32xf32>
    %54 = vector.extract_strided_slice %12 {offsets = [0, 64], sizes = [8, 32], strides = [1, 1]} : vector<8x256xf32> to vector<8x32xf32>
    %55 = vector.extract_strided_slice %13 {offsets = [0, 64], sizes = [8, 32], strides = [1, 1]} : vector<8x256xf32> to vector<8x32xf32>
    %cst_24 = arith.constant dense<0.000000e+00> : vector<8x8xf32>
    %56 = tpu.matmul %53, %54, %cst_24 {dimension_numbers = #tpu.dot_dimension_numbers<[1], [1], [0], [0], [0, 0, 1, 0], [], []>} : vector<8x32xf32>, vector<8x32xf32>, vector<8x8xf32> -> vector<8x8xf32>
    %cst_25 = arith.constant dense<0xFF800000> : vector<8xf32>
    %57 = vector.multi_reduction <maximumf>, %56, %cst_25 [1] : vector<8x8xf32> to vector<8xf32>
    %58 = vector.shape_cast %57 : vector<8xf32> to vector<8x1xf32>
    %59 = vector.broadcast %58 : vector<8x1xf32> to vector<8x8xf32>
    %60 = arith.subf %56, %59 : vector<8x8xf32>
    %61 = math.exp %60 : vector<8x8xf32>
    %cst_26 = arith.constant dense<0.000000e+00> : vector<8xf32>
    %62 = vector.multi_reduction <add>, %61, %cst_26 [1] : vector<8x8xf32> to vector<8xf32>
    %63 = vector.shape_cast %62 : vector<8xf32> to vector<8x1xf32>
    %cst_27 = arith.constant dense<0.000000e+00> : vector<8x32xf32>
    %64 = tpu.matmul %61, %55, %cst_27 {dimension_numbers = #tpu.dot_dimension_numbers<[1], [0], [0], [1], [0, 0, 1, 1], [], []>} : vector<8x8xf32>, vector<8x32xf32>, vector<8x32xf32> -> vector<8x32xf32>
    %65 = tpu.reciprocal %63 {approx = true} : vector<8x1xf32> -> vector<8x1xf32>
    %66 = vector.broadcast %65 : vector<8x1xf32> to vector<8x32xf32>
    %67 = arith.mulf %64, %66 : vector<8x32xf32>
    %c0_28 = arith.constant 0 : index
    %c64 = arith.constant 64 : index
    %c0_29 = arith.constant 0 : index
    %68 = vector.load %arg6[%c0_28, %c64, %c0_29] : memref<1x256x256xf32, #tpu.memory_space<vmem>>, vector<1x32x256xf32>
    %69 = vector.shape_cast %68 : vector<1x32x256xf32> to vector<32x256xf32>
    %cst_30 = arith.constant dense<0.000000e+00> : vector<8x256xf32>
    %70 = tpu.matmul %67, %69, %cst_30 {dimension_numbers = #tpu.dot_dimension_numbers<[1], [0], [0], [1], [0, 0, 1, 1], [], []>} : vector<8x32xf32>, vector<32x256xf32>, vector<8x256xf32> -> vector<8x256xf32>
    %71 = arith.addf %52, %70 : vector<8x256xf32>
    %72 = vector.extract_strided_slice %11 {offsets = [0, 96], sizes = [8, 32], strides = [1, 1]} : vector<8x256xf32> to vector<8x32xf32>
    %73 = vector.extract_strided_slice %12 {offsets = [0, 96], sizes = [8, 32], strides = [1, 1]} : vector<8x256xf32> to vector<8x32xf32>
    %74 = vector.extract_strided_slice %13 {offsets = [0, 96], sizes = [8, 32], strides = [1, 1]} : vector<8x256xf32> to vector<8x32xf32>
    %cst_31 = arith.constant dense<0.000000e+00> : vector<8x8xf32>
    %75 = tpu.matmul %72, %73, %cst_31 {dimension_numbers = #tpu.dot_dimension_numbers<[1], [1], [0], [0], [0, 0, 1, 0], [], []>} : vector<8x32xf32>, vector<8x32xf32>, vector<8x8xf32> -> vector<8x8xf32>
    %cst_32 = arith.constant dense<0xFF800000> : vector<8xf32>
    %76 = vector.multi_reduction <maximumf>, %75, %cst_32 [1] : vector<8x8xf32> to vector<8xf32>
    %77 = vector.shape_cast %76 : vector<8xf32> to vector<8x1xf32>
    %78 = vector.broadcast %77 : vector<8x1xf32> to vector<8x8xf32>
    %79 = arith.subf %75, %78 : vector<8x8xf32>
    %80 = math.exp %79 : vector<8x8xf32>
    %cst_33 = arith.constant dense<0.000000e+00> : vector<8xf32>
    %81 = vector.multi_reduction <add>, %80, %cst_33 [1] : vector<8x8xf32> to vector<8xf32>
    %82 = vector.shape_cast %81 : vector<8xf32> to vector<8x1xf32>
    %cst_34 = arith.constant dense<0.000000e+00> : vector<8x32xf32>
    %83 = tpu.matmul %80, %74, %cst_34 {dimension_numbers = #tpu.dot_dimension_numbers<[1], [0], [0], [1], [0, 0, 1, 1], [], []>} : vector<8x8xf32>, vector<8x32xf32>, vector<8x32xf32> -> vector<8x32xf32>
    %84 = tpu.reciprocal %82 {approx = true} : vector<8x1xf32> -> vector<8x1xf32>
    %85 = vector.broadcast %84 : vector<8x1xf32> to vector<8x32xf32>
    %86 = arith.mulf %83, %85 : vector<8x32xf32>
    %c0_35 = arith.constant 0 : index
    %c96 = arith.constant 96 : index
    %c0_36 = arith.constant 0 : index
    %87 = vector.load %arg6[%c0_35, %c96, %c0_36] : memref<1x256x256xf32, #tpu.memory_space<vmem>>, vector<1x32x256xf32>
    %88 = vector.shape_cast %87 : vector<1x32x256xf32> to vector<32x256xf32>
    %cst_37 = arith.constant dense<0.000000e+00> : vector<8x256xf32>
    %89 = tpu.matmul %86, %88, %cst_37 {dimension_numbers = #tpu.dot_dimension_numbers<[1], [0], [0], [1], [0, 0, 1, 1], [], []>} : vector<8x32xf32>, vector<32x256xf32>, vector<8x256xf32> -> vector<8x256xf32>
    %90 = arith.addf %71, %89 : vector<8x256xf32>
    %91 = vector.extract_strided_slice %11 {offsets = [0, 128], sizes = [8, 32], strides = [1, 1]} : vector<8x256xf32> to vector<8x32xf32>
    %92 = vector.extract_strided_slice %12 {offsets = [0, 128], sizes = [8, 32], strides = [1, 1]} : vector<8x256xf32> to vector<8x32xf32>
    %93 = vector.extract_strided_slice %13 {offsets = [0, 128], sizes = [8, 32], strides = [1, 1]} : vector<8x256xf32> to vector<8x32xf32>
    %cst_38 = arith.constant dense<0.000000e+00> : vector<8x8xf32>
    %94 = tpu.matmul %91, %92, %cst_38 {dimension_numbers = #tpu.dot_dimension_numbers<[1], [1], [0], [0], [0, 0, 1, 0], [], []>} : vector<8x32xf32>, vector<8x32xf32>, vector<8x8xf32> -> vector<8x8xf32>
    %cst_39 = arith.constant dense<0xFF800000> : vector<8xf32>
    %95 = vector.multi_reduction <maximumf>, %94, %cst_39 [1] : vector<8x8xf32> to vector<8xf32>
    %96 = vector.shape_cast %95 : vector<8xf32> to vector<8x1xf32>
    %97 = vector.broadcast %96 : vector<8x1xf32> to vector<8x8xf32>
    %98 = arith.subf %94, %97 : vector<8x8xf32>
    %99 = math.exp %98 : vector<8x8xf32>
    %cst_40 = arith.constant dense<0.000000e+00> : vector<8xf32>
    %100 = vector.multi_reduction <add>, %99, %cst_40 [1] : vector<8x8xf32> to vector<8xf32>
    %101 = vector.shape_cast %100 : vector<8xf32> to vector<8x1xf32>
    %cst_41 = arith.constant dense<0.000000e+00> : vector<8x32xf32>
    %102 = tpu.matmul %99, %93, %cst_41 {dimension_numbers = #tpu.dot_dimension_numbers<[1], [0], [0], [1], [0, 0, 1, 1], [], []>} : vector<8x8xf32>, vector<8x32xf32>, vector<8x32xf32> -> vector<8x32xf32>
    %103 = tpu.reciprocal %101 {approx = true} : vector<8x1xf32> -> vector<8x1xf32>
    %104 = vector.broadcast %103 : vector<8x1xf32> to vector<8x32xf32>
    %105 = arith.mulf %102, %104 : vector<8x32xf32>
    %c0_42 = arith.constant 0 : index
    %c128 = arith.constant 128 : index
    %c0_43 = arith.constant 0 : index
    %106 = vector.load %arg6[%c0_42, %c128, %c0_43] : memref<1x256x256xf32, #tpu.memory_space<vmem>>, vector<1x32x256xf32>
    %107 = vector.shape_cast %106 : vector<1x32x256xf32> to vector<32x256xf32>
    %cst_44 = arith.constant dense<0.000000e+00> : vector<8x256xf32>
    %108 = tpu.matmul %105, %107, %cst_44 {dimension_numbers = #tpu.dot_dimension_numbers<[1], [0], [0], [1], [0, 0, 1, 1], [], []>} : vector<8x32xf32>, vector<32x256xf32>, vector<8x256xf32> -> vector<8x256xf32>
    %109 = arith.addf %90, %108 : vector<8x256xf32>
    %110 = vector.extract_strided_slice %11 {offsets = [0, 160], sizes = [8, 32], strides = [1, 1]} : vector<8x256xf32> to vector<8x32xf32>
    %111 = vector.extract_strided_slice %12 {offsets = [0, 160], sizes = [8, 32], strides = [1, 1]} : vector<8x256xf32> to vector<8x32xf32>
    %112 = vector.extract_strided_slice %13 {offsets = [0, 160], sizes = [8, 32], strides = [1, 1]} : vector<8x256xf32> to vector<8x32xf32>
    %cst_45 = arith.constant dense<0.000000e+00> : vector<8x8xf32>
    %113 = tpu.matmul %110, %111, %cst_45 {dimension_numbers = #tpu.dot_dimension_numbers<[1], [1], [0], [0], [0, 0, 1, 0], [], []>} : vector<8x32xf32>, vector<8x32xf32>, vector<8x8xf32> -> vector<8x8xf32>
    %cst_46 = arith.constant dense<0xFF800000> : vector<8xf32>
    %114 = vector.multi_reduction <maximumf>, %113, %cst_46 [1] : vector<8x8xf32> to vector<8xf32>
    %115 = vector.shape_cast %114 : vector<8xf32> to vector<8x1xf32>
    %116 = vector.broadcast %115 : vector<8x1xf32> to vector<8x8xf32>
    %117 = arith.subf %113, %116 : vector<8x8xf32>
    %118 = math.exp %117 : vector<8x8xf32>
    %cst_47 = arith.constant dense<0.000000e+00> : vector<8xf32>
    %119 = vector.multi_reduction <add>, %118, %cst_47 [1] : vector<8x8xf32> to vector<8xf32>
    %120 = vector.shape_cast %119 : vector<8xf32> to vector<8x1xf32>
    %cst_48 = arith.constant dense<0.000000e+00> : vector<8x32xf32>
    %121 = tpu.matmul %118, %112, %cst_48 {dimension_numbers = #tpu.dot_dimension_numbers<[1], [0], [0], [1], [0, 0, 1, 1], [], []>} : vector<8x8xf32>, vector<8x32xf32>, vector<8x32xf32> -> vector<8x32xf32>
    %122 = tpu.reciprocal %120 {approx = true} : vector<8x1xf32> -> vector<8x1xf32>
    %123 = vector.broadcast %122 : vector<8x1xf32> to vector<8x32xf32>
    %124 = arith.mulf %121, %123 : vector<8x32xf32>
    %c0_49 = arith.constant 0 : index
    %c160 = arith.constant 160 : index
    %c0_50 = arith.constant 0 : index
    %125 = vector.load %arg6[%c0_49, %c160, %c0_50] : memref<1x256x256xf32, #tpu.memory_space<vmem>>, vector<1x32x256xf32>
    %126 = vector.shape_cast %125 : vector<1x32x256xf32> to vector<32x256xf32>
    %cst_51 = arith.constant dense<0.000000e+00> : vector<8x256xf32>
    %127 = tpu.matmul %124, %126, %cst_51 {dimension_numbers = #tpu.dot_dimension_numbers<[1], [0], [0], [1], [0, 0, 1, 1], [], []>} : vector<8x32xf32>, vector<32x256xf32>, vector<8x256xf32> -> vector<8x256xf32>
    %128 = arith.addf %109, %127 : vector<8x256xf32>
    %129 = vector.extract_strided_slice %11 {offsets = [0, 192], sizes = [8, 32], strides = [1, 1]} : vector<8x256xf32> to vector<8x32xf32>
    %130 = vector.extract_strided_slice %12 {offsets = [0, 192], sizes = [8, 32], strides = [1, 1]} : vector<8x256xf32> to vector<8x32xf32>
    %131 = vector.extract_strided_slice %13 {offsets = [0, 192], sizes = [8, 32], strides = [1, 1]} : vector<8x256xf32> to vector<8x32xf32>
    %cst_52 = arith.constant dense<0.000000e+00> : vector<8x8xf32>
    %132 = tpu.matmul %129, %130, %cst_52 {dimension_numbers = #tpu.dot_dimension_numbers<[1], [1], [0], [0], [0, 0, 1, 0], [], []>} : vector<8x32xf32>, vector<8x32xf32>, vector<8x8xf32> -> vector<8x8xf32>
    %cst_53 = arith.constant dense<0xFF800000> : vector<8xf32>
    %133 = vector.multi_reduction <maximumf>, %132, %cst_53 [1] : vector<8x8xf32> to vector<8xf32>
    %134 = vector.shape_cast %133 : vector<8xf32> to vector<8x1xf32>
    %135 = vector.broadcast %134 : vector<8x1xf32> to vector<8x8xf32>
    %136 = arith.subf %132, %135 : vector<8x8xf32>
    %137 = math.exp %136 : vector<8x8xf32>
    %cst_54 = arith.constant dense<0.000000e+00> : vector<8xf32>
    %138 = vector.multi_reduction <add>, %137, %cst_54 [1] : vector<8x8xf32> to vector<8xf32>
    %139 = vector.shape_cast %138 : vector<8xf32> to vector<8x1xf32>
    %cst_55 = arith.constant dense<0.000000e+00> : vector<8x32xf32>
    %140 = tpu.matmul %137, %131, %cst_55 {dimension_numbers = #tpu.dot_dimension_numbers<[1], [0], [0], [1], [0, 0, 1, 1], [], []>} : vector<8x8xf32>, vector<8x32xf32>, vector<8x32xf32> -> vector<8x32xf32>
    %141 = tpu.reciprocal %139 {approx = true} : vector<8x1xf32> -> vector<8x1xf32>
    %142 = vector.broadcast %141 : vector<8x1xf32> to vector<8x32xf32>
    %143 = arith.mulf %140, %142 : vector<8x32xf32>
    %c0_56 = arith.constant 0 : index
    %c192 = arith.constant 192 : index
    %c0_57 = arith.constant 0 : index
    %144 = vector.load %arg6[%c0_56, %c192, %c0_57] : memref<1x256x256xf32, #tpu.memory_space<vmem>>, vector<1x32x256xf32>
    %145 = vector.shape_cast %144 : vector<1x32x256xf32> to vector<32x256xf32>
    %cst_58 = arith.constant dense<0.000000e+00> : vector<8x256xf32>
    %146 = tpu.matmul %143, %145, %cst_58 {dimension_numbers = #tpu.dot_dimension_numbers<[1], [0], [0], [1], [0, 0, 1, 1], [], []>} : vector<8x32xf32>, vector<32x256xf32>, vector<8x256xf32> -> vector<8x256xf32>
    %147 = arith.addf %128, %146 : vector<8x256xf32>
    %148 = vector.extract_strided_slice %11 {offsets = [0, 224], sizes = [8, 32], strides = [1, 1]} : vector<8x256xf32> to vector<8x32xf32>
    %149 = vector.extract_strided_slice %12 {offsets = [0, 224], sizes = [8, 32], strides = [1, 1]} : vector<8x256xf32> to vector<8x32xf32>
    %150 = vector.extract_strided_slice %13 {offsets = [0, 224], sizes = [8, 32], strides = [1, 1]} : vector<8x256xf32> to vector<8x32xf32>
    %cst_59 = arith.constant dense<0.000000e+00> : vector<8x8xf32>
    %151 = tpu.matmul %148, %149, %cst_59 {dimension_numbers = #tpu.dot_dimension_numbers<[1], [1], [0], [0], [0, 0, 1, 0], [], []>} : vector<8x32xf32>, vector<8x32xf32>, vector<8x8xf32> -> vector<8x8xf32>
    %cst_60 = arith.constant dense<0xFF800000> : vector<8xf32>
    %152 = vector.multi_reduction <maximumf>, %151, %cst_60 [1] : vector<8x8xf32> to vector<8xf32>
    %153 = vector.shape_cast %152 : vector<8xf32> to vector<8x1xf32>
    %154 = vector.broadcast %153 : vector<8x1xf32> to vector<8x8xf32>
    %155 = arith.subf %151, %154 : vector<8x8xf32>
    %156 = math.exp %155 : vector<8x8xf32>
    %cst_61 = arith.constant dense<0.000000e+00> : vector<8xf32>
    %157 = vector.multi_reduction <add>, %156, %cst_61 [1] : vector<8x8xf32> to vector<8xf32>
    %158 = vector.shape_cast %157 : vector<8xf32> to vector<8x1xf32>
    %cst_62 = arith.constant dense<0.000000e+00> : vector<8x32xf32>
    %159 = tpu.matmul %156, %150, %cst_62 {dimension_numbers = #tpu.dot_dimension_numbers<[1], [0], [0], [1], [0, 0, 1, 1], [], []>} : vector<8x8xf32>, vector<8x32xf32>, vector<8x32xf32> -> vector<8x32xf32>
    %160 = tpu.reciprocal %158 {approx = true} : vector<8x1xf32> -> vector<8x1xf32>
    %161 = vector.broadcast %160 : vector<8x1xf32> to vector<8x32xf32>
    %162 = arith.mulf %159, %161 : vector<8x32xf32>
    %c0_63 = arith.constant 0 : index
    %c224 = arith.constant 224 : index
    %c0_64 = arith.constant 0 : index
    %163 = vector.load %arg6[%c0_63, %c224, %c0_64] : memref<1x256x256xf32, #tpu.memory_space<vmem>>, vector<1x32x256xf32>
    %164 = vector.shape_cast %163 : vector<1x32x256xf32> to vector<32x256xf32>
    %cst_65 = arith.constant dense<0.000000e+00> : vector<8x256xf32>
    %165 = tpu.matmul %162, %164, %cst_65 {dimension_numbers = #tpu.dot_dimension_numbers<[1], [0], [0], [1], [0, 0, 1, 1], [], []>} : vector<8x32xf32>, vector<32x256xf32>, vector<8x256xf32> -> vector<8x256xf32>
    %166 = arith.addf %147, %165 : vector<8x256xf32>
    %167 = arith.addf %3, %166 : vector<8x256xf32>
    %c0_66 = arith.constant 0 : index
    %c0_67 = arith.constant 0 : index
    %c0_68 = arith.constant 0 : index
    %168 = vector.load %arg7[%c0_66, %c0_67, %c0_68] : memref<1x1x256xf32, #tpu.memory_space<vmem>>, vector<1x1x256xf32>
    %169 = vector.shape_cast %168 : vector<1x1x256xf32> to vector<1x256xf32>
    %170 = vector.broadcast %169 : vector<1x256xf32> to vector<8x256xf32>
    %171 = arith.addf %167, %170 : vector<8x256xf32>
    %cst_69 = arith.constant dense<0.000000e+00> : vector<8xf32>
    %172 = vector.multi_reduction <add>, %171, %cst_69 [1] : vector<8x256xf32> to vector<8xf32>
    %173 = vector.shape_cast %172 : vector<8xf32> to vector<8x1xf32>
    %cst_70 = arith.constant 2.560000e+02 : f32
    %174 = vector.broadcast %cst_70 : f32 to vector<8x1xf32>
    %175 = arith.divf %173, %174 : vector<8x1xf32>
    %176 = vector.broadcast %175 : vector<8x1xf32> to vector<8x256xf32>
    %177 = arith.subf %171, %176 : vector<8x256xf32>
    %178 = arith.mulf %177, %177 : vector<8x256xf32>
    %cst_71 = arith.constant dense<0.000000e+00> : vector<8xf32>
    %179 = vector.multi_reduction <add>, %178, %cst_71 [1] : vector<8x256xf32> to vector<8xf32>
    %180 = vector.shape_cast %179 : vector<8xf32> to vector<8x1xf32>
    %cst_72 = arith.constant 2.560000e+02 : f32
    %181 = vector.broadcast %cst_72 : f32 to vector<8x1xf32>
    %182 = arith.divf %180, %181 : vector<8x1xf32>
    %cst_73 = arith.constant 9.99999974E-6 : f32
    %183 = vector.broadcast %cst_73 : f32 to vector<8x1xf32>
    %184 = arith.addf %182, %183 : vector<8x1xf32>
    %185 = math.rsqrt %184 : vector<8x1xf32>
    %186 = vector.broadcast %185 : vector<8x1xf32> to vector<8x256xf32>
    %187 = arith.mulf %177, %186 : vector<8x256xf32>
    %c0_74 = arith.constant 0 : index
    %c0_75 = arith.constant 0 : index
    %c0_76 = arith.constant 0 : index
    %188 = vector.load %arg8[%c0_74, %c0_75, %c0_76] : memref<1x1x256xf32, #tpu.memory_space<vmem>>, vector<1x1x256xf32>
    %189 = vector.shape_cast %188 : vector<1x1x256xf32> to vector<1x256xf32>
    %190 = vector.broadcast %189 : vector<1x256xf32> to vector<8x256xf32>
    %191 = arith.mulf %187, %190 : vector<8x256xf32>
    %c0_77 = arith.constant 0 : index
    %c0_78 = arith.constant 0 : index
    %c0_79 = arith.constant 0 : index
    %192 = vector.load %arg9[%c0_77, %c0_78, %c0_79] : memref<1x1x256xf32, #tpu.memory_space<vmem>>, vector<1x1x256xf32>
    %193 = vector.shape_cast %192 : vector<1x1x256xf32> to vector<1x256xf32>
    %194 = vector.broadcast %193 : vector<1x256xf32> to vector<8x256xf32>
    %195 = arith.addf %191, %194 : vector<8x256xf32>
    %c0_80 = arith.constant 0 : index
    %c0_81 = arith.constant 0 : index
    %c0_82 = arith.constant 0 : index
    %196 = vector.load %arg12[%c0_80, %c0_81, %c0_82] : memref<1x256x256xf32, #tpu.memory_space<vmem>>, vector<1x256x256xf32>
    %197 = vector.shape_cast %196 : vector<1x256x256xf32> to vector<256x256xf32>
    %cst_83 = arith.constant dense<0.000000e+00> : vector<8x256xf32>
    %198 = tpu.matmul %195, %197, %cst_83 {dimension_numbers = #tpu.dot_dimension_numbers<[1], [0], [0], [1], [0, 0, 1, 1], [], []>} : vector<8x256xf32>, vector<256x256xf32>, vector<8x256xf32> -> vector<8x256xf32>
    %c0_84 = arith.constant 0 : index
    %c0_85 = arith.constant 0 : index
    %c0_86 = arith.constant 0 : index
    %199 = vector.load %arg13[%c0_84, %c0_85, %c0_86] : memref<1x1x256xf32, #tpu.memory_space<vmem>>, vector<1x1x256xf32>
    %200 = vector.shape_cast %199 : vector<1x1x256xf32> to vector<1x256xf32>
    %201 = vector.broadcast %200 : vector<1x256xf32> to vector<8x256xf32>
    %202 = arith.addf %198, %201 : vector<8x256xf32>
    %cst_87 = arith.constant 0.000000e+00 : f32
    %203 = vector.broadcast %cst_87 : f32 to vector<8x256xf32>
    %204 = arith.maximumf %202, %203 : vector<8x256xf32>
    %c0_88 = arith.constant 0 : index
    %c0_89 = arith.constant 0 : index
    %c0_90 = arith.constant 0 : index
    %205 = vector.load %arg14[%c0_88, %c0_89, %c0_90] : memref<1x256x256xf32, #tpu.memory_space<vmem>>, vector<1x256x256xf32>
    %206 = vector.shape_cast %205 : vector<1x256x256xf32> to vector<256x256xf32>
    %cst_91 = arith.constant dense<0.000000e+00> : vector<8x256xf32>
    %207 = tpu.matmul %204, %206, %cst_91 {dimension_numbers = #tpu.dot_dimension_numbers<[1], [0], [0], [1], [0, 0, 1, 1], [], []>} : vector<8x256xf32>, vector<256x256xf32>, vector<8x256xf32> -> vector<8x256xf32>
    %c0_92 = arith.constant 0 : index
    %c0_93 = arith.constant 0 : index
    %c0_94 = arith.constant 0 : index
    %208 = vector.load %arg15[%c0_92, %c0_93, %c0_94] : memref<1x1x256xf32, #tpu.memory_space<vmem>>, vector<1x1x256xf32>
    %209 = vector.shape_cast %208 : vector<1x1x256xf32> to vector<1x256xf32>
    %210 = vector.broadcast %209 : vector<1x256xf32> to vector<8x256xf32>
    %211 = arith.addf %207, %210 : vector<8x256xf32>
    %212 = arith.addf %195, %211 : vector<8x256xf32>
    %cst_95 = arith.constant dense<0.000000e+00> : vector<8xf32>
    %213 = vector.multi_reduction <add>, %212, %cst_95 [1] : vector<8x256xf32> to vector<8xf32>
    %214 = vector.shape_cast %213 : vector<8xf32> to vector<8x1xf32>
    %cst_96 = arith.constant 2.560000e+02 : f32
    %215 = vector.broadcast %cst_96 : f32 to vector<8x1xf32>
    %216 = arith.divf %214, %215 : vector<8x1xf32>
    %217 = vector.broadcast %216 : vector<8x1xf32> to vector<8x256xf32>
    %218 = arith.subf %212, %217 : vector<8x256xf32>
    %219 = arith.mulf %218, %218 : vector<8x256xf32>
    %cst_97 = arith.constant dense<0.000000e+00> : vector<8xf32>
    %220 = vector.multi_reduction <add>, %219, %cst_97 [1] : vector<8x256xf32> to vector<8xf32>
    %221 = vector.shape_cast %220 : vector<8xf32> to vector<8x1xf32>
    %cst_98 = arith.constant 2.560000e+02 : f32
    %222 = vector.broadcast %cst_98 : f32 to vector<8x1xf32>
    %223 = arith.divf %221, %222 : vector<8x1xf32>
    %cst_99 = arith.constant 9.99999974E-6 : f32
    %224 = vector.broadcast %cst_99 : f32 to vector<8x1xf32>
    %225 = arith.addf %223, %224 : vector<8x1xf32>
    %226 = math.rsqrt %225 : vector<8x1xf32>
    %227 = vector.broadcast %226 : vector<8x1xf32> to vector<8x256xf32>
    %228 = arith.mulf %218, %227 : vector<8x256xf32>
    %c0_100 = arith.constant 0 : index
    %c0_101 = arith.constant 0 : index
    %c0_102 = arith.constant 0 : index
    %229 = vector.load %arg10[%c0_100, %c0_101, %c0_102] : memref<1x1x256xf32, #tpu.memory_space<vmem>>, vector<1x1x256xf32>
    %230 = vector.shape_cast %229 : vector<1x1x256xf32> to vector<1x256xf32>
    %231 = vector.broadcast %230 : vector<1x256xf32> to vector<8x256xf32>
    %232 = arith.mulf %228, %231 : vector<8x256xf32>
    %c0_103 = arith.constant 0 : index
    %c0_104 = arith.constant 0 : index
    %c0_105 = arith.constant 0 : index
    %233 = vector.load %arg11[%c0_103, %c0_104, %c0_105] : memref<1x1x256xf32, #tpu.memory_space<vmem>>, vector<1x1x256xf32>
    %234 = vector.shape_cast %233 : vector<1x1x256xf32> to vector<1x256xf32>
    %235 = vector.broadcast %234 : vector<1x256xf32> to vector<8x256xf32>
    %236 = arith.addf %232, %235 : vector<8x256xf32>
    %c0_106 = arith.constant 0 : index
    %c0_107 = arith.constant 0 : index
    %237 = vector.load %arg19[%c0_106, %c0_107] : memref<8x256xf32, #tpu.memory_space<vmem>>, vector<8x256xf32>
    tpu.vector_store %arg19[%c0_106, %c0_107], %236 {strides = array<i32>} : memref<8x256xf32, #tpu.memory_space<vmem>>, vector<8x256xf32>,
    %c2_i32 = arith.constant 2 : i32
    %238 = arith.cmpi eq, %arg1, %c2_i32 : i32
    %239 = arith.extui %238 : i1 to i32
    %c0_i32_108 = arith.constant 0 : i32
    %240 = arith.cmpi ne, %239, %c0_i32_108 : i32
    scf.if %240 {
      %cst_109 = arith.constant dense<0.000000e+00> : vector<256xf32>
      %241 = vector.multi_reduction <add>, %236, %cst_109 [0] : vector<8x256xf32> to vector<256xf32>
      %242 = vector.shape_cast %241 : vector<256xf32> to vector<1x256xf32>
      %cst_110 = arith.constant 8.000000e+00 : f32
      %243 = vector.broadcast %cst_110 : f32 to vector<1x256xf32>
      %244 = arith.divf %242, %243 : vector<1x256xf32>
      %c0_111 = arith.constant 0 : index
      %c0_112 = arith.constant 0 : index
      %245 = vector.load %arg16[%c0_111, %c0_112] : memref<256x256xf32, #tpu.memory_space<vmem>>, vector<256x256xf32>
      %cst_113 = arith.constant dense<0.000000e+00> : vector<1x256xf32>
      %246 = tpu.matmul %244, %245, %cst_113 {dimension_numbers = #tpu.dot_dimension_numbers<[1], [0], [0], [1], [0, 0, 1, 1], [], []>} : vector<1x256xf32>, vector<256x256xf32>, vector<1x256xf32> -> vector<1x256xf32>
      %c0_114 = arith.constant 0 : index
      %c0_115 = arith.constant 0 : index
      %247 = vector.load %arg17[%c0_114, %c0_115] : memref<1x256xf32, #tpu.memory_space<vmem>>, vector<1x256xf32>
      %248 = arith.addf %246, %247 : vector<1x256xf32>
      %c0_116 = arith.constant 0 : index
      %c0_117 = arith.constant 0 : index
      %c0_118 = arith.constant 0 : index
      %249 = vector.load %arg18[%c0_116, %c0_117, %c0_118] : memref<1x1x256xf32, #tpu.memory_space<vmem>>, vector<1x1x256xf32>
      %250 = vector.shape_cast %249 : vector<1x1x256xf32> to vector<1x256xf32>
      %251 = vector.shape_cast %248 : vector<1x256xf32> to vector<1x1x256xf32>
      tpu.vector_store %arg18[%c0_116, %c0_117, %c0_118], %251 {strides = array<i32>} : memref<1x1x256xf32, #tpu.memory_space<vmem>>, vector<1x1x256xf32>,
    } else {
    }
    return
  }
  func.func @transform_0(%arg0: i32, %arg1: i32) -> (i32, i32, i32) {
    %c0_i32 = arith.constant 0 : i32
    %c0_i32_0 = arith.constant 0 : i32
    %c0_i32_1 = arith.constant 0 : i32
    return %arg0, %c0_i32, %c0_i32_0 : i32, i32, i32
  }
  func.func @transform_1(%arg0: i32, %arg1: i32) -> (i32, i32) {
    %c0_i32 = arith.constant 0 : i32
    %c0_i32_0 = arith.constant 0 : i32
    %c0_i32_1 = arith.constant 0 : i32
    return %c0_i32, %c0_i32_0 : i32, i32
  }
  func.func @transform_2(%arg0: i32, %arg1: i32) -> (i32, i32, i32) {
    %c0_i32 = arith.constant 0 : i32
    %c0_i32_0 = arith.constant 0 : i32
    %c0_i32_1 = arith.constant 0 : i32
    return %arg1, %c0_i32, %c0_i32_0 : i32, i32, i32
  }
  func.func @transform_3(%arg0: i32, %arg1: i32) -> (i32, i32, i32) {
    %c0_i32 = arith.constant 0 : i32
    %c0_i32_0 = arith.constant 0 : i32
    %c0_i32_1 = arith.constant 0 : i32
    return %arg1, %c0_i32, %c0_i32_0 : i32, i32, i32
  }
  func.func @transform_4(%arg0: i32, %arg1: i32) -> (i32, i32, i32) {
    %c0_i32 = arith.constant 0 : i32
    %c0_i32_0 = arith.constant 0 : i32
    %c0_i32_1 = arith.constant 0 : i32
    return %arg1, %c0_i32, %c0_i32_0 : i32, i32, i32
  }
  func.func @transform_5(%arg0: i32, %arg1: i32) -> (i32, i32, i32) {
    %c0_i32 = arith.constant 0 : i32
    %c0_i32_0 = arith.constant 0 : i32
    %c0_i32_1 = arith.constant 0 : i32
    return %arg1, %c0_i32, %c0_i32_0 : i32, i32, i32
  }
  func.func @transform_6(%arg0: i32, %arg1: i32) -> (i32, i32, i32) {
    %c0_i32 = arith.constant 0 : i32
    %c0_i32_0 = arith.constant 0 : i32
    %c0_i32_1 = arith.constant 0 : i32
    return %arg1, %c0_i32, %c0_i32_0 : i32, i32, i32
  }
  func.func @transform_7(%arg0: i32, %arg1: i32) -> (i32, i32, i32) {
    %c0_i32 = arith.constant 0 : i32
    %c0_i32_0 = arith.constant 0 : i32
    %c0_i32_1 = arith.constant 0 : i32
    return %arg1, %c0_i32, %c0_i32_0 : i32, i32, i32
  }
  func.func @transform_8(%arg0: i32, %arg1: i32) -> (i32, i32, i32) {
    %c0_i32 = arith.constant 0 : i32
    %c0_i32_0 = arith.constant 0 : i32
    %c0_i32_1 = arith.constant 0 : i32
    return %arg1, %c0_i32, %c0_i32_0 : i32, i32, i32
  }
  func.func @transform_9(%arg0: i32, %arg1: i32) -> (i32, i32, i32) {
    %c0_i32 = arith.constant 0 : i32
    %c0_i32_0 = arith.constant 0 : i32
    %c0_i32_1 = arith.constant 0 : i32
    return %arg1, %c0_i32, %c0_i32_0 : i32, i32, i32
  }
  func.func @transform_10(%arg0: i32, %arg1: i32) -> (i32, i32, i32) {
    %c0_i32 = arith.constant 0 : i32
    %c0_i32_0 = arith.constant 0 : i32
    %c0_i32_1 = arith.constant 0 : i32
    return %arg1, %c0_i32, %c0_i32_0 : i32, i32, i32
  }
  func.func @transform_11(%arg0: i32, %arg1: i32) -> (i32, i32, i32) {
    %c0_i32 = arith.constant 0 : i32
    %c0_i32_0 = arith.constant 0 : i32
    %c0_i32_1 = arith.constant 0 : i32
    return %arg1, %c0_i32, %c0_i32_0 : i32, i32, i32
  }
  func.func @transform_12(%arg0: i32, %arg1: i32) -> (i32, i32, i32) {
    %c0_i32 = arith.constant 0 : i32
    %c0_i32_0 = arith.constant 0 : i32
    %c0_i32_1 = arith.constant 0 : i32
    return %arg1, %c0_i32, %c0_i32_0 : i32, i32, i32
  }
  func.func @transform_13(%arg0: i32, %arg1: i32) -> (i32, i32, i32) {
    %c0_i32 = arith.constant 0 : i32
    %c0_i32_0 = arith.constant 0 : i32
    %c0_i32_1 = arith.constant 0 : i32
    return %arg1, %c0_i32, %c0_i32_0 : i32, i32, i32
  }
  func.func @transform_14(%arg0: i32, %arg1: i32) -> (i32, i32) {
    %c0_i32 = arith.constant 0 : i32
    %c0_i32_0 = arith.constant 0 : i32
    %c0_i32_1 = arith.constant 0 : i32
    return %c0_i32, %c0_i32_0 : i32, i32
  }
  func.func @transform_15(%arg0: i32, %arg1: i32) -> (i32, i32) {
    %c0_i32 = arith.constant 0 : i32
    %c0_i32_0 = arith.constant 0 : i32
    %c0_i32_1 = arith.constant 0 : i32
    return %c0_i32, %c0_i32_0 : i32, i32
  }
  func.func @transform_16(%arg0: i32, %arg1: i32) -> (i32, i32, i32) {
    %c0_i32 = arith.constant 0 : i32
    %c0_i32_0 = arith.constant 0 : i32
    %c0_i32_1 = arith.constant 0 : i32
    return %arg0, %c0_i32, %c0_i32_0 : i32, i32, i32
  }
}

</mosaic_0001>

<bundles_post_ra>
// kernel: tpu_custom_call.1
= control target key start
LH: loop header
LB: loop body
LE: loop exit
PB: predicated region body
PF: predicated region fallthrough
CT: control target
= control target key end

     0   :  { %s7374_s0 = inlined_call_operand.hbm [shape: f32[2,8,256], index: 0, kind: input, shape index: {}]   ;;  %s7375_s1 = inlined_call_operand.hbm [shape: f32[8,256], index: 1, kind: input, shape index: {}]   ;;  %s7376_s2 = inlined_call_operand.hbm [shape: f32[3,256,768], index: 2, kind: input, shape index: {}]   ;;  %s7377_s3 = inlined_call_operand.hbm [shape: f32[3,1,768], index: 3, kind: input, shape index: {}]   ;;  %s7378_s4 = inlined_call_operand.hbm [shape: f32[3,256,256], index: 4, kind: input, shape index: {}]   ;;  %s7379_s5 = inlined_call_operand.hbm [shape: f32[3,1,256], index: 5, kind: input, shape index: {}]   ;;  %s7380_s6 = inlined_call_operand.hbm [shape: f32[3,1,256], index: 6, kind: input, shape index: {}]   ;;  %s7381_s7 = inlined_call_operand.hbm [shape: f32[3,1,256], index: 7, kind: input, shape index: {}]   ;;  %s7382_s8 = inlined_call_operand.hbm [shape: f32[3,1,256], index: 8, kind: input, shape index: {}]   ;;  %s7383_s9 = inlined_call_operand.hbm [shape: f32[3,1,256], index: 9, kind: input, shape index: {}]   ;;  %s7384_s10 = inlined_call_operand.hbm [shape: f32[3,256,256], index: 10, kind: input, shape index: {}]   ;;  %s7385_s11 = inlined_call_operand.hbm [shape: f32[3,1,256], index: 11, kind: input, shape index: {}]   ;;  %s7386_s12 = inlined_call_operand.hbm [shape: f32[3,256,256], index: 12, kind: input, shape index: {}]   ;;  %s7387_s13 = inlined_call_operand.hbm [shape: f32[3,1,256], index: 13, kind: input, shape index: {}]   ;;  %s7388_s14 = inlined_call_operand.hbm [shape: f32[256,256], index: 14, kind: input, shape index: {}]   ;;  %s7389_s15 = inlined_call_operand.hbm [shape: f32[1,256], index: 15, kind: input, shape index: {}]   ;;  %s7390_s16 = inlined_call_operand.hbm [shape: f32[2,1,256], index: 16, kind: output, shape index: {}]  }
   0x1   :  { %7430 = sst [smem:[#allocation45_spill]] %s7374_s0 }
   0x2   :  { %7431 = sst [smem:[#allocation46_spill]] %s7375_s1 }
   0x3   :  { %7432 = sst [smem:[#allocation47_spill]] %s7376_s2 }
   0x4   :  { %7433 = sst [smem:[#allocation48_spill]] %s7377_s3 }
   0x5   :  { %7434 = sst [smem:[#allocation49_spill]] %s7378_s4 }
   0x6   :  { %7435 = sst [smem:[#allocation50_spill]] %s7379_s5 }
   0x7   :  { %7436 = sst [smem:[#allocation51_spill]] %s7380_s6 }
   0x8   :  { %7437 = sst [smem:[#allocation52_spill]] %s7381_s7 }
   0x9   :  { %7438 = sst [smem:[#allocation53_spill]] %s7382_s8 }
   0xa   :  { %7439 = sst [smem:[#allocation54_spill]] %s7383_s9 }
   0xb   :  { %7440 = sst [smem:[#allocation55_spill]] %s7384_s10 }
   0xc   :  { %7441 = sst [smem:[#allocation56_spill]] %s7385_s11 }
   0xd   :  { %7442 = sst [smem:[#allocation57_spill]] %s7386_s12 }
   0xe   :  { %7443 = sst [smem:[#allocation58_spill]] %s7387_s13 }
   0xf   :  { %7444 = sst [smem:[#allocation59_spill]] %s7388_s14 }
  0x10   :  { %7445 = sst [smem:[#allocation60_spill]] %s7390_s16 }
  0x11   :  { %21 = vsyncpa [#allocation4], 0 }
  0x12   :  { %23 = vsyncpa [#allocation4 + $0x1], 0 }
  0x13   :  { %24 = vsyncpa [#allocation7], 0 }
  0x14   :  { %25 = vsyncpa [#allocation22], 0 }
  0x15   :  { %26 = vsyncpa [#allocation5], 0 }
  0x16   :  { %28 = vsyncpa [#allocation5 + $0x1], 0  ;;  %s6003_s21 = smov 0   ;;  %s6005_s22 = smov 0  }
  0x17   :  { %s6007_s23 = smov 0   ;;  %s6009_s24 = smov 0  }
  0x18   :  { %s6011_s25 = smov 0   ;;  %s6013_s26 = smov 0  }
  0x19   :  { %s6015_s27 = smov 0   ;;  %s6017_s28 = smov 0  }
  0x1a   :  { %s6019_s29 = smov 0   ;;  %s6021_s30 = smov 0  }
  0x1b   :  { %s6023_s0 = smov 0  }
  0x1c LB: > { %7446 = sst [smem:[#allocation30_spill]] %s5851_s22  ;;  %s6059_s17 = sadd.s32 4294967295, %s5887_s0   ;;  %s5887_s0 = sphi %s6023_s0, %s34_s0   ;;  %s5883_s30 = sphi %s6021_s30, %s7531_s30   ;;  %s5879_s29 = sphi %s6019_s29, %s7530_s29   ;;  %s5875_s28 = sphi %s6017_s28, %s7529_s28   ;;  %s5871_s27 = sphi %s6015_s27, %s7528_s27   ;;  %s5867_s26 = sphi %s6013_s26, %s7527_s26   ;;  %s5863_s25 = sphi %s6011_s25, %s7526_s25   ;;  %s5859_s24 = sphi %s6009_s24, %s7520_s24   ;;  %s5855_s23 = sphi %s6007_s23, %s7525_s23   ;;  %s5851_s22 = sphi %s6005_s22, %s7524_s22   ;;  %s5847_s21 = sphi %s6003_s21, %s7518_s21  }
  0x1d   : > { %7447 = sst [smem:[#allocation31_spill]] %s5859_s24  ;;  %s4411_s18 = sadd.s32 4294967294, %s5887_s0  }
  0x1e   : > { %7448 = sst [smem:[#allocation32_spill]] %s5863_s25  ;;  %s43_s19 = sadd.s32 1, %s5879_s29 }
  0x1f   : > { %7449 = sst [smem:[#allocation33_spill]] %s5871_s27  ;;  %s46_s20 = sadd.s32 1, %s5883_s30 }
  0x20   : > { %7450 = sst [smem:[#allocation34_spill]] %s5875_s28  ;;  %p44_p0 = scmp.ge.s32.totalorder %s43_s19, 3 }
  0x21   : > { %7451 = sst [smem:[#allocation35_spill]] %s6059_s17  ;;  %s53_s16 = sadd.s32 1, %s5867_s26 }
  0x22   : > { %p7401_p1 = scmp.ne.s32.totalorder %s5867_s26, %s5863_s25  ;;  %p61_p2 = scmp.eq.s32.totalorder %s5887_s0, 0 }
  0x23   : > { %s7533_s19 = smov (%p44_p0, %s43_s19), 0  ;;  %s7535_s20 = smov (!%p44_p0, %s46_s20), %s5883_s30 }
  0x24   : > { %7452 = sst [smem:[#allocation36_spill]] %s7533_s19  ;;  %p6076_p3 = por %p61_p2, %p7401_p1 }
  0x25   : > { %p7400_p4 = scmp.ne.s32.totalorder %s5863_s25, %s5859_s24  ;;  %p48_p5 = scmp.ge.s32.totalorder %s7535_s20, 2 }
  0x26   : > { %s7453_s28 = scalar_select %p6076_p3, 1, 0 }
  0x27   : > { %p7412_p6 = scmp.eq.s32.totalorder %s6059_s17, 0  ;;  %s97_s27 = ssub.s32 %s5879_s29, %s7533_s19 }
  0x28   : > { %s100_s13 = sadd.s32 1, %s5855_s23  ;;  %s7537_s20 = smov (%p48_p5, %s7535_s20), 0 }
  0x29   : > { %7454 = sst [smem:[#allocation37_spill]] %s7537_s20  ;;  %p6093_p7 = por %p7412_p6, %p7400_p4 }
  0x2a   : > { %p98_p8 = scmp.eq.s32.totalorder %s97_s27, 0  ;;  %s50_s11 = ssub.s32 %s5883_s30, %s7537_s20 }
  0x2b   : > { %s7455_s12 = scalar_select %p6093_p7, 1, 0 }
  0x2c   : > { %p107_p9 = scmp.ne.s32.totalorder %s5855_s23, %s5851_s22  ;;  %p51_p10 = scmp.eq.s32.totalorder %s50_s11, 0 }
  0x2d   : > { %7456 = sst [smem:[#allocation38_spill]] %s7455_s12  ;;  %p113_p11 = scmp.ne.s32.totalorder %s5851_s22, %s5847_s21 }
  0x2e   : > { %s6104_s19 = scalar_select %p98_p8, %s5855_s23, %s100_s13  }
  0x2f   : > { %s6107_s10 = scalar_select %p51_p10, %s5867_s26, %s53_s16  }
  0x30   : > { %7457 = sst [smem:[#allocation39_spill]] %s6104_s19  ;;  %p6111_p12 = por %p107_p9, %p61_p2 }
  0x31   : > { %7458 = sst [smem:[#allocation40_spill]] %s6107_s10  ;;  %p6117_p13 = por %p113_p11, %p7412_p6 }
  0x32   : > { %s7459_s9 = scalar_select %p6111_p12, 1, 0 }
  0x33   : > { %s7460_s8 = scalar_select %p6117_p13, 1, 0 }
  0x34   : > { %p465_p0 = scmp.eq.s32.totalorder %s6059_s17, 5  ;;  %p471_p5 = scmp.eq.s32.totalorder %s4411_s18, 5 }
  0x35   : > { %7461 = sst [smem:[#allocation41_spill]] %s7460_s8  ;;  %p4412_p4 = scmp.ge.s32.totalorder %s5887_s0, 1 }
  0x36   : > { %p478_p1 = scmp.lt.s32.totalorder %s5887_s0, 7  ;;  %p7462_p7 = scmp.ne.s32.totalorder %s5867_s26, %s5863_s25 }
  0x37   : > { %p7465_p10 = scmp.ne.s32.totalorder %s5863_s25, %s5859_s24  ;;  %s5889_s21 = smov [#allocation6]  }
  0x38   : > { %p6127_p8 = por %p465_p0, %p7462_p7  ;;  %p6138_p2 = pnand %p4412_p4, %p478_p1 }
  0x39   : > { %p6134_p3 = por %p471_p5, %p7465_p10  ;;  %s491_s27 = sshll.u32 %s5889_s21, 4  ;;  %s492_s27 = int_to_ptr.vmem [resolvable:$true] %s491_s27 }
  0x3a   : > { %s7463_s11 = scalar_select %p6127_p8, 1, 0 }
  0x3b   : > { %s7466_s13 = scalar_select %p6134_p3, 1, 0 }
  0x3c   : > { %7464 = sst [smem:[#allocation42_spill]] %s7463_s11  ;;  %p5139_p9 = pneg %p6138_p2 }
  0x3d   : > { %7467 = sst [smem:[#allocation43_spill]] %s7466_s13  ;;  %s5890_s18 = smov [#allocation20]  }
  0x3e   : > { %s7468_s16 = scalar_select %p6138_p2, 1, 0 }
  0x3f   : > { %s501_s20 = sshll.u32 %s5890_s18, 4  ;;  %p6146_p7 = pnand %p5139_p9, %p7412_p6  ;;  %s6150_s20 = int_to_ptr.vmem [resolvable:$true] %s501_s20 }
  0x40   : > { %7469 = sst [smem:[#allocation44_spill]] %s7468_s16  ;;  %s7471_s1 = sld [smem:[#allocation46_spill]] }
  0x41   : > { %p6160_p4 = pneg %p6146_p7 }
  0x46   : > { %s5301_s24 = scalar_lea.hbm %s7471_s1, 256 }
  0x47   : > { %p5302_p1 = scmp.ne.s32.totalorder %s7471_s1, %s5301_s24  ;;  %p5308_p5 = scmp.lt.u32.totalorder %s5301_s24, %s7471_s1 }
  0x49   : > { %p5304_p11 = pnand %p6160_p4, %p5302_p1 }
  0x4b   : > { %p5305_p0 = pneg %p5304_p11 }
  0x4d   : > { %p5310_p10 = pnand %p5308_p5, %p5305_p0 }
  0x4f   : > { %5313 = shalt.err (!%p5310_p10)
}
  0x50   : > { %s5314_s19 = scalar_lea.vmem %s492_s27, 256  ;;  %p5322_p8 = scmp.lt.s32.totalorder %s492_s27, %s492_s27 }
  0x51   : > { %p5315_p9 = scmp.ne.s32.totalorder %s492_s27, %s5314_s19  ;;  %p5323_p13 = scmp.lt.s32.totalorder %s5314_s19, %s5314_s19 }
  0x53   : > { %p5317_p6 = pnand %p5315_p9, %p6160_p4  ;;  %p5324_p2 = por %p5323_p13, %p5322_p8 }
  0x55   : > { %p5318_p3 = pneg %p5317_p6 }
  0x57   : > { %p5325_p12 = pnand %p5324_p2, %p5318_p3 }
  0x59   : > { %5328 = shalt.err (!%p5325_p12)
}
  0x5a   : > { %5142 = dma.hbm_to_vmem [thread:$0]  (!%p6146_p7), %s7471_s1, 256, %s492_s27, [#allocation7]  }
  0x5b   : > { %s7473_s14 = sld [smem:[#allocation59_spill]] }
  0x61   : > { %s5329_s13 = scalar_lea.hbm %s7473_s14, 8192 }
  0x62   : > { %p5330_p6 = scmp.ne.s32.totalorder %s7473_s14, %s5329_s13  ;;  %p5336_p3 = scmp.lt.u32.totalorder %s5329_s13, %s7473_s14 }
  0x64   : > { %p5332_p1 = pnand %p5330_p6, %p6160_p4 }
  0x66   : > { %p5333_p13 = pneg %p5332_p1 }
  0x68   : > { %p5338_p12 = pnand %p5336_p3, %p5333_p13 }
  0x6a   : > { %5341 = shalt.err (!%p5338_p12)
}
  0x6b   : > { %s5342_s27 = scalar_lea.vmem %s6150_s20, 8192  ;;  %p5350_p0 = scmp.lt.s32.totalorder %s6150_s20, %s6150_s20 }
  0x6c   : > { %p5343_p8 = scmp.ne.s32.totalorder %s6150_s20, %s5342_s27  ;;  %p5351_p5 = scmp.lt.s32.totalorder %s5342_s27, %s5342_s27 }
  0x6e   : > { %p5345_p2 = pnand %p5343_p8, %p6160_p4  ;;  %p5352_p10 = por %p5351_p5, %p5350_p0 }
  0x70   : > { %p5346_p11 = pneg %p5345_p2 }
  0x72   : > { %p5353_p9 = pnand %p5352_p10, %p5346_p11 }
  0x74   : > { %5356 = shalt.err (!%p5353_p9)
}
  0x75   : > { %s5891_s12 = smov 256   ;;  %s5892_s25 = smov 16  }
  0x76   : > { %5145 = dma.hbm_to_vmem [thread:$0]  (!%p6146_p7), %s7473_s14, 8192, %s6150_s20, [#allocation7], %s5891_s12, %s5891_s12, %s5892_s25  }
  0x77   : > { %s5893_s22 = smov [#allocation21]   ;;  %s5357_s19 = scalar_lea.hbm %s7389_s15, 32 }
  0x78   : > { %s515_s24 = sshll.u32 %s5893_s22, 4  ;;  %p5358_p6 = scmp.ne.s32.totalorder %s7389_s15, %s5357_s19  ;;  %s516_s24 = int_to_ptr.vmem [resolvable:$true] %s515_s24 }
  0x79   : > { %p5364_p3 = scmp.lt.u32.totalorder %s5357_s19, %s7389_s15 }
  0x7a   : > { %p5360_p1 = pnand %p5358_p6, %p6160_p4 }
  0x7c   : > { %p5361_p13 = pneg %p5360_p1 }
  0x7e   : > { %p5366_p12 = pnand %p5364_p3, %p5361_p13 }
  0x80   : > { %5369 = shalt.err (!%p5366_p12)
}
  0x81   : > { %s5370_s20 = scalar_lea.vmem %s516_s24, 32  ;;  %p5378_p0 = scmp.lt.s32.totalorder %s516_s24, %s516_s24 }
  0x82   : > { %p5371_p8 = scmp.ne.s32.totalorder %s516_s24, %s5370_s20  ;;  %p5379_p5 = scmp.lt.s32.totalorder %s5370_s20, %s5370_s20 }
  0x84   : > { %p5373_p2 = pnand %p5371_p8, %p6160_p4  ;;  %p5380_p10 = por %p5379_p5, %p5378_p0 }
  0x86   : > { %p5374_p11 = pneg %p5373_p2 }
  0x88   : > { %p5381_p9 = pnand %p5380_p10, %p5374_p11 }
  0x8a   : > { %5384 = shalt.err (!%p5381_p9)
}
  0x8b   : > { %5148 = dma.hbm_to_vmem [thread:$0]  (!%p6146_p7), %s7389_s15, 32, %s516_s24, [#allocation22]  }
  0x8c   : > { %p4416_p6 = scmp.ge.s32.totalorder %s5887_s0, 6 }
  0x8d   : > { %s526_s17 = sand.u32 (!%p4416_p6), 1, %s5887_s0   ;;  %s528_s16 = sand.u32 (!%p4416_p6), 1, %s5867_s26  }
  0x8e   : > { %522 = sbr.rel (%p4416_p6) target bundleno = 476 (0x1dc), region = 28  ;;  %s4417_s21 = sshll.u32 (!%p4416_p6), %s528_s16, 4 }
  0x8f   : > { %s4507_s25 = sshll.u32 (!%p4416_p6), %s5883_s30, 8  ;;  %s7474_s22 = sld [smem:[#allocation45_spill]] (!%p4416_p6) }
  0x90   : > { %s530_s24 = scalar_lea.vmem (!%p4416_p6), [#allocation3], %s4417_s21  ;;  %s6229_s19 = sand.u32 (!%p4416_p6), 1, %s5855_s23  }
  0x91   : > { %s538_s18 = sshll.u32 (!%p4416_p6), %s530_s24, 4  ;;  %s6231_s27 = scalar_lea.sflag (!%p4416_p6), [#allocation4], %s526_s17  ;;  %s6226_s18 = int_to_ptr.vmem [resolvable:$true] %s538_s18 }
  0x92   : > { %p7476_p4 = scmp.ne.s32.totalorder (!%p4416_p6), %s7453_s28, 0 }
  0x95   : > { %s7475_s13 = smov %s7474_s22  ;;  %s6224_s10 = scalar_lea.hbm %s7474_s22, %s4507_s25 }
  0x96   : > { %s5385_s20 = scalar_lea.hbm %s6224_s10, 256  ;;  %s5389_s16 = scalar_lea.hbm %s7475_s13, 512 }
  0x97   : > { %p5386_p7 = scmp.ne.s32.totalorder %s6224_s10, %s5385_s20  ;;  %p5390_p3 = scmp.lt.u32.totalorder %s6224_s10, %s7475_s13 }
  0x98   : > { %p5391_p12 = scmp.lt.u32.totalorder %s5389_s16, %s5385_s20  ;;  %p5393_p2 = scmp.lt.u32.totalorder %s5385_s20, %s6224_s10 }
  0x99   : > { %p5387_p1 = pnand %p5386_p7, %p7476_p4 }
  0x9a   : > { %p5392_p8 = por %p5391_p12, %p5390_p3 }
  0x9b   : > { %p5388_p13 = pneg %p5387_p1 }
  0x9c   : > { %p5394_p11 = por %p5393_p2, %p5392_p8 }
  0x9e   : > { %p5395_p0 = pnand %p5394_p11, %p5388_p13 }
  0xa0   : > { %5398 = shalt.err (!%p5395_p0)
}
  0xa1   : > { %s5399_s17 = scalar_lea.vmem %s6226_s18, 256  ;;  %s5894_s21 = smov [#allocation3]  }
  0xa2   : > { %p5400_p5 = scmp.ne.s32.totalorder %s6226_s18, %s5399_s17  ;;  %s5403_s11 = sshll.u32 %s5894_s21, 4  ;;  %s5404_s11 = int_to_ptr.vmem [resolvable:$false] %s5403_s11 }
  0xa3   : > { %s5405_s22 = scalar_lea.vmem %s5404_s11, 512  ;;  %p5406_p6 = scmp.lt.s32.totalorder %s6226_s18, %s5404_s11 }
  0xa4   : > { %p5401_p10 = pnand %p5400_p5, %p7476_p4  ;;  %p5407_p7 = scmp.lt.s32.totalorder %s5405_s22, %s5399_s17 }
  0xa6   : > { %p5402_p9 = pneg %p5401_p10  ;;  %p5408_p1 = por %p5407_p7, %p5406_p6 }
  0xa8   : > { %p5409_p3 = pnand %p5408_p1, %p5402_p9 }
  0xaa   : > { %5412 = shalt.err (!%p5409_p3)
}
  0xab   : > { %5105 = dma.hbm_to_vmem [thread:$0]  (%p7476_p4), %s6224_s10, 256, %s6226_s18, %s6231_s27  }
  0xac   : > { %s5093_s24 = smul.u32 1536, %s6229_s19  ;;  %s7477_s2 = sld [smem:[#allocation47_spill]] }
  0xad   : > { %s5094_s20 = smul.u32 24576, %s5879_s29  ;;  %p7478_p12 = scmp.ne.s32.totalorder %s7459_s9, 0 }
  0xae   : > { %s5095_s1 = smul.u32 6, %s6229_s19  ;;  %s549_s28 = scalar_lea.vmem [#allocation8], %s5093_s24 }
  0xaf   : > { %s556_s8 = sshll.u32 %s549_s28, 4  ;;  %s6263_s8 = int_to_ptr.vmem [resolvable:$true] %s556_s8 }
  0xb2   : > { %s6261_s25 = scalar_lea.hbm %s7477_s2, %s5094_s20  ;;  %s5417_s21 = scalar_lea.hbm %s7477_s2, 73728 }
  0xb3   : > { %s5413_s17 = scalar_lea.hbm %s6261_s25, 24576  ;;  %p5418_p2 = scmp.lt.u32.totalorder %s6261_s25, %s7477_s2 }
  0xb4   : > { %p5414_p13 = scmp.ne.s32.totalorder %s6261_s25, %s5413_s17  ;;  %p5419_p11 = scmp.lt.u32.totalorder %s5417_s21, %s5413_s17 }
  0xb5   : > { %p5421_p5 = scmp.lt.u32.totalorder %s5413_s17, %s6261_s25 }
  0xb6   : > { %p5415_p4 = pnand %p5414_p13, %p7478_p12  ;;  %p5420_p0 = por %p5419_p11, %p5418_p2 }
  0xb8   : > { %p5416_p8 = pneg %p5415_p4  ;;  %p5422_p10 = por %p5421_p5, %p5420_p0 }
  0xba   : > { %p5423_p9 = pnand %p5422_p10, %p5416_p8 }
  0xbc   : > { %5426 = shalt.err (!%p5423_p9)
}
  0xbd   : > { %s5427_s24 = scalar_lea.vmem %s6263_s8, 24576  ;;  %s5895_s20 = smov [#allocation8]  }
  0xbe   : > { %p5428_p6 = scmp.ne.s32.totalorder %s6263_s8, %s5427_s24  ;;  %s5431_s12 = sshll.u32 %s5895_s20, 4  ;;  %s5432_s12 = int_to_ptr.vmem [resolvable:$false] %s5431_s12 }
  0xbf   : > { %s5433_s16 = scalar_lea.vmem %s5432_s12, 49152  ;;  %p5434_p3 = scmp.lt.s32.totalorder %s6263_s8, %s5432_s12 }
  0xc0   : > { %p5429_p7 = pnand %p5428_p6, %p7478_p12  ;;  %p5435_p13 = scmp.lt.s32.totalorder %s5433_s16, %s5427_s24 }
  0xc2   : > { %p5430_p1 = pneg %p5429_p7  ;;  %p5436_p4 = por %p5435_p13, %p5434_p3 }
  0xc4   : > { %p5437_p2 = pnand %p5436_p4, %p5430_p1 }
  0xc6   : > { %5440 = shalt.err (!%p5437_p2)
}
  0xc7   : > { %s5896_s28 = smov 768   ;;  %s5897_s17 = smov 48  }
  0xc8   : > { %5106 = dma.hbm_to_vmem [thread:$0]  (%p7478_p12), %s6261_s25, 24576, %s6263_s8, %s6231_s27, %s5896_s28, %s5896_s28, %s5897_s17  }
  0xc9   : > { %s5096_s10 = smul.u32 96, %s5879_s29  ;;  %s570_s18 = scalar_lea.vmem [#allocation9], %s5095_s1 }
  0xca   : > { %s578_s21 = sshll.u32 %s570_s18, 4  ;;  %s6293_s11 = sshll.u32 %s6229_s19, 9  ;;  %s6290_s21 = int_to_ptr.vmem [resolvable:$true] %s578_s21 }
  0xcb   : > { %s7479_s3 = sld [smem:[#allocation48_spill]] }
  0xd1   : > { %s576_s20 = scalar_lea.hbm %s7479_s3, %s5096_s10  ;;  %s5445_s25 = scalar_lea.hbm %s7479_s3, 288 }
  0xd2   : > { %s5441_s12 = scalar_lea.hbm %s576_s20, 96  ;;  %p5446_p5 = scmp.lt.u32.totalorder %s576_s20, %s7479_s3 }
  0xd3   : > { %p5442_p8 = scmp.ne.s32.totalorder %s576_s20, %s5441_s12  ;;  %p5447_p10 = scmp.lt.u32.totalorder %s5445_s25, %s5441_s12 }
  0xd4   : > { %p5449_p6 = scmp.lt.u32.totalorder %s5441_s12, %s576_s20 }
  0xd5   : > { %p5443_p11 = pnand %p5442_p8, %p7478_p12  ;;  %p5448_p9 = por %p5447_p10, %p5446_p5 }
  0xd7   : > { %p5444_p0 = pneg %p5443_p11  ;;  %p5450_p7 = por %p5449_p6, %p5448_p9 }
  0xd9   : > { %p5451_p1 = pnand %p5450_p7, %p5444_p0 }
  0xdb   : > { %5454 = shalt.err (!%p5451_p1)
}
  0xdc   : > { %s5455_s28 = scalar_lea.vmem %s6290_s21, 96  ;;  %s5898_s2 = smov [#allocation9]  }
  0xdd   : > { %p5456_p3 = scmp.ne.s32.totalorder %s6290_s21, %s5455_s28  ;;  %s5459_s17 = sshll.u32 %s5898_s2, 4  ;;  %s5460_s17 = int_to_ptr.vmem [resolvable:$false] %s5459_s17 }
  0xde   : > { %s5461_s10 = scalar_lea.vmem %s5460_s17, 192  ;;  %p5462_p2 = scmp.lt.s32.totalorder %s6290_s21, %s5460_s17 }
  0xdf   : > { %p5457_p13 = pnand %p5456_p3, %p7478_p12  ;;  %p5463_p8 = scmp.lt.s32.totalorder %s5461_s10, %s5455_s28 }
  0xe1   : > { %p5458_p4 = pneg %p5457_p13  ;;  %p5464_p11 = por %p5463_p8, %p5462_p2 }
  0xe3   : > { %p5465_p5 = pnand %p5464_p11, %p5458_p4 }
  0xe5   : > { %5468 = shalt.err (!%p5465_p5)
}
  0xe6   : > { %5107 = dma.hbm_to_vmem [thread:$0]  (%p7478_p12), %s576_s20, 96, %s6290_s21, %s6231_s27  }
  0xe7   : > { %s6316_s18 = sshll.u32 %s5879_s29, 13  ;;  %s589_s22 = scalar_lea.vmem [#allocation10], %s6293_s11 }
  0xe8   : > { %s596_s24 = sshll.u32 %s589_s22, 4  ;;  %s7480_s4 = sld [smem:[#allocation49_spill]]  ;;  %s6325_s24 = int_to_ptr.vmem [resolvable:$true] %s596_s24 }
  0xee   : > { %s6323_s25 = scalar_lea.hbm %s7480_s4, %s6316_s18  ;;  %s5473_s1 = scalar_lea.hbm %s7480_s4, 24576 }
  0xef   : > { %s5469_s8 = scalar_lea.hbm %s6323_s25, 8192  ;;  %p5474_p6 = scmp.lt.u32.totalorder %s6323_s25, %s7480_s4 }
  0xf0   : > { %p5470_p0 = scmp.ne.s32.totalorder %s6323_s25, %s5469_s8  ;;  %p5475_p7 = scmp.lt.u32.totalorder %s5473_s1, %s5469_s8 }
  0xf1   : > { %p5477_p3 = scmp.lt.u32.totalorder %s5469_s8, %s6323_s25 }
  0xf2   : > { %p5471_p10 = pnand %p5470_p0, %p7478_p12  ;;  %p5476_p1 = por %p5475_p7, %p5474_p6 }
  0xf4   : > { %p5472_p9 = pneg %p5471_p10  ;;  %p5478_p13 = por %p5477_p3, %p5476_p1 }
  0xf6   : > { %p5479_p4 = pnand %p5478_p13, %p5472_p9 }
  0xf8   : > { %5482 = shalt.err (!%p5479_p4)
}
  0xf9   : > { %s5483_s17 = scalar_lea.vmem %s6325_s24, 8192  ;;  %s5899_s10 = smov [#allocation10]  }
  0xfa   : > { %p5484_p2 = scmp.ne.s32.totalorder %s6325_s24, %s5483_s17  ;;  %s5487_s22 = sshll.u32 %s5899_s10, 4  ;;  %s5488_s22 = int_to_ptr.vmem [resolvable:$false] %s5487_s22 }
  0xfb   : > { %s5489_s12 = scalar_lea.vmem %s5488_s22, 16384  ;;  %p5490_p5 = scmp.lt.s32.totalorder %s6325_s24, %s5488_s22 }
  0xfc   : > { %p5485_p8 = pnand %p5484_p2, %p7478_p12  ;;  %p5491_p0 = scmp.lt.s32.totalorder %s5489_s12, %s5483_s17 }
  0xfe   : > { %p5486_p11 = pneg %p5485_p8  ;;  %p5492_p10 = por %p5491_p0, %p5490_p5 }
 0x100   : > { %p5493_p6 = pnand %p5492_p10, %p5486_p11 }
 0x102   : > { %5496 = shalt.err (!%p5493_p6)
}
 0x103   : > { %s7423_s16 = smov 256   ;;  %s7425_s8 = smov 16  }
 0x104   : > { %5108 = dma.hbm_to_vmem [thread:$0]  (%p7478_p12), %s6323_s25, 8192, %s6325_s24, %s6231_s27, %s7423_s16, %s7423_s16, %s7425_s8  }
 0x105   : > { %s6353_s21 = sshll.u32 %s6229_s19, 1  ;;  %s6356_s20 = sshll.u32 %s5879_s29, 5 }
 0x106   : > { %s7481_s5 = sld [smem:[#allocation50_spill]]  ;;  %s610_s17 = scalar_lea.vmem [#allocation11], %s6353_s21 }
 0x107   : > { %s618_s10 = sshll.u32 %s610_s17, 4  ;;  %s7482_s6 = sld [smem:[#allocation51_spill]]  ;;  %s619_s10 = int_to_ptr.vmem [resolvable:$true] %s618_s10 }
 0x10c   : > { %s6362_s2 = scalar_lea.hbm %s7481_s5, %s6356_s20  ;;  %s5501_s28 = scalar_lea.hbm %s7481_s5, 96 }
 0x10d   : > { %s6369_s25 = scalar_lea.hbm %s7482_s6, %s6356_s20  ;;  %s5497_s22 = scalar_lea.hbm %s6362_s2, 32 }
 0x10e   : > { %p5498_p9 = scmp.ne.s32.totalorder %s6362_s2, %s5497_s22  ;;  %p5502_p3 = scmp.lt.u32.totalorder %s6362_s2, %s7481_s5 }
 0x10f   : > { %p5503_p13 = scmp.lt.u32.totalorder %s5501_s28, %s5497_s22  ;;  %p5505_p2 = scmp.lt.u32.totalorder %s5497_s22, %s6362_s2 }
 0x110   : > { %p5499_p7 = pnand %p5498_p9, %p7478_p12 }
 0x111   : > { %p5504_p4 = por %p5503_p13, %p5502_p3 }
 0x112   : > { %p5500_p1 = pneg %p5499_p7 }
 0x113   : > { %p5506_p8 = por %p5505_p2, %p5504_p4 }
 0x115   : > { %p5507_p11 = pnand %p5506_p8, %p5500_p1 }
 0x117   : > { %5510 = shalt.err (!%p5507_p11)
}
 0x118   : > { %s5511_s17 = scalar_lea.vmem %s619_s10, 32  ;;  %s5902_s24 = smov [#allocation11]  }
 0x119   : > { %p5512_p5 = scmp.ne.s32.totalorder %s619_s10, %s5511_s17  ;;  %s5515_s19 = sshll.u32 %s5902_s24, 4  ;;  %s5516_s19 = int_to_ptr.vmem [resolvable:$false] %s5515_s19 }
 0x11a   : > { %s5517_s12 = scalar_lea.vmem %s5516_s19, 64  ;;  %p5518_p6 = scmp.lt.s32.totalorder %s619_s10, %s5516_s19 }
 0x11b   : > { %p5513_p0 = pnand %p5512_p5, %p7478_p12  ;;  %p5519_p9 = scmp.lt.s32.totalorder %s5517_s12, %s5511_s17 }
 0x11d   : > { %p5514_p10 = pneg %p5513_p0  ;;  %p5520_p7 = por %p5519_p9, %p5518_p6 }
 0x11f   : > { %p5521_p3 = pnand %p5520_p7, %p5514_p10 }
 0x121   : > { %5524 = shalt.err (!%p5521_p3)
}
 0x122   : > { %5109 = dma.hbm_to_vmem [thread:$0]  (%p7478_p12), %s6362_s2, 32, %s619_s10, %s6231_s27  }
 0x123   : > { %s629_s16 = scalar_lea.vmem [#allocation12], %s6353_s21  ;;  %s7483_s7 = sld [smem:[#allocation52_spill]] }
 0x124   : > { %s637_s8 = sshll.u32 %s629_s16, 4  ;;  %s5525_s17 = scalar_lea.hbm %s6369_s25, 32  ;;  %s638_s8 = int_to_ptr.vmem [resolvable:$true] %s637_s8 }
 0x125   : > { %p5526_p1 = scmp.ne.s32.totalorder %s6369_s25, %s5525_s17  ;;  %s5529_s12 = scalar_lea.hbm %s7482_s6, 96 }
 0x126   : > { %p5530_p2 = scmp.lt.u32.totalorder %s6369_s25, %s7482_s6  ;;  %p5531_p8 = scmp.lt.u32.totalorder %s5529_s12, %s5525_s17 }
 0x127   : > { %p5527_p13 = pnand %p5526_p1, %p7478_p12  ;;  %p5533_p5 = scmp.lt.u32.totalorder %s5525_s17, %s6369_s25 }
 0x128   : > { %p5532_p11 = por %p5531_p8, %p5530_p2 }
 0x129   : > { %s6394_s28 = scalar_lea.hbm %s7483_s7, %s6356_s20  ;;  %p5528_p4 = pneg %p5527_p13 }
 0x12a   : > { %p5534_p0 = por %p5533_p5, %p5532_p11 }
 0x12c   : > { %p5535_p10 = pnand %p5534_p0, %p5528_p4 }
 0x12e   : > { %5538 = shalt.err (!%p5535_p10)
}
 0x12f   : > { %s5539_s2 = scalar_lea.vmem %s638_s8, 32  ;;  %s5903_s10 = smov [#allocation12]  }
 0x130   : > { %p5540_p6 = scmp.ne.s32.totalorder %s638_s8, %s5539_s2  ;;  %s5543_s16 = sshll.u32 %s5903_s10, 4  ;;  %s5544_s16 = int_to_ptr.vmem [resolvable:$false] %s5543_s16 }
 0x131   : > { %s5545_s22 = scalar_lea.vmem %s5544_s16, 64  ;;  %p5546_p3 = scmp.lt.s32.totalorder %s638_s8, %s5544_s16 }
 0x132   : > { %p5541_p9 = pnand %p5540_p6, %p7478_p12  ;;  %p5547_p1 = scmp.lt.s32.totalorder %s5545_s22, %s5539_s2 }
 0x134   : > { %p5542_p7 = pneg %p5541_p9  ;;  %p5548_p13 = por %p5547_p1, %p5546_p3 }
 0x136   : > { %p5549_p2 = pnand %p5548_p13, %p5542_p7 }
 0x138   : > { %5552 = shalt.err (!%p5549_p2)
}
 0x139   : > { %5110 = dma.hbm_to_vmem [thread:$0]  (%p7478_p12), %s6369_s25, 32, %s638_s8, %s6231_s27  }
 0x13a   : > { %s648_s3 = scalar_lea.vmem [#allocation13], %s6353_s21  ;;  %s7484_s24 = sld [smem:[#allocation53_spill]] }
 0x13b   : > { %s656_s4 = sshll.u32 %s648_s3, 4  ;;  %s5553_s2 = scalar_lea.hbm %s6394_s28, 32  ;;  %s657_s4 = int_to_ptr.vmem [resolvable:$true] %s656_s4 }
 0x13c   : > { %p5554_p4 = scmp.ne.s32.totalorder %s6394_s28, %s5553_s2  ;;  %s5557_s22 = scalar_lea.hbm %s7483_s7, 96 }
 0x13d   : > { %p5558_p5 = scmp.lt.u32.totalorder %s6394_s28, %s7483_s7  ;;  %p5559_p0 = scmp.lt.u32.totalorder %s5557_s22, %s5553_s2 }
 0x13e   : > { %p5555_p8 = pnand %p5554_p4, %p7478_p12  ;;  %p5561_p6 = scmp.lt.u32.totalorder %s5553_s2, %s6394_s28 }
 0x13f   : > { %p5560_p10 = por %p5559_p0, %p5558_p5 }
 0x140   : > { %s7485_s19 = smov %s7484_s24  ;;  %s6419_s12 = scalar_lea.hbm %s7484_s24, %s6356_s20 }
 0x141   : > { %p5556_p11 = pneg %p5555_p8  ;;  %p5562_p9 = por %p5561_p6, %p5560_p10 }
 0x143   : > { %p5563_p7 = pnand %p5562_p9, %p5556_p11 }
 0x145   : > { %5566 = shalt.err (!%p5563_p7)
}
 0x146   : > { %s5567_s25 = scalar_lea.vmem %s657_s4, 32  ;;  %s5904_s8 = smov [#allocation13]  }
 0x147   : > { %p5568_p3 = scmp.ne.s32.totalorder %s657_s4, %s5567_s25  ;;  %s5571_s3 = sshll.u32 %s5904_s8, 4  ;;  %s5572_s3 = int_to_ptr.vmem [resolvable:$false] %s5571_s3 }
 0x148   : > { %s5573_s1 = scalar_lea.vmem %s5572_s3, 64  ;;  %p5574_p2 = scmp.lt.s32.totalorder %s657_s4, %s5572_s3 }
 0x149   : > { %p5569_p1 = pnand %p5568_p3, %p7478_p12  ;;  %p5575_p4 = scmp.lt.s32.totalorder %s5573_s1, %s5567_s25 }
 0x14b   : > { %p5570_p13 = pneg %p5569_p1  ;;  %p5576_p8 = por %p5575_p4, %p5574_p2 }
 0x14d   : > { %p5577_p0 = pnand %p5576_p8, %p5570_p13 }
 0x14f   : > { %5580 = shalt.err (!%p5577_p0)
}
 0x150   : > { %5111 = dma.hbm_to_vmem [thread:$0]  (%p7478_p12), %s6394_s28, 32, %s657_s4, %s6231_s27  }
 0x151   : > { %s667_s5 = scalar_lea.vmem [#allocation14], %s6353_s21  ;;  %s7486_s2 = sld [smem:[#allocation54_spill]] }
 0x152   : > { %s675_s6 = sshll.u32 %s667_s5, 4  ;;  %s5581_s16 = scalar_lea.hbm %s6419_s12, 32  ;;  %s676_s6 = int_to_ptr.vmem [resolvable:$true] %s675_s6 }
 0x153   : > { %p5582_p11 = scmp.ne.s32.totalorder %s6419_s12, %s5581_s16  ;;  %s5585_s8 = scalar_lea.hbm %s7485_s19, 96 }
 0x154   : > { %p5586_p6 = scmp.lt.u32.totalorder %s6419_s12, %s7485_s19  ;;  %p5587_p9 = scmp.lt.u32.totalorder %s5585_s8, %s5581_s16 }
 0x155   : > { %p5583_p5 = pnand %p5582_p11, %p7478_p12  ;;  %p5589_p3 = scmp.lt.u32.totalorder %s5581_s16, %s6419_s12 }
 0x156   : > { %p5588_p7 = por %p5587_p9, %p5586_p6 }
 0x157   : > { %s6444_s10 = scalar_lea.hbm %s7486_s2, %s6356_s20  ;;  %p5584_p10 = pneg %p5583_p5 }
 0x158   : > { %p5590_p1 = por %p5589_p3, %p5588_p7 }
 0x15a   : > { %p5591_p13 = pnand %p5590_p1, %p5584_p10 }
 0x15c   : > { %5594 = shalt.err (!%p5591_p13)
}
 0x15d   : > { %s5595_s28 = scalar_lea.vmem %s676_s6, 32  ;;  %s5905_s4 = smov [#allocation14]  }
 0x15e   : > { %p5596_p2 = scmp.ne.s32.totalorder %s676_s6, %s5595_s28  ;;  %s5599_s5 = sshll.u32 %s5905_s4, 4  ;;  %s5600_s5 = int_to_ptr.vmem [resolvable:$false] %s5599_s5 }
 0x15f   : > { %s5601_s17 = scalar_lea.vmem %s5600_s5, 64  ;;  %p5602_p0 = scmp.lt.s32.totalorder %s676_s6, %s5600_s5 }
 0x160   : > { %p5597_p4 = pnand %p5596_p2, %p7478_p12  ;;  %p5603_p11 = scmp.lt.s32.totalorder %s5601_s17, %s5595_s28 }
 0x162   : > { %p5598_p8 = pneg %p5597_p4  ;;  %p5604_p5 = por %p5603_p11, %p5602_p0 }
 0x164   : > { %p5605_p6 = pnand %p5604_p5, %p5598_p8 }
 0x166   : > { %5608 = shalt.err (!%p5605_p6)
}
 0x167   : > { %5112 = dma.hbm_to_vmem [thread:$0]  (%p7478_p12), %s6419_s12, 32, %s676_s6, %s6231_s27  }
 0x168   : > { %s686_s24 = scalar_lea.vmem [#allocation15], %s6353_s21  ;;  %s7487_s8 = sld [smem:[#allocation55_spill]] }
 0x169   : > { %s694_s16 = sshll.u32 %s686_s24, 4  ;;  %s5609_s1 = scalar_lea.hbm %s6444_s10, 32  ;;  %s695_s16 = int_to_ptr.vmem [resolvable:$true] %s694_s16 }
 0x16a   : > { %p5610_p10 = scmp.ne.s32.totalorder %s6444_s10, %s5609_s1  ;;  %s5613_s5 = scalar_lea.hbm %s7486_s2, 96 }
 0x16b   : > { %p5614_p3 = scmp.lt.u32.totalorder %s6444_s10, %s7486_s2  ;;  %p5615_p1 = scmp.lt.u32.totalorder %s5613_s5, %s5609_s1 }
 0x16c   : > { %p5611_p9 = pnand %p5610_p10, %p7478_p12  ;;  %p5617_p2 = scmp.lt.u32.totalorder %s5609_s1, %s6444_s10 }
 0x16d   : > { %p5616_p13 = por %p5615_p1, %p5614_p3 }
 0x16e   : > { %s6469_s3 = scalar_lea.hbm %s7487_s8, %s6316_s18  ;;  %p5612_p7 = pneg %p5611_p9 }
 0x16f   : > { %p5618_p4 = por %p5617_p2, %p5616_p13 }
 0x171   : > { %p5619_p8 = pnand %p5618_p4, %p5612_p7 }
 0x173   : > { %5622 = shalt.err (!%p5619_p8)
}
 0x174   : > { %s5623_s12 = scalar_lea.vmem %s695_s16, 32  ;;  %s5906_s6 = smov [#allocation15]  }
 0x175   : > { %p5624_p0 = scmp.ne.s32.totalorder %s695_s16, %s5623_s12  ;;  %s5627_s24 = sshll.u32 %s5906_s6, 4  ;;  %s5628_s24 = int_to_ptr.vmem [resolvable:$false] %s5627_s24 }
 0x176   : > { %s5629_s22 = scalar_lea.vmem %s5628_s24, 64  ;;  %p5630_p6 = scmp.lt.s32.totalorder %s695_s16, %s5628_s24 }
 0x177   : > { %p5625_p11 = pnand %p5624_p0, %p7478_p12  ;;  %p5631_p10 = scmp.lt.s32.totalorder %s5629_s22, %s5623_s12 }
 0x179   : > { %p5626_p5 = pneg %p5625_p11  ;;  %p5632_p9 = por %p5631_p10, %p5630_p6 }
 0x17b   : > { %p5633_p1 = pnand %p5632_p9, %p5626_p5 }
 0x17d   : > { %5636 = shalt.err (!%p5633_p1)
}
 0x17e   : > { %5113 = dma.hbm_to_vmem [thread:$0]  (%p7478_p12), %s6444_s10, 32, %s695_s16, %s6231_s27  }
 0x17f   : > { %s705_s7 = scalar_lea.vmem [#allocation16], %s6293_s11  ;;  %s7488_s4 = sld [smem:[#allocation56_spill]] }
 0x180   : > { %s712_s25 = sshll.u32 %s705_s7, 4  ;;  %s5637_s17 = scalar_lea.hbm %s6469_s3, 8192  ;;  %s6490_s25 = int_to_ptr.vmem [resolvable:$true] %s712_s25 }
 0x181   : > { %p5638_p7 = scmp.ne.s32.totalorder %s6469_s3, %s5637_s17  ;;  %s5641_s24 = scalar_lea.hbm %s7487_s8, 24576 }
 0x182   : > { %p5642_p2 = scmp.lt.u32.totalorder %s6469_s3, %s7487_s8  ;;  %p5643_p4 = scmp.lt.u32.totalorder %s5641_s24, %s5637_s17 }
 0x183   : > { %p5639_p3 = pnand %p5638_p7, %p7478_p12  ;;  %p5645_p0 = scmp.lt.u32.totalorder %s5637_s17, %s6469_s3 }
 0x184   : > { %p5644_p8 = por %p5643_p4, %p5642_p2 }
 0x185   : > { %s6496_s5 = scalar_lea.hbm %s7488_s4, %s6356_s20  ;;  %p5640_p13 = pneg %p5639_p3 }
 0x186   : > { %p5646_p11 = por %p5645_p0, %p5644_p8 }
 0x188   : > { %p5647_p5 = pnand %p5646_p11, %p5640_p13 }
 0x18a   : > { %5650 = shalt.err (!%p5647_p5)
}
 0x18b   : > { %s5651_s16 = scalar_lea.vmem %s6490_s25, 8192  ;;  %s5907_s7 = smov [#allocation16]  }
 0x18c   : > { %p5652_p6 = scmp.ne.s32.totalorder %s6490_s25, %s5651_s16  ;;  %s5655_s1 = sshll.u32 %s5907_s7, 4  ;;  %s5656_s1 = int_to_ptr.vmem [resolvable:$false] %s5655_s1 }
 0x18d   : > { %s5657_s28 = scalar_lea.vmem %s5656_s1, 16384  ;;  %p5658_p1 = scmp.lt.s32.totalorder %s6490_s25, %s5656_s1 }
 0x18e   : > { %p5653_p10 = pnand %p5652_p6, %p7478_p12  ;;  %p5659_p7 = scmp.lt.s32.totalorder %s5657_s28, %s5651_s16 }
 0x190   : > { %p5654_p9 = pneg %p5653_p10  ;;  %p5660_p3 = por %p5659_p7, %p5658_p1 }
 0x192   : > { %p5661_p2 = pnand %p5660_p3, %p5654_p9 }
 0x194   : > { %5664 = shalt.err (!%p5661_p2)
}
 0x195   : > { %s7489_s17 = smov 16   ;;  %s7490_s12 = smov 256  }
 0x196   : > { %5114 = dma.hbm_to_vmem [thread:$0]  (%p7478_p12), %s6469_s3, 8192, %s6490_s25, %s6231_s27, %s7490_s12, %s7490_s12, %s7489_s17  }
 0x197   : > { %s726_s6 = scalar_lea.vmem [#allocation17], %s6353_s21  ;;  %s7491_s16 = sld [smem:[#allocation57_spill]] }
 0x198   : > { %s734_s24 = sshll.u32 %s726_s6, 4  ;;  %s5665_s1 = scalar_lea.hbm %s6496_s5, 32  ;;  %s735_s24 = int_to_ptr.vmem [resolvable:$true] %s734_s24 }
 0x199   : > { %p5666_p13 = scmp.ne.s32.totalorder %s6496_s5, %s5665_s1  ;;  %s5669_s8 = scalar_lea.hbm %s7488_s4, 96 }
 0x19a   : > { %p5670_p0 = scmp.lt.u32.totalorder %s6496_s5, %s7488_s4  ;;  %p5671_p11 = scmp.lt.u32.totalorder %s5669_s8, %s5665_s1 }
 0x19b   : > { %p5667_p4 = pnand %p5666_p13, %p7478_p12  ;;  %p5673_p6 = scmp.lt.u32.totalorder %s5665_s1, %s6496_s5 }
 0x19c   : > { %p5672_p5 = por %p5671_p11, %p5670_p0 }
 0x19d   : > { %s6528_s7 = scalar_lea.hbm %s7491_s16, %s6316_s18  ;;  %p5668_p8 = pneg %p5667_p4 }
 0x19e   : > { %p5674_p10 = por %p5673_p6, %p5672_p5 }
 0x1a0   : > { %p5675_p9 = pnand %p5674_p10, %p5668_p8 }
 0x1a2   : > { %5678 = shalt.err (!%p5675_p9)
}
 0x1a3   : > { %s5679_s18 = scalar_lea.vmem %s735_s24, 32  ;;  %s5908_s3 = smov [#allocation17]  }
 0x1a4   : > { %p5680_p1 = scmp.ne.s32.totalorder %s735_s24, %s5679_s18  ;;  %s5683_s25 = sshll.u32 %s5908_s3, 4  ;;  %s5684_s25 = int_to_ptr.vmem [resolvable:$false] %s5683_s25 }
 0x1a5   : > { %s5685_s2 = scalar_lea.vmem %s5684_s25, 64  ;;  %p5686_p2 = scmp.lt.s32.totalorder %s735_s24, %s5684_s25 }
 0x1a6   : > { %p5681_p7 = pnand %p5680_p1, %p7478_p12  ;;  %p5687_p13 = scmp.lt.s32.totalorder %s5685_s2, %s5679_s18 }
 0x1a8   : > { %p5682_p3 = pneg %p5681_p7  ;;  %p5688_p4 = por %p5687_p13, %p5686_p2 }
 0x1aa   : > { %p5689_p0 = pnand %p5688_p4, %p5682_p3 }
 0x1ac   : > { %5692 = shalt.err (!%p5689_p0)
}
 0x1ad   : > { %5115 = dma.hbm_to_vmem [thread:$0]  (%p7478_p12), %s6496_s5, 32, %s735_s24, %s6231_s27  }
 0x1ae   : > { %s745_s14 = scalar_lea.vmem [#allocation18], %s6293_s11  ;;  %s7492_s22 = sld [smem:[#allocation58_spill]] }
 0x1af   : > { %s752_s13 = sshll.u32 %s745_s14, 4  ;;  %s5693_s28 = scalar_lea.hbm %s6528_s7, 8192  ;;  %s6549_s13 = int_to_ptr.vmem [resolvable:$true] %s752_s13 }
 0x1b0   : > { %p5694_p8 = scmp.ne.s32.totalorder %s6528_s7, %s5693_s28  ;;  %s5697_s25 = scalar_lea.hbm %s7491_s16, 24576 }
 0x1b1   : > { %p5698_p6 = scmp.lt.u32.totalorder %s6528_s7, %s7491_s16  ;;  %p5699_p10 = scmp.lt.u32.totalorder %s5697_s25, %s5693_s28 }
 0x1b2   : > { %p5695_p11 = pnand %p5694_p8, %p7478_p12  ;;  %p5701_p1 = scmp.lt.u32.totalorder %s5693_s28, %s6528_s7 }
 0x1b3   : > { %p5700_p9 = por %p5699_p10, %p5698_p6 }
 0x1b4   : > { %s7493_s10 = smov %s7492_s22  ;;  %s6555_s1 = scalar_lea.hbm %s7492_s22, %s6356_s20 }
 0x1b5   : > { %p5696_p5 = pneg %p5695_p11  ;;  %p5702_p7 = por %p5701_p1, %p5700_p9 }
 0x1b7   : > { %p5703_p3 = pnand %p5702_p7, %p5696_p5 }
 0x1b9   : > { %5706 = shalt.err (!%p5703_p3)
}
 0x1ba   : > { %s5707_s11 = scalar_lea.vmem %s6549_s13, 8192  ;;  %s5909_s20 = smov [#allocation18]  }
 0x1bb   : > { %p5708_p2 = scmp.ne.s32.totalorder %s6549_s13, %s5707_s11  ;;  %s5711_s24 = sshll.u32 %s5909_s20, 4  ;;  %s5712_s24 = int_to_ptr.vmem [resolvable:$false] %s5711_s24 }
 0x1bc   : > { %s5713_s14 = scalar_lea.vmem %s5712_s24, 16384  ;;  %p5714_p0 = scmp.lt.s32.totalorder %s6549_s13, %s5712_s24 }
 0x1bd   : > { %p5709_p13 = pnand %p5708_p2, %p7478_p12  ;;  %p5715_p8 = scmp.lt.s32.totalorder %s5713_s14, %s5707_s11 }
 0x1bf   : > { %p5710_p4 = pneg %p5709_p13  ;;  %p5716_p11 = por %p5715_p8, %p5714_p0 }
 0x1c1   : > { %p5717_p6 = pnand %p5716_p11, %p5710_p4 }
 0x1c3   : > { %5720 = shalt.err (!%p5717_p6)
}
 0x1c4   : > { %5116 = dma.hbm_to_vmem [thread:$0]  (%p7478_p12), %s6528_s7, 8192, %s6549_s13, %s6231_s27, %s7490_s12, %s7490_s12, %s7489_s17  }
 0x1c5   : > { %s766_s8 = scalar_lea.vmem [#allocation19], %s6353_s21  ;;  %s5721_s22 = scalar_lea.hbm %s6555_s1, 32 }
 0x1c6   : > { %s774_s6 = sshll.u32 %s766_s8, 4  ;;  %p5722_p5 = scmp.ne.s32.totalorder %s6555_s1, %s5721_s22  ;;  %s775_s6 = int_to_ptr.vmem [resolvable:$true] %s774_s6 }
 0x1c7   : > { %s5725_s3 = scalar_lea.hbm %s7493_s10, 96  ;;  %p5726_p1 = scmp.lt.u32.totalorder %s6555_s1, %s7493_s10 }
 0x1c8   : > { %p5723_p10 = pnand %p5722_p5, %p7478_p12  ;;  %p5727_p7 = scmp.lt.u32.totalorder %s5725_s3, %s5721_s22 }
 0x1c9   : > { %p5729_p2 = scmp.lt.u32.totalorder %s5721_s22, %s6555_s1 }
 0x1ca   : > { %p5724_p9 = pneg %p5723_p10  ;;  %p5728_p3 = por %p5727_p7, %p5726_p1 }
 0x1cc   : > { %p5730_p13 = por %p5729_p2, %p5728_p3 }
 0x1ce   : > { %p5731_p4 = pnand %p5730_p13, %p5724_p9 }
 0x1d0   : > { %5734 = shalt.err (!%p5731_p4)
}
 0x1d1   : > { %s5735_s21 = scalar_lea.vmem %s775_s6, 32  ;;  %s5910_s17 = smov [#allocation19]  }
 0x1d2   : > { %p5736_p0 = scmp.ne.s32.totalorder %s775_s6, %s5735_s21  ;;  %s5739_s12 = sshll.u32 %s5910_s17, 4  ;;  %s5740_s12 = int_to_ptr.vmem [resolvable:$false] %s5739_s12 }
 0x1d3   : > { %s5741_s7 = scalar_lea.vmem %s5740_s12, 64  ;;  %p5742_p6 = scmp.lt.s32.totalorder %s775_s6, %s5740_s12 }
 0x1d4   : > { %p5737_p8 = pnand %p5736_p0, %p7478_p12  ;;  %p5743_p5 = scmp.lt.s32.totalorder %s5741_s7, %s5735_s21 }
 0x1d6   : > { %p5738_p11 = pneg %p5737_p8  ;;  %p5744_p10 = por %p5743_p5, %p5742_p6 }
 0x1d8   : > { %p5745_p1 = pnand %p5744_p10, %p5738_p11 }
 0x1da   : > { %5748 = shalt.err (!%p5745_p1)
}
 0x1db   : > { %5117 = dma.hbm_to_vmem [thread:$0]  (%p7478_p12), %s6555_s1, 32, %s775_s6, %s6231_s27  }
 0x1dc PF: > { %s7494_s13 = sld [smem:[#allocation44_spill]] }
 0x1e2   : > { %p7495_p9 = scmp.ne.s32.totalorder %s7494_s13, 0 }
 0x1e3   : > { %s7496_s5 = sld [smem:[#allocation35_spill]] (!%p7495_p9)  ;;  %s7498_s20 = sld [smem:[#allocation38_spill]] (!%p7495_p9) }
 0x1e4   : > { %783 = sbr.rel (%p7495_p9) target bundleno = 4781 (0x12ad), region = 84  ;;  %s7497_s11 = sld [smem:[#allocation32_spill]] (!%p7495_p9) }
 0x1e9   : > { %s785_s24 = sand.u32 (!%p7495_p9), 1, %s7496_s5   ;;  %p7499_p7 = scmp.ne.s32.totalorder (!%p7495_p9), %s7498_s20, 0 }
 0x1ea   : > { %s6605_s14 = sand.u32 (!%p7495_p9), 1, %s7497_s11   ;;  %s786_s22 = scalar_lea.sflag (!%p7495_p9), [#allocation4], %s785_s24 }
 0x1eb   : > { %s4453_s8 = sshll.u32 %s6605_s14, 4 }
 0x1ec   : > { %s6608_s28 = scalar_lea.vmem [#allocation3], %s4453_s8 }
 0x1ed   : > { %5822 = dma.done.wait (%p7499_p7), %s786_s22, 256  }
 0x1ee   : > { %5824 = vsyncadd (%p7499_p7), %s786_s22, 4294967040  ;;  %p7500_p12 = scmp.eq.s32.totalorder %s7496_s5, 0 }
 0x1f0   : > { %5826 = dma.done.wait (%p7500_p12), [#allocation7], 256   ;;  %p7501_p3 = pmov %p7500_p12 }
 0x1f1   : > { %s7502_s9 = sld [smem:[#allocation30_spill]]  ;;  %s7503_s27 = sld [smem:[#allocation41_spill]] }
 0x1f2   : > { %5828 = vsyncadd (%p7501_p3), [#allocation7], 4294967040 }
 0x1f7   : > { %s800_s1 = sand.u32 1, %s7502_s9   ;;  %p7504_p2 = scmp.ne.s32.totalorder %s7503_s27, 0 }
 0x1f8   : > { %s5097_s6 = smul.u32 1536, %s800_s1 }
 0x1fa   : > { %s6619_s18 = scalar_lea.vmem [#allocation8], %s5097_s6 }
 0x1fb   : > { %5830 = dma.done.wait (%p7504_p2), %s786_s22, 49472  }
 0x1fc   : > { %5832 = vsyncadd (%p7504_p2), %s786_s22, 4294917824  ;;  %s5098_s3 = smul.u32 6, %s800_s1  ;;  %s4455_s25 = sshll.u32 %s800_s1, 9 }
 0x1fd   : > { %s6625_s2 = sshll.u32 %s800_s1, 1  ;;  %s6629_s17 = scalar_lea.vmem [#allocation10], %s4455_s25 }
 0x1fe   : > { %s6627_s21 = scalar_lea.vmem [#allocation9], %s5098_s3  ;;  %s829_s12 = scalar_lea.vmem [#allocation11], %s6625_s2 }
 0x1ff   : > { %s838_s7 = scalar_lea.vmem [#allocation12], %s6625_s2  ;;  %s847_s13 = scalar_lea.vmem [#allocation13], %s6625_s2 }
 0x200   : > { %s856_s11 = scalar_lea.vmem [#allocation14], %s6625_s2  ;;  %s865_s20 = scalar_lea.vmem [#allocation15], %s6625_s2 }
 0x201   : > { %s6636_s24 = scalar_lea.vmem [#allocation16], %s4455_s25  ;;  %s883_s8 = scalar_lea.vmem [#allocation17], %s6625_s2 }
 0x202   : > { %s6639_s22 = scalar_lea.vmem [#allocation18], %s4455_s25  ;;  %s901_s9 = scalar_lea.vmem [#allocation19], %s6625_s2 }
 0x203   : > { %p7505_p13 = pmov %p7501_p3 }
 0x204   : > { %p7506_p4 = pmov %p7501_p3 }
 0x205   : > { %5834 = dma.done.wait (%p7505_p13), [#allocation7], 8192  }
 0x206   : > { %5836 = vsyncadd (%p7506_p4), [#allocation7], 4294959104  ;;  %p7507_p0 = pmov %p7501_p3 }
 0x208   : > { %5838 = dma.done.wait (%p7507_p0), [#allocation22], 32   ;;  %p7508_p8 = pmov %p7507_p0 }
 0x209   : > { %s4467_s27 = sshll.u32 %s6605_s14, 1  ;;  %s7509_s6 = sld [smem:[#allocation33_spill]] }
 0x20a   : > { %5840 = vsyncadd (%p7508_p8), [#allocation22], 4294967264  ;;  %s6651_s1 = scalar_lea.vmem [#allocation23], %s4467_s27 }
 0x20f   : > { %p4468_p11 = scmp.ne.s32.totalorder %s7509_s6, 0 }
 0x210   : > { %v1022_v0 = vld [vmem:[%s6608_s28] sm:$0xff] (!%p4468_p11)  ;;  %v1023_v2 = vld [vmem:[%s6608_s28 + $0x8] sm:$0xff] (!%p4468_p11) }
 0x211   : > { %1021 = sbr.rel (%p4468_p11) target bundleno = 536 (0x218), region = 152  ;;  %v1024_v1 = vld [vmem:[#allocation6] sm:$0xff] (!%p4468_p11)  ;;  %v1025_v4 = vld [vmem:[#allocation6 + $0x8] sm:$0xff] (!%p4468_p11) }
 0x212   : > { %v1026_v3 = vadd.f32 (!%p4468_p11), %v1024_v1, %v1022_v0  ;;  %v1027_v5 = vadd.f32 (!%p4468_p11), %v1025_v4, %v1023_v2 }
 0x214   : > { %1028 = vst [vmem:[#allocation2] sm:$0xff] (!%p4468_p11), %v1026_v3  ;;  %1029 = vst [vmem:[#allocation2 + $0x8] sm:$0xff] (!%p4468_p11), %v1027_v5 }
 0x218 PF: > { %v1035_v6 = vld [vmem:[%s6619_s18 + $0x18] sm:$0xff]  ;;  %v1041_v7 = vld [vmem:[%s6619_s18 + $0x48] sm:$0xff]  ;;  %v1034_v8 = vld [vmem:[%s6619_s18 + $0x10] sm:$0xff]  ;;  %vm5912_vm0 = vmmov 0   ;;  %vm1469_vm1 = vcmask 261120   ;;  %s5913_s5 = smov 96  }
 0x219   : > { %v4695_v9 = vpack.c.bf16 %v1041_v7, %v1035_v6  ;;  %v1040_v10 = vld [vmem:[%s6619_s18 + $0x40] sm:$0xff]  ;;  %v1033_v11 = vld [vmem:[%s6619_s18 + $0x8] sm:$0xff]  ;;  %v1039_v12 = vld [vmem:[%s6619_s18 + $0x38] sm:$0xff]  ;;  %vm1546_vm2 = vcmask 64512   ;;  %s5914_s28 = smov 64   ;;  %s7510_s3 = sld [smem:[#allocation33_spill]] }
 0x21a   : > { %v4697_v13 = vpack.c.bf16 %v1040_v10, %v1034_v8  ;;  %v4631_v14 = vpack.c.bf16 %v1039_v12, %v1033_v11  ;;  %v1032_v15 = vld [vmem:[%s6619_s18] sm:$0xff]  ;;  %v1038_v16 = vld [vmem:[%s6619_s18 + $0x30] sm:$0xff]  ;;  %v1047_v17 = vld [vmem:[%s6619_s18 + $0x78] sm:$0xff] }
 0x21b   : > { %4696 = vmatprep.subr.bf16.mxu1 %v4695_v9  ;;  %v4633_v18 = vpack.c.bf16 %v1038_v16, %v1032_v15  ;;  %v1053_v19 = vld [vmem:[%s6619_s18 + $0xa8] sm:$0xff]  ;;  %v1046_v20 = vld [vmem:[%s6619_s18 + $0x70] sm:$0xff]  ;;  %v1052_v21 = vld [vmem:[%s6619_s18 + $0xa0] sm:$0xff] }
 0x21c   : > { %4698 = vmatpush1.bf16.msra.mxu1 %v4697_v13  ;;  %4632 = vmatprep.subr.bf16.mxu0 %v4631_v14  ;;  %v4699_v22 = vpack.c.bf16 %v1053_v19, %v1047_v17  ;;  %v4701_v23 = vpack.c.bf16 %v1052_v21, %v1046_v20  ;;  %v1045_v24 = vld [vmem:[%s6619_s18 + $0x68] sm:$0xff]  ;;  %v1051_v25 = vld [vmem:[%s6619_s18 + $0x98] sm:$0xff]  ;;  %v1044_v26 = vld [vmem:[%s6619_s18 + $0x60] sm:$0xff] }
 0x21d   : > { %4634 = vmatpush1.bf16.msra.mxu0 %v4633_v18  ;;  %v4635_v27 = vpack.c.bf16 %v1051_v25, %v1045_v24  ;;  %v1050_v28 = vld [vmem:[%s6619_s18 + $0x90] sm:$0xff]  ;;  %v1059_v29 = vld [vmem:[%s6619_s18 + $0xd8] sm:$0xff]  ;;  %v1065_v30 = vld [vmem:[%s6619_s18 + $0x108] sm:$0xff] }
 0x21e   : > { %4700 = vmatprep.subr.bf16.mxu1 %v4699_v22  ;;  %v4637_v31 = vpack.c.bf16 %v1050_v28, %v1044_v26  ;;  %v4703_v32 = vpack.c.bf16 %v1065_v30, %v1059_v29  ;;  %v1058_v33 = vld [vmem:[%s6619_s18 + $0xd0] sm:$0xff]  ;;  %v1064_v34 = vld [vmem:[%s6619_s18 + $0x100] sm:$0xff]  ;;  %v1057_v35 = vld [vmem:[%s6619_s18 + $0xc8] sm:$0xff] }
 0x21f   : > { %4636 = vmatprep.subr.bf16.mxu0 %v4635_v27  ;;  %v1063_v36 = vld [vmem:[%s6619_s18 + $0xf8] sm:$0xff]  ;;  %v1056_v37 = vld [vmem:[%s6619_s18 + $0xc0] sm:$0xff]  ;;  %v1062_v38 = vld [vmem:[%s6619_s18 + $0xf0] sm:$0xff]  ;;  %v4705_v39 = vpack.c.bf16 %v1064_v34, %v1058_v33  ;;  %p4501_p6 = scmp.ne.s32.totalorder %s7510_s3, 2 }
 0x220   : > { %4702 = vmatpush1.bf16.msra.mxu1 %v4701_v23  ;;  %v4639_v40 = vpack.c.bf16 %v1063_v36, %v1057_v35  ;;  %v1071_v41 = vld [vmem:[%s6619_s18 + $0x138] sm:$0xff]  ;;  %v1077_v42 = vld [vmem:[%s6619_s18 + $0x168] sm:$0xff]  ;;  %v1070_v43 = vld [vmem:[%s6619_s18 + $0x130] sm:$0xff]  ;;  %v4641_v44 = vpack.c.bf16 %v1062_v38, %v1056_v37 }
 0x221   : > { %4638 = vmatpush1.bf16.msra.mxu0 %v4637_v31  ;;  %4704 = vmatprep.subr.bf16.mxu1 %v4703_v32  ;;  %v4707_v45 = vpack.c.bf16 %v1077_v42, %v1071_v41  ;;  %v1076_v46 = vld [vmem:[%s6619_s18 + $0x160] sm:$0xff]  ;;  %v1069_v47 = vld [vmem:[%s6619_s18 + $0x128] sm:$0xff]  ;;  %v1075_v48 = vld [vmem:[%s6619_s18 + $0x158] sm:$0xff] }
 0x222   : > { %4640 = vmatprep.subr.bf16.mxu0 %v4639_v40  ;;  %v4643_v49 = vpack.c.bf16 %v1075_v48, %v1069_v47  ;;  %v1068_v50 = vld [vmem:[%s6619_s18 + $0x120] sm:$0xff]  ;;  %v1074_v51 = vld [vmem:[%s6619_s18 + $0x150] sm:$0xff]  ;;  %v1083_v52 = vld [vmem:[%s6619_s18 + $0x198] sm:$0xff]  ;;  %v4709_v54 = vpack.c.bf16 %v1076_v46, %v1070_v43 }
 0x223   : > { %v1089_v53 = vld [vmem:[%s6619_s18 + $0x1c8] sm:$0xff]  ;;  %v1087_v56 = vld [vmem:[%s6619_s18 + $0x1b8] sm:$0xff]  ;;  %v4645_v57 = vpack.c.bf16 %v1074_v51, %v1068_v50  ;;  %v1082_v59 = vld [vmem:[%s6619_s18 + $0x190] sm:$0xff] }
 0x224   : > { %4706 = vmatpush1.bf16.msra.mxu1 %v4705_v39  ;;  %v1081_v55 = vld [vmem:[%s6619_s18 + $0x188] sm:$0xff]  ;;  %v4711_v58 = vpack.c.bf16 %v1089_v53, %v1083_v52  ;;  %v1088_v60 = vld [vmem:[%s6619_s18 + $0x1c0] sm:$0xff]  ;;  %v1086_v63 = vld [vmem:[%s6619_s18 + $0x1b0] sm:$0xff] }
 0x225   : > { %4642 = vmatpush1.bf16.msra.mxu0 %v4641_v44  ;;  %4708 = vmatprep.subr.bf16.mxu1 %v4707_v45  ;;  %v1080_v61 = vld [vmem:[%s6619_s18 + $0x180] sm:$0xff]  ;;  %v4647_v62 = vpack.c.bf16 %v1087_v56, %v1081_v55  ;;  %v1095_v0 = vld [vmem:[%s6619_s18 + $0x1f8] sm:$0xff]  ;;  %v1101_v1 = vld [vmem:[%s6619_s18 + $0x228] sm:$0xff]  ;;  %v4713_v4 = vpack.c.bf16 %v1088_v60, %v1082_v59 }
 0x226   : > { %4644 = vmatprep.subr.bf16.mxu0 %v4643_v49  ;;  %v1093_v2 = vld [vmem:[%s6619_s18 + $0x1e8] sm:$0xff]  ;;  %v1099_v3 = vld [vmem:[%s6619_s18 + $0x218] sm:$0xff]  ;;  %v4649_v5 = vpack.c.bf16 %v1086_v63, %v1080_v61  ;;  %v4715_v6 = vpack.c.bf16 %v1101_v1, %v1095_v0  ;;  %v1094_v7 = vld [vmem:[%s6619_s18 + $0x1f0] sm:$0xff] }
 0x227   : > { %v1100_v8 = vld [vmem:[%s6619_s18 + $0x220] sm:$0xff]  ;;  %v4651_v10 = vpack.c.bf16 %v1099_v3, %v1093_v2  ;;  %v1098_v11 = vld [vmem:[%s6619_s18 + $0x210] sm:$0xff]  ;;  %v1107_v12 = vld [vmem:[%s6619_s18 + $0x258] sm:$0xff] }
 0x228   : > { %4710 = vmatpush1.bf16.msra.mxu1 %v4709_v54  ;;  %v1092_v9 = vld [vmem:[%s6619_s18 + $0x1e0] sm:$0xff]  ;;  %v1113_v13 = vld [vmem:[%s6619_s18 + $0x288] sm:$0xff]  ;;  %v1111_v15 = vld [vmem:[%s6619_s18 + $0x278] sm:$0xff]  ;;  %v4717_v16 = vpack.c.bf16 %v1100_v8, %v1094_v7 }
 0x229   : > { %4646 = vmatpush1.bf16.msra.mxu0 %v4645_v57  ;;  %4712 = vmatprep.subr.bf16.mxu1 %v4711_v58  ;;  %v1105_v14 = vld [vmem:[%s6619_s18 + $0x248] sm:$0xff]  ;;  %v4653_v17 = vpack.c.bf16 %v1098_v11, %v1092_v9  ;;  %v4719_v18 = vpack.c.bf16 %v1113_v13, %v1107_v12  ;;  %v1106_v19 = vld [vmem:[%s6619_s18 + $0x250] sm:$0xff]  ;;  %v1112_v20 = vld [vmem:[%s6619_s18 + $0x280] sm:$0xff] }
 0x22a   : > { %4648 = vmatprep.subr.bf16.mxu0 %v4647_v62  ;;  %v1104_v21 = vld [vmem:[%s6619_s18 + $0x240] sm:$0xff]  ;;  %v4655_v22 = vpack.c.bf16 %v1111_v15, %v1105_v14  ;;  %v1110_v23 = vld [vmem:[%s6619_s18 + $0x270] sm:$0xff]  ;;  %v1119_v24 = vld [vmem:[%s6619_s18 + $0x2b8] sm:$0xff]  ;;  %v4721_v28 = vpack.c.bf16 %v1112_v20, %v1106_v19 }
 0x22b   : > { %v1125_v25 = vld [vmem:[%s6619_s18 + $0x2e8] sm:$0xff]  ;;  %v1123_v27 = vld [vmem:[%s6619_s18 + $0x2d8] sm:$0xff]  ;;  %v4657_v29 = vpack.c.bf16 %v1110_v23, %v1104_v21  ;;  %v1118_v31 = vld [vmem:[%s6619_s18 + $0x2b0] sm:$0xff] }
 0x22c   : > { %4714 = vmatpush1.bf16.msra.mxu1 %v4713_v4  ;;  %v1117_v26 = vld [vmem:[%s6619_s18 + $0x2a8] sm:$0xff]  ;;  %v4723_v30 = vpack.c.bf16 %v1125_v25, %v1119_v24  ;;  %v1124_v32 = vld [vmem:[%s6619_s18 + $0x2e0] sm:$0xff]  ;;  %v1122_v35 = vld [vmem:[%s6619_s18 + $0x2d0] sm:$0xff] }
 0x22d   : > { %4650 = vmatpush1.bf16.msra.mxu0 %v4649_v5  ;;  %4716 = vmatprep.subr.bf16.mxu1 %v4715_v6  ;;  %v1116_v33 = vld [vmem:[%s6619_s18 + $0x2a0] sm:$0xff]  ;;  %v4659_v34 = vpack.c.bf16 %v1123_v27, %v1117_v26  ;;  %v1131_v36 = vld [vmem:[%s6619_s18 + $0x318] sm:$0xff]  ;;  %v1137_v37 = vld [vmem:[%s6619_s18 + $0x348] sm:$0xff]  ;;  %v4725_v40 = vpack.c.bf16 %v1124_v32, %v1118_v31 }
 0x22e   : > { %4652 = vmatprep.subr.bf16.mxu0 %v4651_v10  ;;  %v1129_v38 = vld [vmem:[%s6619_s18 + $0x308] sm:$0xff]  ;;  %v1135_v39 = vld [vmem:[%s6619_s18 + $0x338] sm:$0xff]  ;;  %v4661_v41 = vpack.c.bf16 %v1122_v35, %v1116_v33  ;;  %v4727_v42 = vpack.c.bf16 %v1137_v37, %v1131_v36  ;;  %v1130_v43 = vld [vmem:[%s6619_s18 + $0x310] sm:$0xff] }
 0x22f   : > { %v1136_v44 = vld [vmem:[%s6619_s18 + $0x340] sm:$0xff]  ;;  %v4663_v46 = vpack.c.bf16 %v1135_v39, %v1129_v38  ;;  %v1134_v47 = vld [vmem:[%s6619_s18 + $0x330] sm:$0xff]  ;;  %v1143_v48 = vld [vmem:[%s6619_s18 + $0x378] sm:$0xff] }
 0x230   : > { %4718 = vmatpush1.bf16.msra.mxu1 %v4717_v16  ;;  %v1128_v45 = vld [vmem:[%s6619_s18 + $0x300] sm:$0xff]  ;;  %v1149_v49 = vld [vmem:[%s6619_s18 + $0x3a8] sm:$0xff]  ;;  %v1147_v51 = vld [vmem:[%s6619_s18 + $0x398] sm:$0xff]  ;;  %v4729_v52 = vpack.c.bf16 %v1136_v44, %v1130_v43 }
 0x231   : > { %4654 = vmatpush1.bf16.msra.mxu0 %v4653_v17  ;;  %4720 = vmatprep.subr.bf16.mxu1 %v4719_v18  ;;  %v1141_v50 = vld [vmem:[%s6619_s18 + $0x368] sm:$0xff]  ;;  %v4665_v53 = vpack.c.bf16 %v1134_v47, %v1128_v45  ;;  %v4731_v54 = vpack.c.bf16 %v1149_v49, %v1143_v48  ;;  %v1142_v55 = vld [vmem:[%s6619_s18 + $0x370] sm:$0xff]  ;;  %v1148_v56 = vld [vmem:[%s6619_s18 + $0x3a0] sm:$0xff] }
 0x232   : > { %4656 = vmatprep.subr.bf16.mxu0 %v4655_v22  ;;  %v1140_v57 = vld [vmem:[%s6619_s18 + $0x360] sm:$0xff]  ;;  %v4667_v58 = vpack.c.bf16 %v1147_v51, %v1141_v50  ;;  %v1146_v59 = vld [vmem:[%s6619_s18 + $0x390] sm:$0xff]  ;;  %v1155_v60 = vld [vmem:[%s6619_s18 + $0x3d8] sm:$0xff]  ;;  %v4733_v0 = vpack.c.bf16 %v1148_v56, %v1142_v55 }
 0x233   : > { %v1161_v61 = vld [vmem:[%s6619_s18 + $0x408] sm:$0xff]  ;;  %v1159_v63 = vld [vmem:[%s6619_s18 + $0x3f8] sm:$0xff]  ;;  %v4669_v1 = vpack.c.bf16 %v1146_v59, %v1140_v57  ;;  %v1154_v3 = vld [vmem:[%s6619_s18 + $0x3d0] sm:$0xff] }
 0x234   : > { %4722 = vmatpush1.bf16.msra.mxu1 %v4721_v28  ;;  %v1153_v62 = vld [vmem:[%s6619_s18 + $0x3c8] sm:$0xff]  ;;  %v4735_v2 = vpack.c.bf16 %v1161_v61, %v1155_v60  ;;  %v1160_v4 = vld [vmem:[%s6619_s18 + $0x400] sm:$0xff]  ;;  %v1158_v7 = vld [vmem:[%s6619_s18 + $0x3f0] sm:$0xff] }
 0x235   : > { %4658 = vmatpush1.bf16.msra.mxu0 %v4657_v29  ;;  %4724 = vmatprep.subr.bf16.mxu1 %v4723_v30  ;;  %v1152_v5 = vld [vmem:[%s6619_s18 + $0x3c0] sm:$0xff]  ;;  %v4671_v6 = vpack.c.bf16 %v1159_v63, %v1153_v62  ;;  %v1167_v8 = vld [vmem:[%s6619_s18 + $0x438] sm:$0xff]  ;;  %v1173_v9 = vld [vmem:[%s6619_s18 + $0x468] sm:$0xff]  ;;  %v4737_v12 = vpack.c.bf16 %v1160_v4, %v1154_v3 }
 0x236   : > { %4660 = vmatprep.subr.bf16.mxu0 %v4659_v34  ;;  %v1165_v10 = vld [vmem:[%s6619_s18 + $0x428] sm:$0xff]  ;;  %v1171_v11 = vld [vmem:[%s6619_s18 + $0x458] sm:$0xff]  ;;  %v1166_v13 = vld [vmem:[%s6619_s18 + $0x430] sm:$0xff]  ;;  %v4673_v14 = vpack.c.bf16 %v1158_v7, %v1152_v5  ;;  %v4739_v15 = vpack.c.bf16 %v1173_v9, %v1167_v8 }
 0x237   : > { %v1172_v16 = vld [vmem:[%s6619_s18 + $0x460] sm:$0xff]  ;;  %v1170_v18 = vld [vmem:[%s6619_s18 + $0x450] sm:$0xff]  ;;  %v4675_v19 = vpack.c.bf16 %v1171_v11, %v1165_v10  ;;  %v1179_v20 = vld [vmem:[%s6619_s18 + $0x498] sm:$0xff] }
 0x238   : > { %4726 = vmatpush1.bf16.msra.mxu1 %v4725_v40  ;;  %v1164_v17 = vld [vmem:[%s6619_s18 + $0x420] sm:$0xff]  ;;  %v1185_v21 = vld [vmem:[%s6619_s18 + $0x4c8] sm:$0xff]  ;;  %v1183_v24 = vld [vmem:[%s6619_s18 + $0x4b8] sm:$0xff]  ;;  %v4741_v25 = vpack.c.bf16 %v1172_v16, %v1166_v13 }
 0x239   : > { %4662 = vmatpush1.bf16.msra.mxu0 %v4661_v41  ;;  %4728 = vmatprep.subr.bf16.mxu1 %v4727_v42  ;;  %v6754_v22 = vld [vmem:[#allocation2 + $0x8] sm:$0xff]  ;;  %v4677_v26 = vpack.c.bf16 %v1170_v18, %v1164_v17  ;;  %v4743_v27 = vpack.c.bf16 %v1185_v21, %v1179_v20  ;;  %v1178_v28 = vld [vmem:[%s6619_s18 + $0x490] sm:$0xff]  ;;  %v1184_v29 = vld [vmem:[%s6619_s18 + $0x4c0] sm:$0xff] }
 0x23a   : > { %4664 = vmatprep.subr.bf16.mxu0 %v4663_v46  ;;  %v1177_v23 = vld [vmem:[%s6619_s18 + $0x488] sm:$0xff]  ;;  %1391 = vmatprep.mubr.f32.mxu1 %v6754_v22  ;;  %v1176_v30 = vld [vmem:[%s6619_s18 + $0x480] sm:$0xff]  ;;  %v1182_v32 = vld [vmem:[%s6619_s18 + $0x4b0] sm:$0xff]  ;;  %v4745_v37 = vpack.c.bf16 %v1184_v29, %v1178_v28 }
 0x23b   : > { %1320 = vmatprep.mubr.f32.mxu0 %v6754_v22  ;;  %v4679_v31 = vpack.c.bf16 %v1183_v24, %v1177_v23  ;;  %v1191_v33 = vld [vmem:[%s6619_s18 + $0x4f8] sm:$0xff]  ;;  %v1197_v34 = vld [vmem:[%s6619_s18 + $0x528] sm:$0xff]  ;;  %v4681_v38 = vpack.c.bf16 %v1182_v32, %v1176_v30  ;;  %v1190_v40 = vld [vmem:[%s6619_s18 + $0x4f0] sm:$0xff] }
 0x23c   : > { %4730 = vmatpush1.bf16.msra.mxu1 %v4729_v52  ;;  %v1189_v35 = vld [vmem:[%s6619_s18 + $0x4e8] sm:$0xff]  ;;  %v1195_v36 = vld [vmem:[%s6619_s18 + $0x518] sm:$0xff]  ;;  %v4747_v39 = vpack.c.bf16 %v1197_v34, %v1191_v33  ;;  %v1196_v41 = vld [vmem:[%s6619_s18 + $0x520] sm:$0xff] }
 0x23d   : > { %4666 = vmatpush1.bf16.msra.mxu0 %v4665_v53  ;;  %4732 = vmatprep.subr.bf16.mxu1 %v4731_v54  ;;  %v1188_v42 = vld [vmem:[%s6619_s18 + $0x4e0] sm:$0xff]  ;;  %v4683_v43 = vpack.c.bf16 %v1195_v36, %v1189_v35  ;;  %v1194_v44 = vld [vmem:[%s6619_s18 + $0x510] sm:$0xff]  ;;  %v1203_v45 = vld [vmem:[%s6619_s18 + $0x558] sm:$0xff]  ;;  %v4749_v49 = vpack.c.bf16 %v1196_v41, %v1190_v40 }
 0x23e   : > { %4668 = vmatprep.subr.bf16.mxu0 %v4667_v58  ;;  %v1209_v46 = vld [vmem:[%s6619_s18 + $0x588] sm:$0xff]  ;;  %v1207_v48 = vld [vmem:[%s6619_s18 + $0x578] sm:$0xff]  ;;  %v4685_v50 = vpack.c.bf16 %v1194_v44, %v1188_v42  ;;  %v1202_v52 = vld [vmem:[%s6619_s18 + $0x550] sm:$0xff] }
 0x23f   : > { %v1201_v47 = vld [vmem:[%s6619_s18 + $0x548] sm:$0xff]  ;;  %v4751_v51 = vpack.c.bf16 %v1209_v46, %v1203_v45  ;;  %v1208_v53 = vld [vmem:[%s6619_s18 + $0x580] sm:$0xff]  ;;  %v1206_v56 = vld [vmem:[%s6619_s18 + $0x570] sm:$0xff] }
 0x240   : > { %4734 = vmatpush1.bf16.msra.mxu1 %v4733_v0  ;;  %v1200_v54 = vld [vmem:[%s6619_s18 + $0x540] sm:$0xff]  ;;  %v4687_v55 = vpack.c.bf16 %v1207_v48, %v1201_v47  ;;  %v1215_v57 = vld [vmem:[%s6619_s18 + $0x5b8] sm:$0xff]  ;;  %v1221_v58 = vld [vmem:[%s6619_s18 + $0x5e8] sm:$0xff]  ;;  %v4753_v61 = vpack.c.bf16 %v1208_v53, %v1202_v52 }
 0x241   : > { %4670 = vmatpush1.bf16.msra.mxu0 %v4669_v1  ;;  %4736 = vmatprep.subr.bf16.mxu1 %v4735_v2  ;;  %v1213_v59 = vld [vmem:[%s6619_s18 + $0x5a8] sm:$0xff]  ;;  %v1219_v60 = vld [vmem:[%s6619_s18 + $0x5d8] sm:$0xff]  ;;  %v4689_v62 = vpack.c.bf16 %v1206_v56, %v1200_v54  ;;  %v4755_v63 = vpack.c.bf16 %v1221_v58, %v1215_v57  ;;  %v1214_v0 = vld [vmem:[%s6619_s18 + $0x5b0] sm:$0xff] }
 0x242   : > { %4672 = vmatprep.subr.bf16.mxu0 %v4671_v6  ;;  %v1220_v1 = vld [vmem:[%s6619_s18 + $0x5e0] sm:$0xff]  ;;  %v4691_v2 = vpack.c.bf16 %v1219_v60, %v1213_v59  ;;  %v1218_v4 = vld [vmem:[%s6619_s18 + $0x5d0] sm:$0xff]  ;;  %v1037_v5 = vld [vmem:[%s6619_s18 + $0x28] sm:$0xff] }
 0x243   : > { %v1212_v3 = vld [vmem:[%s6619_s18 + $0x5a0] sm:$0xff]  ;;  %v1043_v6 = vld [vmem:[%s6619_s18 + $0x58] sm:$0xff]  ;;  %v4757_v7 = vpack.c.bf16 %v1220_v1, %v1214_v0  ;;  %v1042_v11 = vld [vmem:[%s6619_s18 + $0x50] sm:$0xff] }
 0x244   : > { %4738 = vmatpush1.bf16.msra.mxu1 %v4737_v12  ;;  %v4693_v8 = vpack.c.bf16 %v1218_v4, %v1212_v3  ;;  %v4759_v9 = vpack.c.bf16 %v1043_v6, %v1037_v5  ;;  %v1036_v10 = vld [vmem:[%s6619_s18 + $0x20] sm:$0xff]  ;;  %v1049_v12 = vld [vmem:[%s6619_s18 + $0x88] sm:$0xff]  ;;  %v1055_v13 = vld [vmem:[%s6619_s18 + $0xb8] sm:$0xff] }
 0x245   : > { %4674 = vmatpush1.bf16.msra.mxu0 %v4673_v14  ;;  %4740 = vmatprep.subr.bf16.mxu1 %v4739_v15  ;;  %v6794_v14 = vld [vmem:[#allocation2] sm:$0xff]  ;;  %v4761_v15 = vpack.c.bf16 %v1042_v11, %v1036_v10  ;;  %v4763_v16 = vpack.c.bf16 %v1055_v13, %v1049_v12  ;;  %v1054_v18 = vld [vmem:[%s6619_s18 + $0xb0] sm:$0xff]  ;;  %v1067_v20 = vld [vmem:[%s6619_s18 + $0x118] sm:$0xff] }
 0x246   : > { %4676 = vmatprep.subr.bf16.mxu0 %v4675_v19  ;;  %v1048_v17 = vld [vmem:[%s6619_s18 + $0x80] sm:$0xff]  ;;  %v1061_v19 = vld [vmem:[%s6619_s18 + $0xe8] sm:$0xff]  ;;  %v1090_v36 = vld [vmem:[%s6619_s18 + $0x1d0] sm:$0xff] }
 0x247   : > { %v4765_v21 = vpack.c.bf16 %v1054_v18, %v1048_v17  ;;  %v4767_v23 = vpack.c.bf16 %v1067_v20, %v1061_v19  ;;  %v1060_v24 = vld [vmem:[%s6619_s18 + $0xe0] sm:$0xff]  ;;  %v1085_v32 = vld [vmem:[%s6619_s18 + $0x1a8] sm:$0xff]  ;;  %v1102_v42 = vld [vmem:[%s6619_s18 + $0x230] sm:$0xff] }
 0x248   : > { %4742 = vmatpush1.bf16.msra.mxu1 %v4741_v25  ;;  %v1066_v25 = vld [vmem:[%s6619_s18 + $0x110] sm:$0xff]  ;;  %v1072_v30 = vld [vmem:[%s6619_s18 + $0x140] sm:$0xff]  ;;  %v1115_v44 = vld [vmem:[%s6619_s18 + $0x298] sm:$0xff] }
 0x249   : > { %4678 = vmatpush1.bf16.msra.mxu0 %v4677_v26  ;;  %4744 = vmatprep.subr.bf16.mxu1 %v4743_v27  ;;  %v1073_v26 = vld [vmem:[%s6619_s18 + $0x148] sm:$0xff]  ;;  %v1079_v27 = vld [vmem:[%s6619_s18 + $0x178] sm:$0xff]  ;;  %v4769_v28 = vpack.c.bf16 %v1066_v25, %v1060_v24  ;;  %v1084_v35 = vld [vmem:[%s6619_s18 + $0x1a0] sm:$0xff] }
 0x24a   : > { %4680 = vmatprep.subr.bf16.mxu0 %v4679_v31  ;;  %v4771_v29 = vpack.c.bf16 %v1079_v27, %v1073_v26  ;;  %v1078_v31 = vld [vmem:[%s6619_s18 + $0x170] sm:$0xff]  ;;  %v1096_v41 = vld [vmem:[%s6619_s18 + $0x200] sm:$0xff]  ;;  %v1139_v56 = vld [vmem:[%s6619_s18 + $0x358] sm:$0xff] }
 0x24b   : > { %v4773_v33 = vpack.c.bf16 %v1078_v31, %v1072_v30  ;;  %v4781_v45 = vpack.c.bf16 %v1102_v42, %v1096_v41  ;;  %v1108_v47 = vld [vmem:[%s6619_s18 + $0x260] sm:$0xff]  ;;  %v1114_v48 = vld [vmem:[%s6619_s18 + $0x290] sm:$0xff]  ;;  %v1157_v3 = vld [vmem:[%s6619_s18 + $0x3e8] sm:$0xff]  ;;  %v5911_v41 = vmov 0.0   ;;  %v1226_v42 = vlaneseq }
 0x24c   : > { %4746 = vmatpush1.bf16.msra.mxu1 %v4745_v37  ;;  %v1097_v37 = vld [vmem:[%s6619_s18 + $0x208] sm:$0xff]  ;;  %v1120_v53 = vld [vmem:[%s6619_s18 + $0x2c0] sm:$0xff]  ;;  %v1126_v54 = vld [vmem:[%s6619_s18 + $0x2f0] sm:$0xff] }
 0x24d   : > { %4682 = vmatpush1.bf16.msra.mxu0 %v4681_v38  ;;  %4748 = vmatprep.subr.bf16.mxu1 %v4747_v39  ;;  %v1103_v38 = vld [vmem:[%s6619_s18 + $0x238] sm:$0xff]  ;;  %v4777_v39 = vpack.c.bf16 %v1090_v36, %v1084_v35  ;;  %v4789_v57 = vpack.c.bf16 %v1126_v54, %v1120_v53  ;;  %v1132_v59 = vld [vmem:[%s6619_s18 + $0x320] sm:$0xff]  ;;  %v1138_v60 = vld [vmem:[%s6619_s18 + $0x350] sm:$0xff]  ;;  %vm4042_vm3 = vcmp.lt.s32.totalorder (!%p4501_p6), %v1226_v42, 256 }
 0x24e   : > { %4684 = vmatprep.subr.bf16.mxu0 %v4683_v43  ;;  %v4779_v40 = vpack.c.bf16 %v1103_v38, %v1097_v37  ;;  %v1109_v43 = vld [vmem:[%s6619_s18 + $0x268] sm:$0xff]  ;;  %v1144_v1 = vld [vmem:[%s6619_s18 + $0x380] sm:$0xff]  ;;  %v1163_v4 = vld [vmem:[%s6619_s18 + $0x418] sm:$0xff] }
 0x24f   : > { %v4783_v46 = vpack.c.bf16 %v1115_v44, %v1109_v43  ;;  %v4799_v6 = vpack.c.bf16 %v1163_v4, %v1157_v3  ;;  %v1175_v10 = vld [vmem:[%s6619_s18 + $0x478] sm:$0xff]  ;;  %v1168_v13 = vld [vmem:[%s6619_s18 + $0x440] sm:$0xff]  ;;  %v6865_v43 = vshrl.u32 %v1226_v42, 7 }
 0x250   : > { %4750 = vmatpush1.bf16.msra.mxu1 %v4749_v49  ;;  %v1121_v49 = vld [vmem:[%s6619_s18 + $0x2c8] sm:$0xff]  ;;  %v1187_v17 = vld [vmem:[%s6619_s18 + $0x4d8] sm:$0xff]  ;;  %v1180_v20 = vld [vmem:[%s6619_s18 + $0x4a0] sm:$0xff] }
 0x251   : > { %4686 = vmatpush1.bf16.msra.mxu0 %v4685_v50  ;;  %4752 = vmatprep.subr.bf16.mxu1 %v4751_v51  ;;  %v1127_v50 = vld [vmem:[%s6619_s18 + $0x2f8] sm:$0xff]  ;;  %v4785_v51 = vpack.c.bf16 %v1114_v48, %v1108_v47  ;;  %v1192_v27 = vld [vmem:[%s6619_s18 + $0x500] sm:$0xff]  ;;  %v1236_v44 = vsub.s32 2, %v6865_v43  ;;  %v1240_v47 = vsub.s32 3, %v6865_v43 }
 0x252   : > { %4688 = vmatprep.subr.bf16.mxu0 %v4687_v55  ;;  %v4787_v52 = vpack.c.bf16 %v1127_v50, %v1121_v49  ;;  %v1133_v55 = vld [vmem:[%s6619_s18 + $0x328] sm:$0xff]  ;;  %v1199_v24 = vld [vmem:[%s6619_s18 + $0x538] sm:$0xff]  ;;  %v1216_v38 = vld [vmem:[%s6619_s18 + $0x5c0] sm:$0xff]  ;;  %v6879_v50 = vsub.s32 1, %v6865_v43 }
 0x253   : > { %v4791_v58 = vpack.c.bf16 %v1139_v56, %v1133_v55  ;;  %v1211_v30 = vld [vmem:[%s6619_s18 + $0x598] sm:$0xff] }
 0x254   : > { %4754 = vmatpush1.bf16.msra.mxu1 %v4753_v61  ;;  %v1145_v61 = vld [vmem:[%s6619_s18 + $0x388] sm:$0xff]  ;;  %v1223_v35 = vld [vmem:[%s6619_s18 + $0x5f8] sm:$0xff] }
 0x255   : > { %4690 = vmatpush1.bf16.msra.mxu0 %v4689_v62  ;;  %4756 = vmatprep.subr.bf16.mxu1 %v4755_v63  ;;  %v1151_v62 = vld [vmem:[%s6619_s18 + $0x3b8] sm:$0xff]  ;;  %v4793_v63 = vpack.c.bf16 %v1138_v60, %v1132_v59  ;;  %v1244_v60 = vsub.s32 4, %v6865_v43 }
 0x256   : > { %4692 = vmatprep.subr.bf16.mxu0 %v4691_v2  ;;  %v4795_v0 = vpack.c.bf16 %v1151_v62, %v1145_v61  ;;  %v1150_v2 = vld [vmem:[%s6619_s18 + $0x3b0] sm:$0xff] }
 0x257   : > { %v4797_v5 = vpack.c.bf16 %v1150_v2, %v1144_v1 }
 0x258   : > { %4758 = vmatpush1.bf16.msra.mxu1 %v4757_v7  ;;  %v1156_v7 = vld [vmem:[%s6619_s18 + $0x3e0] sm:$0xff] }
 0x259   : > { %4694 = vmatpush1.bf16.msra.mxu0 %v4693_v8  ;;  %v1162_v8 = vld [vmem:[%s6619_s18 + $0x410] sm:$0xff]  ;;  %4556 = vmatprep.subr.mxu1 %v5911_v41 }
 0x25a   : > { %4760 = vmatprep.subr.bf16.mxu0 %v4759_v9  ;;  %v1169_v9 = vld [vmem:[%s6619_s18 + $0x448] sm:$0xff]  ;;  %v4801_v11 = vpack.c.bf16 %v1162_v8, %v1156_v7 }
 0x25b   : > { %1392 = vmatmul.mubr.f32.vlgmr.msra.gmra.mrb[0].mxu1 %v6794_v14  ;;  %v4803_v12 = vpack.c.bf16 %v1175_v10, %v1169_v9 }
 0x25c   : > { %1321 = vmatmul.mubr.f32.vlgmr.msra.gmra.mrb[0].mxu0 %v6794_v14  ;;  %4558 = vmatprep.mubr.msk.f32.mxu1 %vm5912_vm0, %v5911_v41 }
 0x25d   : > { %4762 = vmatpush1.bf16.msra.mxu0 %v4761_v15  ;;  %1462 = vmatprep.mubr.f32.mxu0 %v6754_v22  ;;  %v1091_v22 = vld [vmem:[%s6619_s18 + $0x1d8] sm:$0xff]  ;;  %v1174_v15 = vld [vmem:[%s6619_s18 + $0x470] sm:$0xff] }
 0x25e   : > { %4764 = vmatprep.subr.bf16.mxu0 %v4763_v16  ;;  %v4775_v34 = vpack.c.bf16 %v1091_v22, %v1085_v32  ;;  %v1181_v16 = vld [vmem:[%s6619_s18 + $0x4a8] sm:$0xff]  ;;  %v4805_v18 = vpack.c.bf16 %v1174_v15, %v1168_v13  ;;  %v1204_v22 = vld [vmem:[%s6619_s18 + $0x560] sm:$0xff] }
 0x25f   : > { %v4807_v19 = vpack.c.bf16 %v1187_v17, %v1181_v16 }
 0x261   : > { %4766 = vmatpush1.bf16.msra.mxu0 %v4765_v21  ;;  %v1186_v21 = vld [vmem:[%s6619_s18 + $0x4d0] sm:$0xff] }
 0x262   : > { %4768 = vmatprep.subr.bf16.mxu0 %v4767_v23  ;;  %v1193_v23 = vld [vmem:[%s6619_s18 + $0x508] sm:$0xff]  ;;  %v4809_v25 = vpack.c.bf16 %v1186_v21, %v1180_v20 }
 0x263   : > { %v4811_v26 = vpack.c.bf16 %v1199_v24, %v1193_v23 }
 0x265   : > { %4770 = vmatpush1.bf16.msra.mxu0 %v4769_v28  ;;  %v1198_v28 = vld [vmem:[%s6619_s18 + $0x530] sm:$0xff] }
 0x266   : > { %4772 = vmatprep.subr.bf16.mxu0 %v4771_v29  ;;  %v1205_v29 = vld [vmem:[%s6619_s18 + $0x568] sm:$0xff]  ;;  %v4813_v31 = vpack.c.bf16 %v1198_v28, %v1192_v27 }
 0x267   : > { %v4815_v32 = vpack.c.bf16 %v1211_v30, %v1205_v29 }
 0x269   : > { %4774 = vmatpush1.bf16.msra.mxu0 %v4773_v33  ;;  %v1210_v33 = vld [vmem:[%s6619_s18 + $0x590] sm:$0xff] }
 0x26a   : > { %4776 = vmatprep.subr.bf16.mxu0 %v4775_v34  ;;  %v1217_v34 = vld [vmem:[%s6619_s18 + $0x5c8] sm:$0xff]  ;;  %v4817_v36 = vpack.c.bf16 %v1210_v33, %v1204_v22 }
 0x26b   : > { %v4819_v37 = vpack.c.bf16 %v1223_v35, %v1217_v34  ;;  %v1808_v22 = vld [vmem:[%s6629_s17 + $0x58] sm:$0xff]  ;;  %v1805_v33 = vld [vmem:[%s6629_s17 + $0x40] sm:$0xff]  ;;  %v1807_v35 = vld [vmem:[%s6629_s17 + $0x50] sm:$0xff] }
 0x26d   : > { %4778 = vmatpush1.bf16.msra.mxu0 %v4777_v39  ;;  %v1222_v39 = vld [vmem:[%s6619_s18 + $0x5f0] sm:$0xff]  ;;  %s5915_s18 = smov 32  }
 0x26e   : > { %4780 = vmatprep.subr.bf16.mxu0 %v4779_v40  ;;  %v4821_v40 = vpack.c.bf16 %v1222_v39, %v1216_v38  ;;  %v4825_v38 = vpack.c.bf16 %v1807_v35, %v1805_v33  ;;  %v2133_v35 = vld [vmem:[%s6629_s17 + $0xb8] sm:$0xff] }
 0x271   : > { %4782 = vmatpush1.bf16.msra.mxu0 %v4781_v45  ;;  %v6869_v45 = vld [vmem:[%s6627_s21] sm:$0x3f] }
 0x272   : > { %4784 = vmatprep.subr.bf16.mxu0 %v4783_v46  ;;  %v1237_v46 = vrot.slane %v6869_v45, %v1236_v44  ;;  %v1245_v61 = vrot.slane %v6869_v45, %v1244_v60  ;;  %v1811_v44 = vld [vmem:[%s6629_s17 + $0x70] sm:$0xff] }
 0x275   : > { %4786 = vmatpush1.bf16.msra.mxu0 %v4785_v51 }
 0x276   : > { %4788 = vmatprep.subr.bf16.mxu0 %v4787_v52  ;;  %v1241_v52 = vrot.slane %v6869_v45, %v1240_v47  ;;  %v1632_v47 = vld [vmem:[%s6629_s17 + $0x8] sm:$0xff] }
 0x279   : > { %4790 = vmatpush1.bf16.msra.mxu0 %v4789_v57  ;;  %v1233_v57 = vrot.slane %v6869_v45, %v6879_v50 }
 0x27a   : > { %4792 = vmatprep.subr.bf16.mxu0 %v4791_v58 }
 0x27d   : > { %4794 = vmatpush1.bf16.msra.mxu0 %v4793_v63 }
 0x27e   : > { %4796 = vmatprep.subr.bf16.mxu0 %v4795_v0 }
 0x281   : > { %4798 = vmatpush1.bf16.msra.mxu0 %v4797_v5 }
 0x282   : > { %4800 = vmatprep.subr.bf16.mxu0 %v4799_v6 }
 0x285   : > { %4802 = vmatpush1.bf16.msra.mxu0 %v4801_v11 }
 0x286   : > { %4804 = vmatprep.subr.bf16.mxu0 %v4803_v12 }
 0x289   : > { %4806 = vmatpush1.bf16.msra.mxu0 %v4805_v18 }
 0x28a   : > { %4808 = vmatprep.subr.bf16.mxu0 %v4807_v19 }
 0x28d   : > { %4810 = vmatpush1.bf16.msra.mxu0 %v4809_v25 }
 0x28e   : > { %4812 = vmatprep.subr.bf16.mxu0 %v4811_v26 }
 0x291   : > { %4814 = vmatpush1.bf16.msra.mxu0 %v4813_v31 }
 0x292   : > { %4816 = vmatprep.subr.bf16.mxu0 %v4815_v32  ;;  %v1806_v32 = vld [vmem:[%s6629_s17 + $0x48] sm:$0xff] }
 0x293   : > { %v4823_v34 = vpack.c.bf16 %v1808_v22, %v1806_v32  ;;  %v2128_v22 = vld [vmem:[%s6629_s17 + $0x90] sm:$0xff] }
 0x295   : > { %4818 = vmatpush1.bf16.msra.mxu0 %v4817_v36  ;;  %v1810_v36 = vld [vmem:[%s6629_s17 + $0x68] sm:$0xff] }
 0x296   : > { %4820 = vmatprep.subr.bf16.mxu0 %v4819_v37  ;;  %v1812_v37 = vld [vmem:[%s6629_s17 + $0x78] sm:$0xff] }
 0x297   : > { %v4827_v39 = vpack.c.bf16 %v1812_v37, %v1810_v36  ;;  %v2130_v37 = vld [vmem:[%s6629_s17 + $0xa0] sm:$0xff] }
 0x299   : > { %4822 = vmatpush1.bf16.msra.mxu0 %v4821_v40  ;;  %v1809_v40 = vld [vmem:[%s6629_s17 + $0x60] sm:$0xff] }
 0x29a   : > { %4551 = vmatprep.subr.mxu0 %v5911_v41 }
 0x29c   : > { %1463 = vmatmul.mubr.f32.vlgmr.msra.gmra.mrb[2].mxu0 %v6794_v14  ;;  %v6872_v14 = vsub.s32 0, %v6865_v43 }
 0x29d   : > { %4553 = vmatprep.mubr.msk.f32.mxu0 %vm5912_vm0, %v5911_v41 }
 0x29e   : > { %v1229_v48 = vrot.slane %v6869_v45, %v6872_v14 }
 0x32e   : > { %v1393_v49 = vpop.f32.mrb[0].mxu1 }
 0x32f   : > { %v6881_v51 = vadd.f32 %v1393_v49, %v1237_v46  ;;  %v1395_v53 = vpop.f32.mrb[1].mxu1  ;;  %v1322_v54 = vpop.f32.mrb[0].mxu0  ;;  %v4829_v46 = vpack.c.bf16 %v1811_v44, %v1809_v40 }
 0x330   : > { %v6884_v55 = vadd.f32 %v1322_v54, %v1229_v48  ;;  %v1324_v56 = vpop.f32.mrb[1].mxu0  ;;  %v6893_v58 = vadd.f32 %v1395_v53, %v1241_v52  ;;  %v1634_v48 = vld [vmem:[%s6629_s17 + $0x18] sm:$0xff]  ;;  %v1631_v53 = vld [vmem:[%s6629_s17] sm:$0xff]  ;;  %v1633_v54 = vld [vmem:[%s6629_s17 + $0x10] sm:$0xff] }
 0x331   : > { %4552 = vmatpush3.xpose.msk.msra.mxu0 %vm1469_vm1, %v6881_v51  ;;  %v6901_v59 = vadd.f32 %v1324_v56, %v1233_v57  ;;  %v4831_v49 = vpack.c.bf16 %v1634_v48, %v1632_v47  ;;  %v1636_v56 = vld [vmem:[%s6629_s17 + $0x28] sm:$0xff]  ;;  %v1638_v57 = vld [vmem:[%s6629_s17 + $0x38] sm:$0xff] }
 0x332   : > { %4591 = vmatprep.subr.mxu0 %v5911_v41  ;;  %1639 = vrot.lane.b32.xlu1 %v6884_v55, %s5913_s5 }
 0x334   : > { %4554 = vmatmul.mubr.msk.f32.vlgmr.msra.gmra.mrb[4].mxu0 %vm1469_vm1, %v6884_v55 }
 0x335   : > { %4592 = vmatpush3.xpose.msk.msra.mxu0 %vm1469_vm1, %v6893_v58  ;;  %4593 = vmatprep.mubr.msk.f32.mxu0 %vm5912_vm0, %v5911_v41 }
 0x336   : > { %4601 = vmatprep.subr.mxu0 %v5911_v41 }
 0x338   : > { %4594 = vmatmul.mubr.msk.f32.vlgmr.msra.gmra.mrb[6].mxu0 %vm1469_vm1, %v6901_v59 }
 0x339   : > { %4603 = vmatprep.mubr.msk.f32.mxu0 %vm5912_vm0, %v5911_v41 }
 0x36f   : > { %v1464_v62 = vpop.f32.mrb[2].mxu0 }
 0x370   : > { %v6910_v63 = vadd.f32 %v1464_v62, %v1245_v61  ;;  %v6912_v0 = vpop.f32.mrb[3].mxu0  ;;  %v4833_v62 = vpack.c.bf16 %v1633_v54, %v1631_v53 }
 0x372   : > { %4557 = vmatpush3.msra.mxu1 %v6910_v63 }
 0x373   : > { %4561 = vmatprep.subr.mxu1 %v5911_v41 }
 0x3a4   : > { %v1640_v11 = vpop.permute.xlu1 %1639 }
 0x407   : > { %v1542_v1 = vpop.f32.mrb[4].mxu0 }
 0x408   : > { %v4555_v2 = vpop.f32.mrb[5].mxu0  ;;  %v1547_v3 = vsel %vm1546_vm2, %v1542_v1, -inf }
 0x409   : > { %1548 = vmax.xlane.f32.xlu0 %v1547_v3 }
 0x40b   : > { %v6917_v4 = vpop.f32.mrb[6].mxu0 }
 0x40c   : > { %v4595_v5 = vpop.f32.mrb[7].mxu0 }
 0x40d   : > { %v4835_v5 = vpack.c.bf16 %v1638_v57, %v1636_v56 }
 0x41f   : > { %1641 = vrot.lane.b32.xlu0 %v6881_v51, %s5913_s5 }
 0x423   : > { %1727 = vrot.lane.b32.xlu0 %v6910_v63, %s5913_s5 }
 0x496   : > { %v1549_v6 = vpop.xlane.xlu0 %1548 }
 0x497   : > { %v1550_v7 = vsub.f32 %v1542_v1, %v1549_v6  ;;  %v1635_v6 = vld [vmem:[%s6629_s17 + $0x20] sm:$0xff] }
 0x499   : > { %v1551_v8 = vmul.f32 1.442695, %v1550_v7  ;;  %v1637_v7 = vld [vmem:[%s6629_s17 + $0x30] sm:$0xff] }
 0x49a   : > { %v1642_v9 = vpop.permute.xlu0 %1641 }
 0x49b   : > { %5263 = vpow2.f32 %v1551_v8 }
 0x49e   : > { %v1728_v12 = vpop.permute.xlu0 %1727 }
 0x4a5   : > { %v5264_v10 = vpop.eup %5263 }
 0x4a6   : > { %4559 = vmatmul.mubr.msk.f32.vlgmr.msra.gmra.mrb[2].mxu1 %vm1546_vm2, %v5264_v10  ;;  %v1553_v19 = vsel %vm1546_vm2, %v5264_v10, 0.0  ;;  %v4837_v10 = vpack.c.bf16 %v1637_v7, %v1635_v6 }
 0x4a7   : > { %4562 = vmatpush3.xpose.msk.msra.mxu1 %vm1469_vm1, %v1642_v9  ;;  %4563 = vmatprep.mubr.msk.f32.mxu1 %vm5912_vm0, %v5911_v41 }
 0x4a8   : > { %4566 = vmatprep.subr.mxu1 %v5911_v41 }
 0x4aa   : > { %4564 = vmatmul.mubr.msk.f32.vlgmr.msra.gmra.mrb[4].mxu1 %vm1469_vm1, %v1640_v11 }
 0x4ab   : > { %4567 = vmatpush3.msra.mxu1 %v1728_v12  ;;  %4568 = vmatprep.mubr.msk.f32.mxu1 %vm5912_vm0, %v5911_v41 }
 0x4ac   : > { %4824 = vmatprep.subr.bf16.mxu1 %v4823_v34  ;;  %v2131_v34 = vld [vmem:[%s6629_s17 + $0xa8] sm:$0xff] }
 0x4ad   : > { %v4843_v36 = vpack.c.bf16 %v2133_v35, %v2131_v34  ;;  %v2381_v34 = vld [vmem:[%s6629_s17 + $0xf0] sm:$0xff] }
 0x579   : > { %v1625_v13 = vpop.f32.mrb[2].mxu1 }
 0x57a   : > { %v4560_v15 = vpop.f32.mrb[3].mxu1 }
 0x57d   : > { %v1713_v16 = vpop.f32.mrb[4].mxu1 }
 0x57e   : > { %v4565_v17 = vpop.f32.mrb[5].mxu1  ;;  %v1717_v18 = vsel %vm1546_vm2, %v1713_v16, -inf }
 0x57f   : > { %1718 = vmax.xlane.f32.xlu1 %v1717_v18  ;;  %v1248_v17 = vsub.s32 5, %v6865_v43 }
 0x581   : > { %v1249_v18 = vrot.slane %v6869_v45, %v1248_v17 }
 0x583   : > { %1554 = vadd.xlane.f32.xlu1 %v1553_v19  ;;  %v6992_v19 = vadd.f32 %v6912_v0, %v1249_v18 }
 0x594   : > { %1963 = vrot.lane.b32.xlu1 %v6881_v51, %s5914_s28 }
 0x598   : > { %2705 = vrot.lane.b32.xlu1 %v6893_v58, %s5913_s5 }
 0x59c   : > { %2703 = vrot.lane.b32.xlu1 %v6901_v59, %s5913_s5 }
 0x60c   : > { %v1719_v20 = vpop.xlane.xlu1 %1718 }
 0x60d   : > { %v1720_v21 = vsub.f32 %v1713_v16, %v1719_v20 }
 0x60f   : > { %v1721_v23 = vmul.f32 1.442695, %v1720_v21 }
 0x610   : > { %v1555_v24 = vpop.xlane.xlu1 %1554 }
 0x611   : > { %5265 = vpow2.f32 %v1721_v23 }
 0x612   : > { %5267 = vrcp.f32 %v1555_v24 }
 0x614   : > { %v6939_v25 = vpop.permute.xlu1 %1963 }
 0x618   : > { %v2706_v26 = vpop.permute.xlu1 %2705 }
 0x619   : > { %4602 = vmatpush3.xpose.msk.msra.mxu0 %vm1469_vm1, %v2706_v26 }
 0x61a   : > { %4606 = vmatprep.subr.mxu0 %v5911_v41 }
 0x61b   : > { %v5266_v27 = vpop.eup %5265 }
 0x61c   : > { %v5268_v28 = vpop.eup %5267  ;;  %v2704_v29 = vpop.permute.xlu1 %2703  ;;  %4569 = vmatmul.mubr.msk.f32.vlgmr.msra.gmra.mrb[6].mxu1 %vm1546_vm2, %v5266_v27  ;;  %v1723_v30 = vsel %vm1546_vm2, %v5266_v27, 0.0 }
 0x61d   : > { %v1630_v31 = vmul.f32 %v5268_v28, %v1625_v13  ;;  %1724 = vadd.xlane.f32.xlu0 %v1723_v30  ;;  %4604 = vmatmul.mubr.msk.f32.vlgmr.msra.gmra.mrb[8].mxu0 %vm1469_vm1, %v2704_v29  ;;  %v2127_v29 = vld [vmem:[%s6629_s17 + $0x88] sm:$0xff]  ;;  %v2129_v30 = vld [vmem:[%s6629_s17 + $0x98] sm:$0xff] }
 0x61e   : > { %1880 = vmatprep.mubr.f32.mxu1 %v5911_v41  ;;  %4608 = vmatprep.mubr.msk.f32.mxu0 %vm5912_vm0, %v5911_v41  ;;  %v4839_v32 = vpack.c.bf16 %v2129_v30, %v2127_v29  ;;  %v2377_v29 = vld [vmem:[%s6629_s17 + $0xd0] sm:$0xff]  ;;  %v2380_v30 = vld [vmem:[%s6629_s17 + $0xe8] sm:$0xff] }
 0x61f   : > { %4826 = vmatpush1.bf16.msra.mxu1 %v4825_v38  ;;  %v2132_v38 = vld [vmem:[%s6629_s17 + $0xb0] sm:$0xff] }
 0x620   : > { %4828 = vmatprep.subr.bf16.mxu1 %v4827_v39  ;;  %v4845_v39 = vpack.c.bf16 %v2132_v38, %v2130_v37 }
 0x623   : > { %4830 = vmatpush1.bf16.msra.mxu1 %v4829_v46 }
 0x624   : > { %4832 = vmatprep.subr.bf16.mxu1 %v4831_v49 }
 0x633   : > { %1961 = vrot.lane.b32.xlu0 %v6884_v55, %s5914_s28 }
 0x637   : > { %2048 = vrot.lane.b32.xlu0 %v6910_v63, %s5914_s28 }
 0x6aa   : > { %v1725_v52 = vpop.xlane.xlu0 %1724 }
 0x6ab   : > { %5269 = vrcp.f32 %v1725_v52 }
 0x6ae   : > { %v1962_v11 = vpop.permute.xlu0 %1961 }
 0x6b2   : > { %v2049_v12 = vpop.permute.xlu0 %2048 }
 0x6b5   : > { %v5270_v60 = vpop.eup %5269 }
 0x6ef   : > { %v1799_v61 = vpop.f32.mrb[6].mxu1 }
 0x6f0   : > { %v1804_v1 = vmul.f32 %v5270_v60, %v1799_v61  ;;  %v4570_v2 = vpop.f32.mrb[7].mxu1  ;;  %v2777_v3 = vpop.f32.mrb[8].mxu0 }
 0x6f1   : > { %v4605_v8 = vpop.f32.mrb[9].mxu0  ;;  %v2781_v9 = vsel %vm1546_vm2, %v2777_v3, -inf }
 0x6f2   : > { %4475 = vmatmul.mubr.msk.f32.vlgmr.msra.gmra.mrb[8].mxu1 %vm1469_vm1, %v1804_v1  ;;  %2782 = vmax.xlane.f32.xlu0 %v2781_v9  ;;  %v2535_v8 = vsel %vm1546_vm2, %v6917_v4, -inf }
 0x6f3   : > { %4834 = vmatpush1.bf16.msra.mxu1 %v4833_v62  ;;  %1954 = vmatprep.mubr.f32.mxu1 %v5911_v41 }
 0x6f4   : > { %4836 = vmatprep.subr.bf16.mxu1 %v4835_v5 }
 0x6f7   : > { %4838 = vmatpush1.bf16.msra.mxu1 %v4837_v10 }
 0x6f8   : > { %4571 = vmatprep.subr.mxu1 %v5911_v41 }
 0x6fa   : > { %4476 = vmatmul.mubr.msk.f32.vlgmr.msra.gmra.mrb[8].mxu1 %vm1469_vm1, %v1630_v31  ;;  %v2126_v31 = vld [vmem:[%s6629_s17 + $0x80] sm:$0xff] }
 0x6fb   : > { %4573 = vmatprep.mubr.msk.f32.mxu1 %vm5912_vm0, %v5911_v41  ;;  %v4841_v33 = vpack.c.bf16 %v2128_v22, %v2126_v31  ;;  %v2382_v31 = vld [vmem:[%s6629_s17 + $0xf8] sm:$0xff] }
 0x6fc   : > { %v4851_v22 = vpack.c.bf16 %v2382_v31, %v2380_v30  ;;  %v3123_v30 = vld [vmem:[%s6629_s17 + $0x1a8] sm:$0xff]  ;;  %v3125_v31 = vld [vmem:[%s6629_s17 + $0x1b8] sm:$0xff] }
 0x700   : > { %4572 = vmatpush3.xpose.msk.msra.mxu1 %vm1469_vm1, %v6939_v25 }
 0x701   : > { %4576 = vmatprep.subr.mxu1 %v5911_v41 }
 0x703   : > { %4574 = vmatmul.mubr.msk.f32.vlgmr.msra.gmra.mrb[10].mxu1 %vm1469_vm1, %v1962_v11 }
 0x704   : > { %4577 = vmatpush3.msra.mxu1 %v2049_v12  ;;  %4578 = vmatprep.mubr.msk.f32.mxu1 %vm5912_vm0, %v5911_v41 }
 0x705   : > { %4840 = vmatprep.subr.bf16.mxu1 %v4839_v32 }
 0x708   : > { %2955 = vrot.lane.b32.xlu0 %v6893_v58, %s5914_s28 }
 0x70c   : > { %2212 = vrot.lane.b32.xlu0 %v6881_v51, %s5915_s18 }
 0x710   : > { %2210 = vrot.lane.b32.xlu0 %v6884_v55, %s5915_s18 }
 0x77f   : > { %v2783_v51 = vpop.xlane.xlu0 %2782 }
 0x780   : > { %v2784_v55 = vsub.f32 %v2777_v3, %v2783_v51 }
 0x782   : > { %v2785_v20 = vmul.f32 1.442695, %v2784_v55 }
 0x783   : > { %v2956_v45 = vpop.permute.xlu0 %2955 }
 0x784   : > { %5271 = vpow2.f32 %v2785_v20 }
 0x787   : > { %v2213_v47 = vpop.permute.xlu0 %2212 }
 0x78b   : > { %v2211_v60 = vpop.permute.xlu0 %2210 }
 0x78e   : > { %v6998_v26 = vpop.eup %5271 }
 0x7d6   : > { %v2035_v13 = vpop.f32.mrb[10].mxu1 }
 0x7d7   : > { %v4575_v15 = vpop.f32.mrb[11].mxu1  ;;  %v2039_v16 = vsel %vm1546_vm2, %v2035_v13, -inf }
 0x7d8   : > { %2040 = vmax.xlane.f32.xlu1 %v2039_v16 }
 0x7e9   : > { %2791 = vrot.lane.b32.xlu1 %v6992_v19, %s5913_s5 }
 0x7ed   : > { %2953 = vrot.lane.b32.xlu1 %v6901_v59, %s5914_s28 }
 0x865   : > { %v2041_v21 = vpop.xlane.xlu1 %2040 }
 0x866   : > { %v2042_v23 = vsub.f32 %v2035_v13, %v2041_v21 }
 0x868   : > { %v2043_v24 = vmul.f32 1.442695, %v2042_v23 }
 0x869   : > { %v2792_v25 = vpop.permute.xlu1 %2791 }
 0x86a   : > { %5273 = vpow2.f32 %v2043_v24  ;;  %4607 = vmatpush3.msra.mxu0 %v2792_v25  ;;  %v2787_v24 = vsel %vm1546_vm2, %v6998_v26, 0.0 }
 0x86b   : > { %4609 = vmatmul.mubr.msk.f32.vlgmr.msra.gmra.mrb[10].mxu0 %vm1546_vm2, %v6998_v26  ;;  %4611 = vmatprep.subr.mxu0 %v5911_v41 }
 0x86c   : > { %4613 = vmatprep.mubr.msk.f32.mxu0 %vm5912_vm0, %v5911_v41 }
 0x86d   : > { %v2954_v0 = vpop.permute.xlu1 %2953 }
 0x871   : > { %4612 = vmatpush3.xpose.msk.msra.mxu0 %vm1469_vm1, %v2956_v45  ;;  %v2376_v45 = vld [vmem:[%s6629_s17 + $0xc8] sm:$0xff] }
 0x872   : > { %4616 = vmatprep.subr.mxu0 %v5911_v41 }
 0x874   : > { %v5274_v27 = vpop.eup %5273  ;;  %4614 = vmatmul.mubr.msk.f32.vlgmr.msra.gmra.mrb[12].mxu0 %vm1469_vm1, %v2954_v0  ;;  %v2378_v0 = vld [vmem:[%s6629_s17 + $0xd8] sm:$0xff] }
 0x875   : > { %4579 = vmatmul.mubr.msk.f32.vlgmr.msra.gmra.mrb[12].mxu1 %vm1546_vm2, %v5274_v27  ;;  %v2045_v28 = vsel %vm1546_vm2, %v5274_v27, 0.0  ;;  %4618 = vmatprep.mubr.msk.f32.mxu0 %vm5912_vm0, %v5911_v41  ;;  %v2375_v27 = vld [vmem:[%s6629_s17 + $0xc0] sm:$0xff] }
 0x876   : > { %2046 = vadd.xlane.f32.xlu1 %v2045_v28  ;;  %2201 = vmatprep.mubr.f32.mxu1 %v5911_v41  ;;  %v4847_v28 = vpack.c.bf16 %v2378_v0, %v2376_v45  ;;  %v4849_v32 = vpack.c.bf16 %v2377_v29, %v2375_v27  ;;  %v3118_v27 = vld [vmem:[%s6629_s17 + $0x180] sm:$0xff] }
 0x877   : > { %4842 = vmatpush1.bf16.msra.mxu1 %v4841_v33  ;;  %v2379_v33 = vld [vmem:[%s6629_s17 + $0xe0] sm:$0xff] }
 0x878   : > { %4844 = vmatprep.subr.bf16.mxu1 %v4843_v36  ;;  %v4853_v26 = vpack.c.bf16 %v2381_v34, %v2379_v33  ;;  %v4875_v33 = vpack.c.bf16 %v3125_v31, %v3123_v30  ;;  %v3122_v34 = vld [vmem:[%s6629_s17 + $0x1a0] sm:$0xff]  ;;  %v3531_v31 = vld [vmem:[%s6636_s24 + $0x98] sm:$0xff] }
 0x879   : > { %v3529_v30 = vld [vmem:[%s6636_s24 + $0x88] sm:$0xff] }
 0x87b   : > { %4846 = vmatpush1.bf16.msra.mxu1 %v4845_v39 }
 0x87c   : > { %4581 = vmatprep.subr.mxu1 %v5911_v41 }
 0x887   : > { %3040 = vrot.lane.b32.xlu1 %v6992_v19, %s5914_s28 }
 0x88b   : > { %3202 = vrot.lane.b32.xlu1 %v6901_v59, %s5915_s18 }
 0x903   : > { %v2047_v40 = vpop.xlane.xlu1 %2046 }
 0x904   : > { %5275 = vrcp.f32 %v2047_v40 }
 0x907   : > { %v3041_v59 = vpop.permute.xlu1 %3040 }
 0x908   : > { %4617 = vmatpush3.msra.mxu0 %v3041_v59 }
 0x909   : > { %4621 = vmatprep.subr.mxu0 %v5911_v41 }
 0x90e   : > { %v5276_v49 = vpop.eup %5275 }
 0x93e   : > { %v7027_v44 = vpop.f32.mrb[10].mxu0 }
 0x93f   : > { %v4610_v46 = vpop.f32.mrb[11].mxu0 }
 0x947   : > { %v3027_v48 = vpop.f32.mrb[12].mxu0 }
 0x948   : > { %v2120_v52 = vpop.f32.mrb[12].mxu1  ;;  %v4615_v53 = vpop.f32.mrb[13].mxu0  ;;  %v3031_v54 = vsel %vm1546_vm2, %v3027_v48, -inf }
 0x949   : > { %v2125_v56 = vmul.f32 %v5276_v49, %v2120_v52  ;;  %v4580_v57 = vpop.f32.mrb[13].mxu1  ;;  %3032 = vmax.xlane.f32.xlu0 %v3031_v54  ;;  %v2620_v52 = vld [vmem:[%s6629_s17 + $0x108] sm:$0xff]  ;;  %v2622_v53 = vld [vmem:[%s6629_s17 + $0x118] sm:$0xff]  ;;  %v2619_v54 = vld [vmem:[%s6629_s17 + $0x100] sm:$0xff] }
 0x94a   : > { %v2621_v57 = vld [vmem:[%s6629_s17 + $0x110] sm:$0xff] }
 0x94b   : > { %4480 = vmatmul.mubr.msk.f32.vlgmr.msra.gmra.mrb[8].mxu1 %vm1469_vm1, %v2125_v56  ;;  %v4855_v56 = vpack.c.bf16 %v2622_v53, %v2620_v52  ;;  %v3371_v53 = vld [vmem:[%s6629_s17 + $0x1e0] sm:$0xff] }
 0x94c   : > { %4582 = vmatpush3.xpose.msk.msra.mxu1 %vm1469_vm1, %v2213_v47  ;;  %4583 = vmatprep.mubr.msk.f32.mxu1 %vm5912_vm0, %v5911_v41 }
 0x94d   : > { %4586 = vmatprep.subr.mxu1 %v5911_v41 }
 0x94f   : > { %4584 = vmatmul.mubr.msk.f32.vlgmr.msra.gmra.mrb[14].mxu1 %vm1469_vm1, %v2211_v60  ;;  %v2624_v60 = vld [vmem:[%s6629_s17 + $0x128] sm:$0xff] }
 0x950   : > { %4588 = vmatprep.mubr.msk.f32.mxu1 %vm5912_vm0, %v5911_v41 }
 0x95f   : > { %3204 = vrot.lane.b32.xlu0 %v6893_v58, %s5915_s18  ;;  %v3203_v58 = vpop.permute.xlu1 %3202 }
 0x963   : > { %2297 = vrot.lane.b32.xlu0 %v6910_v63, %s5915_s18 }
 0x9d6   : > { %v3033_v61 = vpop.xlane.xlu0 %3032 }
 0x9d7   : > { %v3034_v62 = vsub.f32 %v3027_v48, %v3033_v61  ;;  %v2626_v61 = vld [vmem:[%s6629_s17 + $0x138] sm:$0xff] }
 0x9d9   : > { %v3035_v1 = vmul.f32 1.442695, %v3034_v62  ;;  %v4857_v62 = vpack.c.bf16 %v2621_v57, %v2619_v54  ;;  %v3373_v54 = vld [vmem:[%s6629_s17 + $0x1f0] sm:$0xff] }
 0x9da   : > { %v3205_v2 = vpop.permute.xlu0 %3204 }
 0x9db   : > { %5277 = vpow2.f32 %v3035_v1  ;;  %v2623_v1 = vld [vmem:[%s6629_s17 + $0x120] sm:$0xff] }
 0x9de   : > { %v2298_v3 = vpop.permute.xlu0 %2297 }
 0x9df   : > { %4587 = vmatpush3.msra.mxu1 %v2298_v3 }
 0x9e0   : > { %4848 = vmatprep.subr.bf16.mxu1 %v4847_v28  ;;  %v3120_v28 = vld [vmem:[%s6629_s17 + $0x190] sm:$0xff] }
 0x9e5   : > { %v5278_v5 = vpop.eup %5277 }
 0x9e6   : > { %4619 = vmatmul.mubr.msk.f32.vlgmr.msra.gmra.mrb[14].mxu0 %vm1546_vm2, %v5278_v5  ;;  %v3037_v25 = vsel %vm1546_vm2, %v5278_v5, 0.0  ;;  %v2870_v5 = vld [vmem:[%s6629_s17 + $0x148] sm:$0xff] }
 0x9e7   : > { %4622 = vmatpush3.xpose.msk.msra.mxu0 %vm1469_vm1, %v3205_v2  ;;  %4623 = vmatprep.mubr.msk.f32.mxu0 %vm5912_vm0, %v5911_v41  ;;  %v2625_v2 = vld [vmem:[%s6629_s17 + $0x130] sm:$0xff] }
 0x9e8   : > { %4626 = vmatprep.subr.mxu0 %v5911_v41  ;;  %v4861_v3 = vpack.c.bf16 %v2625_v2, %v2623_v1 }
 0x9ea   : > { %4624 = vmatmul.mubr.msk.f32.vlgmr.msra.gmra.mrb[16].mxu0 %vm1469_vm1, %v3203_v58  ;;  %v2872_v58 = vld [vmem:[%s6629_s17 + $0x158] sm:$0xff] }
 0x9eb   : > { %4628 = vmatprep.mubr.msk.f32.mxu0 %vm5912_vm0, %v5911_v41 }
 0xa22   : > { %v2284_v63 = vpop.f32.mrb[14].mxu1 }
 0xa23   : > { %v4585_v6 = vpop.f32.mrb[15].mxu1  ;;  %v2288_v7 = vsel %vm1546_vm2, %v2284_v63, -inf }
 0xa24   : > { %2289 = vmax.xlane.f32.xlu1 %v2288_v7 }
 0xa28   : > { %2536 = vmax.xlane.f32.xlu1 %v2535_v8 }
 0xab1   : > { %v2290_v9 = vpop.xlane.xlu1 %2289 }
 0xab2   : > { %v2291_v10 = vsub.f32 %v2284_v63, %v2290_v9  ;;  %v4863_v63 = vpack.c.bf16 %v2872_v58, %v2870_v5 }
 0xab4   : > { %v2292_v11 = vmul.f32 1.442695, %v2291_v10  ;;  %v2869_v10 = vld [vmem:[%s6629_s17 + $0x140] sm:$0xff] }
 0xab5   : > { %v2537_v12 = vpop.xlane.xlu1 %2536 }
 0xab6   : > { %5279 = vpow2.f32 %v2292_v11  ;;  %v2538_v13 = vsub.f32 %v6917_v4, %v2537_v12  ;;  %v2871_v11 = vld [vmem:[%s6629_s17 + $0x150] sm:$0xff]  ;;  %v2874_v12 = vld [vmem:[%s6629_s17 + $0x168] sm:$0xff] }
 0xab8   : > { %v2539_v15 = vmul.f32 1.442695, %v2538_v13  ;;  %v2876_v13 = vld [vmem:[%s6629_s17 + $0x178] sm:$0xff] }
 0xab9   : > { %v7054_v16 = vpop.f32.mrb[14].mxu0 }
 0xaba   : > { %5281 = vpow2.f32 %v2539_v15  ;;  %v4620_v17 = vpop.f32.mrb[15].mxu0 }
 0xabd   : > { %v3276_v18 = vpop.f32.mrb[16].mxu0 }
 0xabe   : > { %v4625_v51 = vpop.f32.mrb[17].mxu0  ;;  %v3280_v55 = vsel %vm1546_vm2, %v3276_v18, -inf }
 0xabf   : > { %3281 = vmax.xlane.f32.xlu1 %v3280_v55 }
 0xac0   : > { %v5280_v20 = vpop.eup %5279 }
 0xac1   : > { %4589 = vmatmul.mubr.msk.f32.vlgmr.msra.gmra.mrb[16].mxu1 %vm1546_vm2, %v5280_v20  ;;  %v2294_v21 = vsel %vm1546_vm2, %v5280_v20, 0.0 }
 0xac2   : > { %2295 = vadd.xlane.f32.xlu0 %v2294_v21  ;;  %2450 = vmatprep.mubr.f32.mxu1 %v5911_v41  ;;  %v4867_v21 = vpack.c.bf16 %v2876_v13, %v2874_v12  ;;  %v3517_v12 = vld [vmem:[%s6636_s24 + $0x28] sm:$0xff]  ;;  %v3519_v13 = vld [vmem:[%s6636_s24 + $0x38] sm:$0xff] }
 0xac3   : > { %4850 = vmatpush1.bf16.msra.mxu1 %v4849_v32  ;;  %v4873_v32 = vpack.c.bf16 %v3120_v28, %v3118_v27  ;;  %v3524_v28 = vld [vmem:[%s6636_s24 + $0x60] sm:$0xff] }
 0xac4   : > { %v5282_v4 = vpop.eup %5281  ;;  %4852 = vmatprep.subr.bf16.mxu1 %v4851_v22 }
 0xac5   : > { %v2541_v23 = vsel %vm1546_vm2, %v5282_v4, 0.0 }
 0xac6   : > { %2542 = vadd.xlane.f32.xlu0 %v2541_v23  ;;  %v2875_v23 = vld [vmem:[%s6629_s17 + $0x170] sm:$0xff] }
 0xac7   : > { %4854 = vmatpush1.bf16.msra.mxu1 %v4853_v26  ;;  %v3124_v26 = vld [vmem:[%s6629_s17 + $0x1b0] sm:$0xff] }
 0xac8   : > { %4596 = vmatprep.subr.mxu1 %v5911_v41 }
 0xaca   : > { %2788 = vadd.xlane.f32.xlu0 %v2787_v24  ;;  %v3119_v24 = vld [vmem:[%s6629_s17 + $0x188] sm:$0xff] }
 0xace   : > { %3038 = vadd.xlane.f32.xlu0 %v3037_v25  ;;  %v3121_v25 = vld [vmem:[%s6629_s17 + $0x198] sm:$0xff] }
 0xacf   : > { %v4871_v0 = vpack.c.bf16 %v3121_v25, %v3119_v24  ;;  %v3522_v24 = vld [vmem:[%s6636_s24 + $0x50] sm:$0xff]  ;;  %v3525_v25 = vld [vmem:[%s6636_s24 + $0x68] sm:$0xff] }
 0xad0   : > { %3289 = vrot.lane.b32.xlu1 %v6992_v19, %s5915_s18 }
 0xb4c   : > { %v3282_v35 = vpop.xlane.xlu1 %3281 }
 0xb4d   : > { %v3283_v36 = vsub.f32 %v3276_v18, %v3282_v35  ;;  %v4865_v18 = vpack.c.bf16 %v2871_v11, %v2869_v10  ;;  %v3368_v35 = vld [vmem:[%s6629_s17 + $0x1c8] sm:$0xff] }
 0xb4e   : > { %v3514_v11 = vld [vmem:[%s6636_s24 + $0x10] sm:$0xff] }
 0xb4f   : > { %v3284_v37 = vmul.f32 1.442695, %v3283_v36  ;;  %v2296_v59 = vpop.xlane.xlu0 %2295  ;;  %v3370_v36 = vld [vmem:[%s6629_s17 + $0x1d8] sm:$0xff] }
 0xb50   : > { %v3290_v38 = vpop.permute.xlu1 %3289 }
 0xb51   : > { %5283 = vpow2.f32 %v3284_v37  ;;  %4627 = vmatpush3.msra.mxu0 %v3290_v38  ;;  %v4877_v38 = vpack.c.bf16 %v3124_v26, %v3122_v34  ;;  %v3530_v34 = vld [vmem:[%s6636_s24 + $0x90] sm:$0xff]  ;;  %v3533_v26 = vld [vmem:[%s6636_s24 + $0xa8] sm:$0xff] }
 0xb52   : > { %5285 = vrcp.f32 %v2296_v59 }
 0xb53   : > { %v2543_v8 = vpop.xlane.xlu0 %2542 }
 0xb54   : > { %5287 = vrcp.f32 %v2543_v8  ;;  %v3515_v8 = vld [vmem:[%s6636_s24 + $0x18] sm:$0xff] }
 0xb57   : > { %v2789_v9 = vpop.xlane.xlu0 %2788 }
 0xb58   : > { %5289 = vrcp.f32 %v2789_v9  ;;  %v3512_v9 = vld [vmem:[%s6636_s24] sm:$0xff] }
 0xb5b   : > { %v5284_v39 = vpop.eup %5283  ;;  %v3039_v51 = vpop.xlane.xlu0 %3038 }
 0xb5c   : > { %4629 = vmatmul.mubr.msk.f32.vlgmr.msra.gmra.mrb[18].mxu0 %vm1546_vm2, %v5284_v39  ;;  %v3286_v40 = vsel %vm1546_vm2, %v5284_v39, 0.0  ;;  %v5286_v46 = vpop.eup %5285  ;;  %5291 = vrcp.f32 %v3039_v51  ;;  %v4879_v39 = vpack.c.bf16 %v3370_v36, %v3368_v35  ;;  %v3518_v51 = vld [vmem:[%s6636_s24 + $0x30] sm:$0xff]  ;;  %v3535_v35 = vld [vmem:[%s6636_s24 + $0xb8] sm:$0xff] }
 0xb5d   : > { %3287 = vadd.xlane.f32.xlu1 %v3286_v40  ;;  %v3369_v40 = vld [vmem:[%s6629_s17 + $0x1d0] sm:$0xff] }
 0xb5e   : > { %v5288_v15 = vpop.eup %5287 }
 0xb62   : > { %v5290_v29 = vpop.eup %5289 }
 0xb63   : > { %v2868_v22 = vmul.f32 %v5290_v29, %v7027_v44  ;;  %v3367_v44 = vld [vmem:[%s6629_s17 + $0x1c0] sm:$0xff] }
 0xb64   : > { %v3526_v29 = vld [vmem:[%s6636_s24 + $0x70] sm:$0xff] }
 0xb66   : > { %v5292_v59 = vpop.eup %5291 }
 0xb94   : > { %v2369_v47 = vpop.f32.mrb[16].mxu1 }
 0xb95   : > { %v2374_v48 = vmul.f32 %v5286_v46, %v2369_v47  ;;  %v4590_v49 = vpop.f32.mrb[17].mxu1  ;;  %v3372_v46 = vld [vmem:[%s6629_s17 + $0x1e8] sm:$0xff]  ;;  %v3374_v47 = vld [vmem:[%s6629_s17 + $0x1f8] sm:$0xff] }
 0xb96   : > { %v3117_v49 = vmul.f32 %v5292_v59, %v7054_v16  ;;  %v4883_v52 = vpack.c.bf16 %v3374_v47, %v3372_v46  ;;  %v3453_v16 = vld [vmem:[%s829_s12] sm:$0x3]  ;;  %v3536_v47 = vld [vmem:[%s6636_s24 + $0xc0] sm:$0xff] }
 0xb97   : > { %4484 = vmatmul.mubr.msk.f32.vlgmr.msra.gmra.mrb[8].mxu1 %vm1469_vm1, %v2374_v48  ;;  %v4881_v48 = vpack.c.bf16 %v3369_v40, %v3367_v44  ;;  %v3537_v44 = vld [vmem:[%s6636_s24 + $0xc8] sm:$0xff]  ;;  %v3539_v40 = vld [vmem:[%s6636_s24 + $0xd8] sm:$0xff] }
 0xb98   : > { %4597 = vmatpush3.msra.mxu1 %v6992_v19  ;;  %4598 = vmatprep.mubr.msk.f32.mxu1 %vm5912_vm0, %v5911_v41  ;;  %v4859_v19 = vpack.c.bf16 %v2626_v61, %v2624_v60  ;;  %v3458_v61 = vrot.slane %v3453_v16, %v6872_v14  ;;  %v4911_v46 = vpack.c.bf16 %v3539_v40, %v3537_v44  ;;  %v3570_v44 = vld [vmem:[%s6636_s24 + $0x1d0] sm:$0xff]  ;;  %v3573_v40 = vld [vmem:[%s6636_s24 + $0x1e8] sm:$0xff] }
 0xb99   : > { %4856 = vmatprep.subr.bf16.mxu1 %v4855_v56  ;;  %v4885_v56 = vpack.c.bf16 %v3373_v54, %v3371_v53 }
 0xb9b   : > { %4599 = vmatmul.mubr.msk.f32.vlgmr.msra.gmra.mrb[18].mxu1 %vm1546_vm2, %v5282_v4  ;;  %v2873_v4 = vld [vmem:[%s6629_s17 + $0x160] sm:$0xff] }
 0xb9c   : > { %2694 = vmatprep.mubr.f32.mxu1 %v5911_v41  ;;  %4858 = vmatpush1.bf16.msra.mxu1 %v4857_v62  ;;  %v4869_v45 = vpack.c.bf16 %v2875_v23, %v2873_v4  ;;  %v3520_v23 = vld [vmem:[%s6636_s24 + $0x40] sm:$0xff] }
 0xb9d   : > { %4860 = vmatprep.subr.bf16.mxu1 %v4859_v19  ;;  %v3462_v19 = vrot.slane %v3453_v16, %v6879_v50  ;;  %v3547_v16 = vld [vmem:[%s6636_s24 + $0x118] sm:$0xff] }
 0xba0   : > { %4862 = vmatpush1.bf16.msra.mxu1 %v4861_v3  ;;  %v5300_v3 = vld [vmem:[#allocation2 + $0x8] sm:$0xff] }
 0xba1   : > { %4864 = vmatprep.subr.bf16.mxu1 %v4863_v63 }
 0xbea   : > { %v3288_v37 = vpop.xlane.xlu1 %3287 }
 0xbeb   : > { %5293 = vrcp.f32 %v3288_v37  ;;  %v4907_v37 = vpack.c.bf16 %v3535_v35, %v3533_v26  ;;  %v3566_v26 = vld [vmem:[%s6636_s24 + $0x1b0] sm:$0xff]  ;;  %v3569_v35 = vld [vmem:[%s6636_s24 + $0x1c8] sm:$0xff] }
 0xbf5   : > { %v5294_v57 = vpop.eup %5293 }
 0xc2f   : > { %v7093_v6 = vpop.f32.mrb[18].mxu0 }
 0xc30   : > { %v4630_v7 = vpop.f32.mrb[19].mxu0  ;;  %v3366_v60 = vmul.f32 %v5294_v57, %v7093_v6  ;;  %v3542_v57 = vld [vmem:[%s6636_s24 + $0xf0] sm:$0xff] }
 0xc31   : > { %v3513_v7 = vld [vmem:[%s6636_s24 + $0x8] sm:$0xff] }
 0xc32   : > { %v4887_v10 = vpack.c.bf16 %v3515_v8, %v3513_v7  ;;  %v3550_v7 = vld [vmem:[%s6636_s24 + $0x130] sm:$0xff]  ;;  %v3553_v8 = vld [vmem:[%s6636_s24 + $0x148] sm:$0xff] }
 0xc34   : > { %4888 = vmatprep.subr.bf16.mxu0 %v4887_v10 }
 0xc6e   : > { %v2613_v17 = vpop.f32.mrb[18].mxu1 }
 0xc6f   : > { %v2618_v55 = vmul.f32 %v5288_v15, %v2613_v17  ;;  %v4600_v20 = vpop.f32.mrb[19].mxu1  ;;  %v4889_v15 = vpack.c.bf16 %v3514_v11, %v3512_v9  ;;  %v4891_v17 = vpack.c.bf16 %v3519_v13, %v3517_v12  ;;  %v3555_v9 = vld [vmem:[%s6636_s24 + $0x158] sm:$0xff]  ;;  %v3552_v12 = vld [vmem:[%s6636_s24 + $0x140] sm:$0xff]  ;;  %v3554_v13 = vld [vmem:[%s6636_s24 + $0x150] sm:$0xff] }
 0xc70   : > { %v3523_v20 = vld [vmem:[%s6636_s24 + $0x58] sm:$0xff]  ;;  %v4927_v11 = vpack.c.bf16 %v3555_v9, %v3553_v8  ;;  %v3674_v9 = vld [vmem:[%s6639_s22 + $0x68] sm:$0xff] }
 0xc71   : > { %4488 = vmatmul.mubr.msk.f32.vlgmr.msra.gmra.mrb[8].mxu1 %vm1469_vm1, %v2618_v55  ;;  %v3521_v55 = vld [vmem:[%s6636_s24 + $0x48] sm:$0xff]  ;;  %4890 = vmatpush1.bf16.msra.mxu0 %v4889_v15  ;;  %v4929_v15 = vpack.c.bf16 %v3554_v13, %v3552_v12  ;;  %v3671_v8 = vld [vmem:[%s6639_s22 + $0x50] sm:$0xff] }
 0xc72   : > { %4866 = vmatpush1.bf16.msra.mxu1 %v4865_v18  ;;  %2944 = vmatprep.mubr.f32.mxu1 %v5911_v41  ;;  %v3516_v18 = vld [vmem:[%s6636_s24 + $0x20] sm:$0xff]  ;;  %v4895_v4 = vpack.c.bf16 %v3523_v20, %v3521_v55 }
 0xc73   : > { %4868 = vmatprep.subr.bf16.mxu1 %v4867_v21  ;;  %v4893_v21 = vpack.c.bf16 %v3518_v51, %v3516_v18  ;;  %4892 = vmatprep.subr.bf16.mxu0 %v4891_v17  ;;  %v3673_v13 = vld [vmem:[%s6639_s22 + $0x60] sm:$0xff] }
 0xc75   : > { %4894 = vmatpush1.bf16.msra.mxu0 %v4893_v21 }
 0xc76   : > { %4870 = vmatpush1.bf16.msra.mxu1 %v4869_v45  ;;  %v3527_v45 = vld [vmem:[%s6636_s24 + $0x78] sm:$0xff]  ;;  %4896 = vmatprep.subr.bf16.mxu0 %v4895_v4 }
 0xc77   : > { %4872 = vmatprep.subr.bf16.mxu1 %v4871_v0  ;;  %v4897_v0 = vpack.c.bf16 %v3522_v24, %v3520_v23  ;;  %v4899_v27 = vpack.c.bf16 %v3527_v45, %v3525_v25  ;;  %v3557_v23 = vld [vmem:[%s6636_s24 + $0x168] sm:$0xff]  ;;  %v3559_v24 = vld [vmem:[%s6636_s24 + $0x178] sm:$0xff]  ;;  %v3556_v25 = vld [vmem:[%s6636_s24 + $0x160] sm:$0xff] }
 0xc79   : > { %4492 = vmatmul.mubr.msk.f32.vlgmr.msra.gmra.mrb[8].mxu1 %vm1469_vm1, %v2868_v22  ;;  %4898 = vmatpush1.bf16.msra.mxu0 %v4897_v0  ;;  %v4903_v22 = vpack.c.bf16 %v3531_v31, %v3529_v30  ;;  %v3561_v0 = vld [vmem:[%s6636_s24 + $0x188] sm:$0xff]  ;;  %v3562_v30 = vld [vmem:[%s6636_s24 + $0x190] sm:$0xff] }
 0xc7a   : > { %4874 = vmatpush1.bf16.msra.mxu1 %v4873_v32  ;;  %3193 = vmatprep.mubr.f32.mxu1 %v5911_v41  ;;  %v4901_v32 = vpack.c.bf16 %v3526_v29, %v3524_v28  ;;  %v3560_v28 = vld [vmem:[%s6636_s24 + $0x180] sm:$0xff]  ;;  %v3565_v31 = vld [vmem:[%s6636_s24 + $0x1a8] sm:$0xff] }
 0xc7b   : > { %4876 = vmatprep.subr.bf16.mxu1 %v4875_v33  ;;  %4900 = vmatprep.subr.bf16.mxu0 %v4899_v27  ;;  %v3528_v33 = vld [vmem:[%s6636_s24 + $0x80] sm:$0xff]  ;;  %v3563_v27 = vld [vmem:[%s6636_s24 + $0x198] sm:$0xff] }
 0xc7c   : > { %v4905_v36 = vpack.c.bf16 %v3530_v34, %v3528_v33  ;;  %v4935_v29 = vpack.c.bf16 %v3563_v27, %v3561_v0  ;;  %v3564_v34 = vld [vmem:[%s6636_s24 + $0x1a0] sm:$0xff]  ;;  %v3683_v0 = vld [vmem:[%s6639_s22 + $0xb0] sm:$0xff]  ;;  %v3686_v27 = vld [vmem:[%s6639_s22 + $0xc8] sm:$0xff] }
 0xc7d   : > { %4902 = vmatpush1.bf16.msra.mxu0 %v4901_v32  ;;  %v3567_v32 = vld [vmem:[%s6636_s24 + $0x1b8] sm:$0xff] }
 0xc7e   : > { %4878 = vmatpush1.bf16.msra.mxu1 %v4877_v38  ;;  %4904 = vmatprep.subr.bf16.mxu0 %v4903_v22  ;;  %v3532_v38 = vld [vmem:[%s6636_s24 + $0xa0] sm:$0xff]  ;;  %v4937_v22 = vpack.c.bf16 %v3562_v30, %v3560_v28  ;;  %v4939_v33 = vpack.c.bf16 %v3567_v32, %v3565_v31  ;;  %v3687_v32 = vld [vmem:[%s6639_s22 + $0xd0] sm:$0xff] }
 0xc7f   : > { %4880 = vmatprep.subr.bf16.mxu1 %v4879_v39  ;;  %v3534_v39 = vld [vmem:[%s6636_s24 + $0xb0] sm:$0xff]  ;;  %v3688_v28 = vld [vmem:[%s6639_s22 + $0xd8] sm:$0xff]  ;;  %v3685_v31 = vld [vmem:[%s6639_s22 + $0xc0] sm:$0xff] }
 0xc80   : > { %v4909_v59 = vpack.c.bf16 %v3534_v39, %v3532_v38  ;;  %v3568_v39 = vld [vmem:[%s6636_s24 + $0x1c0] sm:$0xff]  ;;  %v4975_v30 = vpack.c.bf16 %v3688_v28, %v3686_v27 }
 0xc81   : > { %4496 = vmatmul.mubr.msk.f32.vlgmr.msra.gmra.mrb[8].mxu1 %vm1469_vm1, %v3117_v49  ;;  %4906 = vmatpush1.bf16.msra.mxu0 %v4905_v36  ;;  %v3541_v49 = vld [vmem:[%s6636_s24 + $0xe8] sm:$0xff]  ;;  %v3571_v36 = vld [vmem:[%s6636_s24 + $0x1d8] sm:$0xff] }
 0xc82   : > { %4882 = vmatpush1.bf16.msra.mxu1 %v4881_v48  ;;  %3442 = vmatprep.mubr.f32.mxu1 %v5911_v41  ;;  %v5299_v41 = vld [vmem:[#allocation2] sm:$0xff]  ;;  %v3538_v48 = vld [vmem:[%s6636_s24 + $0xd0] sm:$0xff]  ;;  %v4943_v38 = vpack.c.bf16 %v3571_v36, %v3569_v35 }
 0xc83   : > { %4884 = vmatprep.subr.bf16.mxu1 %v4883_v52  ;;  %4908 = vmatprep.subr.bf16.mxu0 %v4907_v37  ;;  %v3543_v52 = vld [vmem:[%s6636_s24 + $0xf8] sm:$0xff]  ;;  %v4913_v53 = vpack.c.bf16 %v3538_v48, %v3536_v47  ;;  %v4941_v37 = vpack.c.bf16 %v3566_v26, %v3564_v34  ;;  %v3572_v48 = vld [vmem:[%s6636_s24 + $0x1e0] sm:$0xff]  ;;  %v4977_v34 = vpack.c.bf16 %v3687_v32, %v3685_v31 }
 0xc84   : > { %v4915_v54 = vpack.c.bf16 %v3543_v52, %v3541_v49  ;;  %v3574_v49 = vld [vmem:[%s6636_s24 + $0x1f0] sm:$0xff]  ;;  %v3689_v35 = vld [vmem:[%s6639_s22 + $0xe0] sm:$0xff] }
 0xc85   : > { %4910 = vmatpush1.bf16.msra.mxu0 %v4909_v59  ;;  %v3575_v59 = vld [vmem:[%s6636_s24 + $0x1f8] sm:$0xff]  ;;  %v4949_v52 = vpack.c.bf16 %v3574_v49, %v3572_v48 }
 0xc86   : > { %4886 = vmatpush1.bf16.msra.mxu1 %v4885_v56  ;;  %4912 = vmatprep.subr.bf16.mxu0 %v4911_v46  ;;  %v3540_v56 = vld [vmem:[%s6636_s24 + $0xe0] sm:$0xff]  ;;  %v4945_v46 = vpack.c.bf16 %v3570_v44, %v3568_v39  ;;  %v4947_v47 = vpack.c.bf16 %v3575_v59, %v3573_v40  ;;  %v3691_v36 = vld [vmem:[%s6639_s22 + $0xf0] sm:$0xff] }
 0xc87   : > { %v4981_v39 = vpack.c.bf16 %v3691_v36, %v3689_v35  ;;  %v3693_v40 = vld [vmem:[%s6639_s22 + $0x100] sm:$0xff]  ;;  %v3695_v59 = vld [vmem:[%s6639_s22 + $0x110] sm:$0xff] }
 0xc88   : > { %v4985_v48 = vpack.c.bf16 %v3695_v59, %v3693_v40  ;;  %v3717_v35 = vld [vmem:[%s6639_s22 + $0x1c0] sm:$0xff]  ;;  %v3719_v36 = vld [vmem:[%s6639_s22 + $0x1d0] sm:$0xff] }
 0xc89   : > { %4500 = vmatmul.mubr.msk.f32.vlgmr.msra.gmra.mrb[8].mxu1 %vm1469_vm1, %v3366_v60  ;;  %v3545_v60 = vld [vmem:[%s6636_s24 + $0x108] sm:$0xff]  ;;  %4914 = vmatpush1.bf16.msra.mxu0 %v4913_v53  ;;  %v3723_v40 = vld [vmem:[%s6639_s22 + $0x1f0] sm:$0xff] }
 0xc8a   : > { %4916 = vmatprep.subr.bf16.mxu0 %v4915_v54  ;;  %v3662_v53 = vld [vmem:[%s6639_s22 + $0x8] sm:$0xff]  ;;  %v3664_v54 = vld [vmem:[%s6639_s22 + $0x18] sm:$0xff] }
 0xd5c   : > { %v3444_v62 = vpop.f32.mrb[8].mxu1 }
 0xd5d   : > { %v3451_v1 = vadd.f32 %v5299_v41, %v3444_v62  ;;  %v3446_v2 = vpop.f32.mrb[9].mxu1  ;;  %v4919_v62 = vpack.c.bf16 %v3547_v16, %v3545_v60  ;;  %v3546_v41 = vld [vmem:[%s6636_s24 + $0x110] sm:$0xff] }
 0xd5e   : > { %v3452_v5 = vadd.f32 %v5300_v3, %v3446_v2  ;;  %v3551_v2 = vld [vmem:[%s6636_s24 + $0x138] sm:$0xff]  ;;  %v3666_v16 = vld [vmem:[%s6639_s22 + $0x28] sm:$0xff] }
 0xd5f   : > { %v7131_v58 = vadd.f32 %v3458_v61, %v3451_v1  ;;  %v4917_v61 = vpack.c.bf16 %v3542_v57, %v3540_v56  ;;  %v3549_v1 = vld [vmem:[%s6636_s24 + $0x128] sm:$0xff]  ;;  %v4951_v57 = vpack.c.bf16 %v3664_v54, %v3662_v53  ;;  %v3663_v60 = vld [vmem:[%s6639_s22 + $0x10] sm:$0xff] }
 0xd60   : > { %v7133_v63 = vadd.f32 %v3462_v19, %v3452_v5  ;;  %v3544_v19 = vld [vmem:[%s6636_s24 + $0x100] sm:$0xff]  ;;  %v4923_v5 = vpack.c.bf16 %v3551_v2, %v3549_v1  ;;  %v3667_v1 = vld [vmem:[%s6639_s22 + $0x30] sm:$0xff]  ;;  %v3670_v2 = vld [vmem:[%s6639_s22 + $0x48] sm:$0xff] }
 0xd61   : > { %4918 = vmatpush1.bf16.msra.mxu0 %v4917_v61  ;;  %v4921_v3 = vpack.c.bf16 %v3546_v41, %v3544_v19  ;;  %v3661_v56 = vld [vmem:[%s6639_s22] sm:$0xff]  ;;  %v3668_v61 = vld [vmem:[%s6639_s22 + $0x38] sm:$0xff]  ;;  %4952 = vmatprep.subr.bf16.mxu1 %v4951_v57  ;;  %v3699_v53 = vld [vmem:[%s6639_s22 + $0x130] sm:$0xff] }
 0xd62   : > { %v3467_v6 = vadd.f32 %v7133_v63, %v7131_v58  ;;  %4920 = vmatprep.subr.bf16.mxu0 %v4919_v62  ;;  %v4953_v62 = vpack.c.bf16 %v3663_v60, %v3661_v56  ;;  %v4955_v19 = vpack.c.bf16 %v3668_v61, %v3666_v16  ;;  %v3665_v41 = vld [vmem:[%s6639_s22 + $0x20] sm:$0xff]  ;;  %v3702_v54 = vld [vmem:[%s6639_s22 + $0x148] sm:$0xff]  ;;  %v3704_v56 = vld [vmem:[%s6639_s22 + $0x158] sm:$0xff] }
 0xd63   : > { %v4991_v60 = vpack.c.bf16 %v3704_v56, %v3702_v54  ;;  %v3701_v16 = vld [vmem:[%s6639_s22 + $0x140] sm:$0xff]  ;;  %v3703_v61 = vld [vmem:[%s6639_s22 + $0x150] sm:$0xff] }
 0xd64   : > { %3468 = vadd.xlane.f32.xlu0 %v3467_v6  ;;  %v3548_v6 = vld [vmem:[%s6636_s24 + $0x120] sm:$0xff]  ;;  %4954 = vmatpush1.bf16.msra.mxu1 %v4953_v62  ;;  %v3706_v62 = vld [vmem:[%s6639_s22 + $0x168] sm:$0xff] }
 0xd65   : > { %4922 = vmatpush1.bf16.msra.mxu0 %v4921_v3  ;;  %v4925_v10 = vpack.c.bf16 %v3550_v7, %v3548_v6  ;;  %v3672_v3 = vld [vmem:[%s6639_s22 + $0x58] sm:$0xff]  ;;  %4956 = vmatprep.subr.bf16.mxu1 %v4955_v19  ;;  %v3669_v7 = vld [vmem:[%s6639_s22 + $0x40] sm:$0xff] }
 0xd66   : > { %4924 = vmatprep.subr.bf16.mxu0 %v4923_v5  ;;  %v4957_v5 = vpack.c.bf16 %v3667_v1, %v3665_v41  ;;  %v4959_v6 = vpack.c.bf16 %v3672_v3, %v3670_v2  ;;  %v3708_v19 = vld [vmem:[%s6639_s22 + $0x178] sm:$0xff]  ;;  %v4993_v41 = vpack.c.bf16 %v3703_v61, %v3701_v16  ;;  %v3705_v2 = vld [vmem:[%s6639_s22 + $0x160] sm:$0xff]  ;;  %v3707_v3 = vld [vmem:[%s6639_s22 + $0x170] sm:$0xff] }
 0xd67   : > { %v4995_v1 = vpack.c.bf16 %v3708_v19, %v3706_v62 }
 0xd68   : > { %4958 = vmatpush1.bf16.msra.mxu1 %v4957_v5  ;;  %v3710_v5 = vld [vmem:[%s6639_s22 + $0x188] sm:$0xff] }
 0xd69   : > { %4926 = vmatpush1.bf16.msra.mxu0 %v4925_v10  ;;  %v3676_v10 = vld [vmem:[%s6639_s22 + $0x78] sm:$0xff]  ;;  %4960 = vmatprep.subr.bf16.mxu1 %v4959_v6 }
 0xd6a   : > { %4928 = vmatprep.subr.bf16.mxu0 %v4927_v11  ;;  %v4961_v11 = vpack.c.bf16 %v3671_v8, %v3669_v7  ;;  %v4963_v12 = vpack.c.bf16 %v3676_v10, %v3674_v9  ;;  %v3712_v6 = vld [vmem:[%s6639_s22 + $0x198] sm:$0xff]  ;;  %v4997_v7 = vpack.c.bf16 %v3707_v3, %v3705_v2  ;;  %v3709_v9 = vld [vmem:[%s6639_s22 + $0x180] sm:$0xff]  ;;  %v3711_v10 = vld [vmem:[%s6639_s22 + $0x190] sm:$0xff] }
 0xd6b   : > { %v4999_v8 = vpack.c.bf16 %v3712_v6, %v3710_v5 }
 0xd6c   : > { %4962 = vmatpush1.bf16.msra.mxu1 %v4961_v11  ;;  %v3714_v11 = vld [vmem:[%s6639_s22 + $0x1a8] sm:$0xff] }
 0xd6d   : > { %4930 = vmatpush1.bf16.msra.mxu0 %v4929_v15  ;;  %v3675_v15 = vld [vmem:[%s6639_s22 + $0x70] sm:$0xff]  ;;  %4964 = vmatprep.subr.bf16.mxu1 %v4963_v12  ;;  %v3716_v12 = vld [vmem:[%s6639_s22 + $0x1b8] sm:$0xff] }
 0xdf1   : > { %v3469_v17 = vpop.xlane.xlu0 %3468 }
 0xdf2   : > { %v3471_v18 = vmul.f32 0.00390625, %v3469_v17  ;;  %v3678_v17 = vld [vmem:[%s6639_s22 + $0x88] sm:$0xff] }
 0xdf4   : > { %v7182_v51 = vsub.f32 %v7131_v58, %v3471_v18  ;;  %v7185_v55 = vsub.f32 %v7133_v63, %v3471_v18  ;;  %v4931_v58 = vpack.c.bf16 %v3559_v24, %v3557_v23  ;;  %v3558_v63 = vld [vmem:[%s6636_s24 + $0x170] sm:$0xff]  ;;  %v3680_v18 = vld [vmem:[%s6639_s22 + $0x98] sm:$0xff] }
 0xdf5   : > { %v4933_v45 = vpack.c.bf16 %v3558_v63, %v3556_v25  ;;  %v3679_v23 = vld [vmem:[%s6639_s22 + $0x90] sm:$0xff]  ;;  %v3682_v24 = vld [vmem:[%s6639_s22 + $0xa8] sm:$0xff] }
 0xdf6   : > { %v3474_v20 = vmul.f32 %v7182_v51, %v7182_v51  ;;  %v3475_v21 = vmul.f32 %v7185_v55, %v7185_v55  ;;  %4932 = vmatprep.subr.bf16.mxu0 %v4931_v58  ;;  %v3684_v58 = vld [vmem:[%s6639_s22 + $0xb8] sm:$0xff] }
 0xdf7   : > { %4934 = vmatpush1.bf16.msra.mxu0 %v4933_v45  ;;  %v4971_v63 = vpack.c.bf16 %v3684_v58, %v3682_v24  ;;  %v3681_v45 = vld [vmem:[%s6639_s22 + $0xa0] sm:$0xff] }
 0xdf8   : > { %v3476_v4 = vadd.f32 %v3475_v21, %v3474_v20  ;;  %4936 = vmatprep.subr.bf16.mxu0 %v4935_v29  ;;  %v4965_v20 = vpack.c.bf16 %v3675_v15, %v3673_v13  ;;  %v4967_v21 = vpack.c.bf16 %v3680_v18, %v3678_v17  ;;  %v4973_v29 = vpack.c.bf16 %v3683_v0, %v3681_v45  ;;  %v3713_v17 = vld [vmem:[%s6639_s22 + $0x1a0] sm:$0xff]  ;;  %v3715_v18 = vld [vmem:[%s6639_s22 + $0x1b0] sm:$0xff] }
 0xdf9   : > { %v5001_v13 = vpack.c.bf16 %v3711_v10, %v3709_v9  ;;  %v5003_v15 = vpack.c.bf16 %v3716_v12, %v3714_v11  ;;  %v3498_v45 = vld [vmem:[%s847_s13] sm:$0x3] }
 0xdfa   : > { %3477 = vadd.xlane.f32.xlu0 %v3476_v4  ;;  %v3677_v4 = vld [vmem:[%s6639_s22 + $0x80] sm:$0xff]  ;;  %4966 = vmatpush1.bf16.msra.mxu1 %v4965_v20  ;;  %v3718_v20 = vld [vmem:[%s6639_s22 + $0x1c8] sm:$0xff]  ;;  %v3507_v31 = vrot.slane %v3498_v45, %v6879_v50 }
 0xdfb   : > { %4938 = vmatpush1.bf16.msra.mxu0 %v4937_v22  ;;  %v4969_v25 = vpack.c.bf16 %v3679_v23, %v3677_v4  ;;  %4968 = vmatprep.subr.bf16.mxu1 %v4967_v21  ;;  %v3690_v22 = vld [vmem:[%s6639_s22 + $0xe8] sm:$0xff]  ;;  %v3720_v21 = vld [vmem:[%s6639_s22 + $0x1d8] sm:$0xff]  ;;  %v5005_v4 = vpack.c.bf16 %v3715_v18, %v3713_v17  ;;  %v3826_v17 = vld [vmem:[%s856_s11] sm:$0x3] }
 0xdfc   : > { %4940 = vmatprep.subr.bf16.mxu0 %v4939_v33  ;;  %v3692_v33 = vld [vmem:[%s6639_s22 + $0xf8] sm:$0xff]  ;;  %v5007_v23 = vpack.c.bf16 %v3720_v21, %v3718_v20  ;;  %v3831_v20 = vrot.slane %v3826_v17, %v6872_v14  ;;  %v3835_v21 = vrot.slane %v3826_v17, %v6879_v50 }
 0xdfd   : > { %v4979_v26 = vpack.c.bf16 %v3692_v33, %v3690_v22  ;;  %v3840_v18 = vld [vmem:[%s865_s20] sm:$0x3] }
 0xdfe   : > { %4970 = vmatpush1.bf16.msra.mxu1 %v4969_v25  ;;  %v3901_v17 = vld [vmem:[#allocation20 + $0xd0] sm:$0xff] (!%p4501_p6) }
 0xdff   : > { %4942 = vmatpush1.bf16.msra.mxu0 %v4941_v37  ;;  %4972 = vmatprep.subr.bf16.mxu1 %v4971_v63  ;;  %v3694_v37 = vld [vmem:[%s6639_s22 + $0x108] sm:$0xff] }
 0xe00   : > { %4944 = vmatprep.subr.bf16.mxu0 %v4943_v38  ;;  %v3696_v38 = vld [vmem:[%s6639_s22 + $0x118] sm:$0xff]  ;;  %v3484_v63 = vld [vmem:[%s838_s7] sm:$0x3] }
 0xe01   : > { %v4983_v44 = vpack.c.bf16 %v3696_v38, %v3694_v37  ;;  %v3489_v0 = vrot.slane %v3484_v63, %v6872_v14  ;;  %v3493_v27 = vrot.slane %v3484_v63, %v6879_v50  ;;  %v5009_v37 = vpack.c.bf16 %v3719_v36, %v3717_v35  ;;  %v3724_v38 = vld [vmem:[%s6639_s22 + $0x1f8] sm:$0xff]  ;;  %v3879_v36 = vld [vmem:[#allocation20 + $0x20] sm:$0xff] (!%p4501_p6) }
 0xe02   : > { %4974 = vmatpush1.bf16.msra.mxu1 %v4973_v29 }
 0xe03   : > { %4946 = vmatpush1.bf16.msra.mxu0 %v4945_v46  ;;  %4976 = vmatprep.subr.bf16.mxu1 %v4975_v30  ;;  %v3698_v46 = vld [vmem:[%s6639_s22 + $0x128] sm:$0xff]  ;;  %v3503_v30 = vrot.slane %v3498_v45, %v6872_v14 }
 0xe04   : > { %4948 = vmatprep.subr.bf16.mxu0 %v4947_v47  ;;  %v3700_v47 = vld [vmem:[%s6639_s22 + $0x138] sm:$0xff] }
 0xe05   : > { %v4987_v49 = vpack.c.bf16 %v3700_v47, %v3698_v46 }
 0xe06   : > { %4978 = vmatpush1.bf16.msra.mxu1 %v4977_v34 }
 0xe07   : > { %4950 = vmatpush1.bf16.msra.mxu0 %v4949_v52  ;;  %4980 = vmatprep.subr.bf16.mxu1 %v4979_v26  ;;  %v3697_v52 = vld [vmem:[%s6639_s22 + $0x120] sm:$0xff] }
 0xe08   : > { %v4989_v57 = vpack.c.bf16 %v3699_v53, %v3697_v52 }
 0xe0a   : > { %4982 = vmatpush1.bf16.msra.mxu1 %v4981_v39 }
 0xe0b   : > { %4984 = vmatprep.subr.bf16.mxu1 %v4983_v44  ;;  %v3721_v44 = vld [vmem:[%s6639_s22 + $0x1e0] sm:$0xff] }
 0xe0c   : > { %v5013_v59 = vpack.c.bf16 %v3723_v40, %v3721_v44 }
 0xe0e   : > { %4986 = vmatpush1.bf16.msra.mxu1 %v4985_v48 }
 0xe0f   : > { %4988 = vmatprep.subr.bf16.mxu1 %v4987_v49 }
 0xe12   : > { %4990 = vmatpush1.bf16.msra.mxu1 %v4989_v57  ;;  %v3725_v57 = vld [vmem:[%s901_s9] sm:$0x3] }
 0xe13   : > { %4992 = vmatprep.subr.bf16.mxu1 %v4991_v60  ;;  %v3730_v60 = vrot.slane %v3725_v57, %v6872_v14  ;;  %v3734_v16 = vrot.slane %v3725_v57, %v6879_v50  ;;  %v3889_v57 = vld [vmem:[#allocation20 + $0x70] sm:$0xff] (!%p4501_p6) }
 0xe16   : > { %4994 = vmatpush1.bf16.msra.mxu1 %v4993_v41 }
 0xe17   : > { %4996 = vmatprep.subr.bf16.mxu1 %v4995_v1 }
 0xe1a   : > { %4998 = vmatpush1.bf16.msra.mxu1 %v4997_v7 }
 0xe1b   : > { %5000 = vmatprep.subr.bf16.mxu1 %v4999_v8 }
 0xe1e   : > { %5002 = vmatpush1.bf16.msra.mxu1 %v5001_v13 }
 0xe1f   : > { %5004 = vmatprep.subr.bf16.mxu1 %v5003_v15 }
 0xe22   : > { %5006 = vmatpush1.bf16.msra.mxu1 %v5005_v4 }
 0xe23   : > { %5008 = vmatprep.subr.bf16.mxu1 %v5007_v23  ;;  %v3845_v23 = vrot.slane %v3840_v18, %v6872_v14 }
 0xe26   : > { %5010 = vmatpush1.bf16.msra.mxu1 %v5009_v37  ;;  %v3881_v37 = vld [vmem:[#allocation20 + $0x30] sm:$0xff] (!%p4501_p6) }
 0xe27   : > { %v5021_v44 = vpack.c.bf16 (!%p4501_p6), %v3881_v37, %v3879_v36  ;;  %v3915_v37 = vld [vmem:[#allocation20 + $0x140] sm:$0xff] (!%p4501_p6) }
 0xe87   : > { %v3478_v24 = vpop.xlane.xlu0 %3477 }
 0xe88   : > { %v3479_v58 = vmul.f32 0.00390625, %v3478_v24  ;;  %v3849_v24 = vrot.slane %v3840_v18, %v6879_v50  ;;  %v3904_v18 = vld [vmem:[#allocation20 + $0xe8] sm:$0xff] (!%p4501_p6) }
 0xe8a   : > { %v3480_v25 = vadd.f32 1e-05, %v3479_v58 }
 0xe8c   : > { %5295 = vrsqrt.f32 %v3480_v25 }
 0xe96   : > { %v5296_v28 = vpop.eup %5295 }
 0xe97   : > { %v3483_v29 = vmul.f32 %v5296_v28, %v7185_v55  ;;  %v3482_v32 = vmul.f32 %v5296_v28, %v7182_v51  ;;  %v3722_v55 = vld [vmem:[%s6639_s22 + $0x1e8] sm:$0xff]  ;;  %v3576_v51 = vld [vmem:[%s883_s8] sm:$0x3] }
 0xe98   : > { %v5011_v39 = vpack.c.bf16 %v3724_v38, %v3722_v55  ;;  %v3581_v46 = vrot.slane %v3576_v51, %v6872_v14  ;;  %v3585_v47 = vrot.slane %v3576_v51, %v6879_v50  ;;  %v3876_v28 = vld [vmem:[#allocation20 + $0x8] sm:$0xff] (!%p4501_p6)  ;;  %v3883_v51 = vld [vmem:[#allocation20 + $0x40] sm:$0xff] (!%p4501_p6) }
 0xe99   : > { %v3497_v22 = vmul.f32 %v3493_v27, %v3483_v29  ;;  %v3496_v33 = vmul.f32 %v3489_v0, %v3482_v32  ;;  %v3878_v29 = vld [vmem:[#allocation20 + $0x18] sm:$0xff] (!%p4501_p6)  ;;  %v3884_v55 = vld [vmem:[#allocation20 + $0x48] sm:$0xff] (!%p4501_p6) }
 0xe9a   : > { %5012 = vmatprep.subr.bf16.mxu1 %v5011_v39  ;;  %v5015_v32 = vpack.c.bf16 (!%p4501_p6), %v3878_v29, %v3876_v28  ;;  %v3886_v39 = vld [vmem:[#allocation20 + $0x58] sm:$0xff] (!%p4501_p6)  ;;  %v3909_v28 = vld [vmem:[#allocation20 + $0x110] sm:$0xff] (!%p4501_p6)  ;;  %v3912_v29 = vld [vmem:[#allocation20 + $0x128] sm:$0xff] (!%p4501_p6) }
 0xe9b   : > { %v3511_v34 = vadd.f32 %v3507_v31, %v3497_v22  ;;  %v3510_v26 = vadd.f32 %v3503_v30, %v3496_v33  ;;  %5014 = vmatpush1.bf16.msra.mxu1 %v5013_v59  ;;  %v3875_v30 = vld [vmem:[#allocation20] sm:$0xff] (!%p4501_p6)  ;;  %v3877_v22 = vld [vmem:[#allocation20 + $0x10] sm:$0xff] (!%p4501_p6)  ;;  %v3880_v33 = vld [vmem:[#allocation20 + $0x28] sm:$0xff] (!%p4501_p6)  ;;  %v5023_v59 = vpack.c.bf16 (!%p4501_p6), %v3886_v39, %v3884_v55 }
 0xe9c   : > { %5016 = vmatprep.subr.bf16.mxu0 (!%p4501_p6), %v5015_v32  ;;  %v3917_v55 = vld [vmem:[#allocation20 + $0x150] sm:$0xff] (!%p4501_p6)  ;;  %v3922_v39 = vld [vmem:[#allocation20 + $0x178] sm:$0xff] (!%p4501_p6) }
 0xe9d   : > { %3652 = vmatprep.mubr.f32.mxu0 %v3511_v34 }
 0xe9e   : > { %3653 = vmatmul.mubr.f32.vlgmr.msra.gmra.mrb[20].mxu0 %v3510_v26 }
 0xf71   : > { %v3654_v48 = vpop.f32.mrb[20].mxu0 }
 0xf72   : > { %v3655_v49 = vadd.f32 %v3654_v48, %v3581_v46  ;;  %v3656_v52 = vpop.f32.mrb[21].mxu0  ;;  %v3885_v46 = vld [vmem:[#allocation20 + $0x50] sm:$0xff] (!%p4501_p6)  ;;  %v3890_v48 = vld [vmem:[#allocation20 + $0x78] sm:$0xff] (!%p4501_p6) }
 0xf73   : > { %v3657_v53 = vadd.f32 %v3656_v52, %v3585_v47  ;;  %v3888_v47 = vld [vmem:[#allocation20 + $0x68] sm:$0xff] (!%p4501_p6)  ;;  %v5025_v52 = vpack.c.bf16 (!%p4501_p6), %v3885_v46, %v3883_v51  ;;  %v3919_v51 = vld [vmem:[#allocation20 + $0x160] sm:$0xff] (!%p4501_p6)  ;;  %v3921_v46 = vld [vmem:[#allocation20 + $0x170] sm:$0xff] (!%p4501_p6) }
 0xf74   : > { %v3659_v56 = vmax.f32 %v3655_v49, 0.0 }
 0xf75   : > { %v3660_v54 = vmax.f32 %v3657_v53, 0.0 }
 0xf77   : > { %3801 = vmatprep.mubr.f32.mxu1 %v3660_v54  ;;  %v5027_v54 = vpack.c.bf16 (!%p4501_p6), %v3890_v48, %v3888_v47  ;;  %v3924_v47 = vld [vmem:[#allocation20 + $0x188] sm:$0xff] (!%p4501_p6)  ;;  %v3926_v48 = vld [vmem:[#allocation20 + $0x198] sm:$0xff] (!%p4501_p6) }
 0xf78   : > { %3802 = vmatmul.mubr.f32.vlgmr.msra.gmra.mrb[20].mxu1 %v3659_v56  ;;  %v3887_v56 = vld [vmem:[#allocation20 + $0x60] sm:$0xff] (!%p4501_p6) }
0x104b   : > { %v3803_v61 = vpop.f32.mrb[20].mxu1 }
0x104c   : > { %v3804_v62 = vadd.f32 %v3803_v61, %v3730_v60  ;;  %v3805_v19 = vpop.f32.mrb[21].mxu1  ;;  %v3892_v60 = vld [vmem:[#allocation20 + $0x88] sm:$0xff] (!%p4501_p6) }
0x104d   : > { %v3806_v41 = vadd.f32 %v3805_v19, %v3734_v16  ;;  %v3894_v16 = vld [vmem:[#allocation20 + $0x98] sm:$0xff] (!%p4501_p6) }
0x104e   : > { %v3808_v1 = vadd.f32 %v3804_v62, %v3510_v26  ;;  %v5017_v26 = vpack.c.bf16 (!%p4501_p6), %v3877_v22, %v3875_v30  ;;  %v5029_v62 = vpack.c.bf16 (!%p4501_p6), %v3889_v57, %v3887_v56  ;;  %v3914_v30 = vld [vmem:[#allocation20 + $0x138] sm:$0xff] (!%p4501_p6)  ;;  %v3911_v22 = vld [vmem:[#allocation20 + $0x120] sm:$0xff] (!%p4501_p6)  ;;  %v3925_v56 = vld [vmem:[#allocation20 + $0x190] sm:$0xff] (!%p4501_p6) }
0x104f   : > { %v3809_v2 = vadd.f32 %v3806_v41, %v3511_v34  ;;  %v3882_v34 = vld [vmem:[#allocation20 + $0x38] sm:$0xff] (!%p4501_p6)  ;;  %v5031_v41 = vpack.c.bf16 (!%p4501_p6), %v3894_v16, %v3892_v60  ;;  %v5051_v32 = vpack.c.bf16 (!%p4501_p6), %v3914_v30, %v3912_v29  ;;  %v3928_v57 = vld [vmem:[#allocation20 + $0x1a8] sm:$0xff] (!%p4501_p6) }
0x1050   : > { %v5019_v35 = vpack.c.bf16 (!%p4501_p6), %v3882_v34, %v3880_v33  ;;  %5018 = vmatpush1.bf16.msra.mxu0 (!%p4501_p6), %v5017_v26  ;;  %v3913_v33 = vld [vmem:[#allocation20 + $0x130] sm:$0xff] (!%p4501_p6)  ;;  %v3916_v34 = vld [vmem:[#allocation20 + $0x148] sm:$0xff] (!%p4501_p6)  ;;  %v3918_v26 = vld [vmem:[#allocation20 + $0x158] sm:$0xff] (!%p4501_p6) }
0x1051   : > { %v3810_v3 = vadd.f32 %v3809_v2, %v3808_v1  ;;  %v5055_v36 = vpack.c.bf16 (!%p4501_p6), %v3918_v26, %v3916_v34  ;;  %v3930_v60 = vld [vmem:[#allocation20 + $0x1b8] sm:$0xff] (!%p4501_p6) }
0x1052   : > { %5020 = vmatprep.subr.bf16.mxu0 (!%p4501_p6), %v5019_v35  ;;  %v5053_v35 = vpack.c.bf16 (!%p4501_p6), %v3913_v33, %v3911_v22 }
0x1053   : > { %3811 = vadd.xlane.f32.xlu0 %v3810_v3  ;;  %v3896_v3 = vld [vmem:[#allocation20 + $0xa8] sm:$0xff] (!%p4501_p6) }
0x1054   : > { %5022 = vmatpush1.bf16.msra.mxu0 (!%p4501_p6), %v5021_v44 }
0x1055   : > { %5024 = vmatprep.subr.bf16.mxu0 (!%p4501_p6), %v5023_v59 }
0x1058   : > { %5026 = vmatpush1.bf16.msra.mxu0 (!%p4501_p6), %v5025_v52  ;;  %v5061_v52 = vpack.c.bf16 (!%p4501_p6), %v3921_v46, %v3919_v51 }
0x1059   : > { %5028 = vmatprep.subr.bf16.mxu0 (!%p4501_p6), %v5027_v54  ;;  %v3923_v54 = vld [vmem:[#allocation20 + $0x180] sm:$0xff] (!%p4501_p6) }
0x105c   : > { %5030 = vmatpush1.bf16.msra.mxu0 (!%p4501_p6), %v5029_v62  ;;  %v5067_v62 = vpack.c.bf16 (!%p4501_p6), %v3930_v60, %v3928_v57 }
0x105d   : > { %5032 = vmatprep.subr.bf16.mxu0 (!%p4501_p6), %v5031_v41  ;;  %v3929_v41 = vld [vmem:[#allocation20 + $0x1b0] sm:$0xff] (!%p4501_p6) }
0x10e0   : > { %v3812_v5 = vpop.xlane.xlu0 %3811 }
0x10e1   : > { %v3813_v6 = vmul.f32 0.00390625, %v3812_v5  ;;  %v3898_v5 = vld [vmem:[#allocation20 + $0xb8] sm:$0xff] (!%p4501_p6) }
0x10e3   : > { %v3814_v7 = vsub.f32 %v3808_v1, %v3813_v6  ;;  %v3815_v8 = vsub.f32 %v3809_v2, %v3813_v6  ;;  %v3891_v1 = vld [vmem:[#allocation20 + $0x80] sm:$0xff] (!%p4501_p6)  ;;  %v3893_v2 = vld [vmem:[#allocation20 + $0x90] sm:$0xff] (!%p4501_p6) }
0x10e4   : > { %v5033_v6 = vpack.c.bf16 (!%p4501_p6), %v3893_v2, %v3891_v1  ;;  %v3932_v1 = vld [vmem:[#allocation20 + $0x1c8] sm:$0xff] (!%p4501_p6)  ;;  %v3934_v2 = vld [vmem:[#allocation20 + $0x1d8] sm:$0xff] (!%p4501_p6) }
0x10e5   : > { %v3816_v9 = vmul.f32 %v3814_v7, %v3814_v7  ;;  %v3817_v10 = vmul.f32 %v3815_v8, %v3815_v8 }
0x10e6   : > { %5034 = vmatpush1.bf16.msra.mxu0 (!%p4501_p6), %v5033_v6  ;;  %v3931_v6 = vld [vmem:[#allocation20 + $0x1c0] sm:$0xff] (!%p4501_p6) }
0x10e7   : > { %v3818_v11 = vadd.f32 %v3817_v10, %v3816_v9  ;;  %v3897_v9 = vld [vmem:[#allocation20 + $0xb0] sm:$0xff] (!%p4501_p6)  ;;  %v3900_v10 = vld [vmem:[#allocation20 + $0xc8] sm:$0xff] (!%p4501_p6) }
0x10e9   : > { %3819 = vadd.xlane.f32.xlu0 %v3818_v11  ;;  %v3902_v11 = vld [vmem:[#allocation20 + $0xd8] sm:$0xff] (!%p4501_p6) }
0x1176   : > { %v3820_v12 = vpop.xlane.xlu0 %3819 }
0x1177   : > { %v3821_v13 = vmul.f32 0.00390625, %v3820_v12 }
0x1179   : > { %v3822_v15 = vadd.f32 1e-05, %v3821_v13  ;;  %v5039_v13 = vpack.c.bf16 (!%p4501_p6), %v3902_v11, %v3900_v10 }
0x117b   : > { %5297 = vrsqrt.f32 %v3822_v15  ;;  %v3899_v15 = vld [vmem:[#allocation20 + $0xc0] sm:$0xff] (!%p4501_p6) }
0x1185   : > { %v5298_v4 = vpop.eup %5297 }
0x1186   : > { %v3824_v58 = vmul.f32 %v5298_v4, %v3814_v7  ;;  %v3825_v25 = vmul.f32 %v5298_v4, %v3815_v8  ;;  %3859 = sbr.rel (%p4501_p6) target bundleno = 4754 (0x1292), region = 156  ;;  %v5035_v7 = vpack.c.bf16 (!%p4501_p6), %v3898_v5, %v3896_v3  ;;  %v3895_v8 = vld [vmem:[#allocation20 + $0xa0] sm:$0xff] (!%p4501_p6)  ;;  %v5071_v5 = vpack.c.bf16 (!%p4501_p6), %v3934_v2, %v3932_v1 }
0x1187   : > { %v5037_v12 = vpack.c.bf16 (!%p4501_p6), %v3897_v9, %v3895_v8  ;;  %v3936_v8 = vld [vmem:[#allocation20 + $0x1e8] sm:$0xff] (!%p4501_p6)  ;;  %v3938_v9 = vld [vmem:[#allocation20 + $0x1f8] sm:$0xff] (!%p4501_p6) }
0x1188   : > { %v3838_v63 = vmul.f32 %v3831_v20, %v3824_v58  ;;  %v3839_v45 = vmul.f32 %v3835_v21, %v3825_v25  ;;  %5036 = vmatprep.subr.bf16.mxu0 (!%p4501_p6), %v5035_v7  ;;  %v3906_v20 = vld [vmem:[#allocation20 + $0xf8] sm:$0xff] (!%p4501_p6)  ;;  %v5041_v21 = vpack.c.bf16 (!%p4501_p6), %v3901_v17, %v3899_v15  ;;  %v3908_v58 = vld [vmem:[#allocation20 + $0x108] sm:$0xff] (!%p4501_p6)  ;;  %v3933_v7 = vld [vmem:[#allocation20 + $0x1d0] sm:$0xff] (!%p4501_p6) }
0x1189   : > { %5038 = vmatpush1.bf16.msra.mxu0 (!%p4501_p6), %v5037_v12  ;;  %v5043_v4 = vpack.c.bf16 (!%p4501_p6), %v3906_v20, %v3904_v18  ;;  %v3910_v25 = vld [vmem:[#allocation20 + $0x118] sm:$0xff] (!%p4501_p6)  ;;  %v5073_v11 = vpack.c.bf16 (!%p4501_p6), %v3933_v7, %v3931_v6  ;;  %v5075_v12 = vpack.c.bf16 (!%p4501_p6), %v3938_v9, %v3936_v8  ;;  %v3937_v15 = vld [vmem:[#allocation20 + $0x1f0] sm:$0xff] (!%p4501_p6) }
0x118a   : > { %v7301_v0 = vadd.f32 %v3845_v23, %v3838_v63  ;;  %v3853_v27 = vadd.f32 %v3849_v24, %v3839_v45  ;;  %5040 = vmatprep.subr.bf16.mxu0 (!%p4501_p6), %v5039_v13  ;;  %v3903_v23 = vld [vmem:[#allocation20 + $0xe0] sm:$0xff] (!%p4501_p6)  ;;  %v3905_v24 = vld [vmem:[#allocation20 + $0xf0] sm:$0xff] (!%p4501_p6)  ;;  %v5047_v45 = vpack.c.bf16 (!%p4501_p6), %v3910_v25, %v3908_v58 }
0x118b   : > { %v5045_v63 = vpack.c.bf16 (!%p4501_p6), %v3905_v24, %v3903_v23  ;;  %v3935_v13 = vld [vmem:[#allocation20 + $0x1e0] sm:$0xff] (!%p4501_p6) }
0x118c   : > { %3854 = vst [vmem:[#allocation2] sm:$0xff] %v7301_v0  ;;  %3855 = vst [vmem:[#allocation2 + $0x8] sm:$0xff] %v3853_v27  ;;  %v3866_v31 = vrot.slane (!%p4501_p6), %v3853_v27, 4  ;;  %v3860_v44 = vrot.slane (!%p4501_p6), %v7301_v0, 4  ;;  %v5077_v18 = vpack.c.bf16 (!%p4501_p6), %v3937_v15, %v3935_v13 }
0x118d   : > { %5042 = vmatpush1.bf16.msra.mxu0 %v5041_v21  ;;  %v3939_v21 = vld [vmem:[#allocation21] sm:$0x3] }
0x118e   : > { %v3867_v38 = vadd.f32 %v3866_v31, %v3853_v27  ;;  %5044 = vmatprep.subr.bf16.mxu0 %v5043_v4  ;;  %v3907_v27 = vld [vmem:[#allocation20 + $0x100] sm:$0xff]  ;;  %v5916_v4 = vmov 1966171168   ;;  %v3944_v24 = vrot.slane %v3939_v21, %v6872_v14  ;;  %v3948_v58 = vrot.slane %v3939_v21, %v6879_v50 }
0x118f   : > { %v5049_v31 = vpack.c.bf16 %v3909_v28, %v3907_v27  ;;  %v4026_v23 = vunpack.c.l.s4 %v5916_v4 }
0x1190   : > { %v3868_v40 = vrot.slane %v3867_v38, 2 }
0x1191   : > { %5046 = vmatpush1.bf16.msra.mxu0 %v5045_v63  ;;  %v4027_v25 = vunpack.c.0.s8 %v4026_v23 }
0x1192   : > { %v3869_v49 = vadd.f32 %v3868_v40, %v3867_v38  ;;  %5048 = vmatprep.subr.bf16.mxu0 %v5047_v45  ;;  %v3920_v38 = vld [vmem:[#allocation20 + $0x168] sm:$0xff]  ;;  %v5057_v40 = vpack.c.bf16 %v3917_v55, %v3915_v37 }
0x1193   : > { %v5059_v59 = vpack.c.bf16 %v3922_v39, %v3920_v38  ;;  %v4030_v29 = vsub.s32 %v4027_v25, %v6865_v43 }
0x1194   : > { %v3870_v53 = vrot.slane %v3869_v49, 1 }
0x1195   : > { %5050 = vmatpush1.bf16.msra.mxu0 %v5049_v31 }
0x1196   : > { %v3871_v61 = vadd.f32 %v3870_v53, %v3869_v49  ;;  %5052 = vmatprep.subr.bf16.mxu0 %v5051_v32  ;;  %v3861_v49 = vadd.f32 %v3860_v44, %v7301_v0  ;;  %v5063_v53 = vpack.c.bf16 %v3926_v48, %v3924_v47 }
0x1198   : > { %v3874_v19 = vmul.f32 0.125, %v3871_v61  ;;  %v3862_v16 = vrot.slane %v3861_v49, 2  ;;  %v5065_v61 = vpack.c.bf16 %v3925_v56, %v3923_v54 }
0x1199   : > { %5054 = vmatpush1.bf16.msra.mxu0 %v5053_v35 }
0x119a   : > { %4015 = vmatprep.mubr.f32.mxu0 %v3874_v19  ;;  %5056 = vmatprep.subr.bf16.mxu0 %v5055_v36  ;;  %v3927_v19 = vld [vmem:[#allocation20 + $0x1a0] sm:$0xff]  ;;  %v3863_v3 = vadd.f32 %v3862_v16, %v3861_v49 }
0x119b   : > { %v5069_v0 = vpack.c.bf16 %v3929_v41, %v3927_v19 }
0x119c   : > { %v3864_v10 = vrot.slane %v3863_v3, 1 }
0x119d   : > { %5058 = vmatpush1.bf16.msra.mxu0 %v5057_v40 }
0x119e   : > { %5060 = vmatprep.subr.bf16.mxu0 %v5059_v59  ;;  %v3865_v17 = vadd.f32 %v3864_v10, %v3863_v3 }
0x11a0   : > { %v3873_v20 = vmul.f32 0.125, %v3865_v17 }
0x11a1   : > { %5062 = vmatpush1.bf16.msra.mxu0 %v5061_v52 }
0x11a2   : > { %5064 = vmatprep.subr.bf16.mxu0 %v5063_v53 }
0x11a5   : > { %5066 = vmatpush1.bf16.msra.mxu0 %v5065_v61 }
0x11a6   : > { %5068 = vmatprep.subr.bf16.mxu0 %v5067_v62 }
0x11a9   : > { %5070 = vmatpush1.bf16.msra.mxu0 %v5069_v0 }
0x11aa   : > { %5072 = vmatprep.subr.bf16.mxu0 %v5071_v5 }
0x11ad   : > { %5074 = vmatpush1.bf16.msra.mxu0 %v5073_v11 }
0x11ae   : > { %5076 = vmatprep.subr.bf16.mxu0 %v5075_v12 }
0x11b1   : > { %5078 = vmatpush1.bf16.msra.mxu0 %v5077_v18 }
0x11b4   : > { %4016 = vmatmul.mubr.f32.vlgmr.msra.gmra.mrb[0].mxu0 %v3873_v20 }
0x1287   : > { %v4017_v63 = vpop.f32.mrb[0].mxu0 }
0x1288   : > { %v4018_v45 = vadd.f32 %v4017_v63, %v3944_v24  ;;  %v4019_v27 = vpop.f32.mrb[1].mxu0 }
0x1289   : > { %v4020_v28 = vadd.f32 %v4019_v27, %v3948_v58 }
0x128b   : > { %v4024_v30 = vcombine.low %v4018_v45, %v4020_v28 }
0x128d   : > { %v4031_v31 = vrot.slane %v4024_v30, %v4030_v29 }
0x128f   : > { %v4038_v32 = vrot.slane %v4031_v31, %v4030_v29 }
0x1291   : > { %4044 = vst.msk [vmem:[%s6651_s1] sm:$0x3] %vm4042_vm3, %v4038_v32 }
0x1292 PF: > { %s7511_s25 = sld [smem:[#allocation34_spill]]  ;;  %s7512_s2 = sld [smem:[#allocation42_spill]] }
0x1293   : > { %s7513_s7 = sld [smem:[#allocation60_spill]]  ;;  %s4060_s11 = sshll.u32 %s6651_s1, 4  ;;  %s4061_s11 = int_to_ptr.vmem [resolvable:$true] %s4060_s11 }
0x1294   : > { %s4046_s20 = scalar_lea.sflag [#allocation5], %s6605_s14  ;;  %s5749_s24 = scalar_lea.vmem %s4061_s11, 32 }
0x1295   : > { %p5750_p5 = scmp.ne.s32.totalorder %s4061_s11, %s5749_s24  ;;  %s5917_s8 = smov [#allocation23]  }
0x1296   : > { %s5753_s22 = sshll.u32 %s5917_s8, 4  ;;  %s5754_s22 = int_to_ptr.vmem [resolvable:$false] %s5753_s22 }
0x1297   : > { %s5755_s9 = scalar_lea.vmem %s5754_s22, 64  ;;  %p5756_p7 = scmp.lt.s32.totalorder %s4061_s11, %s5754_s22 }
0x1298   : > { %s4518_s21 = sshll.u32 %s7511_s25, 5  ;;  %p7514_p10 = scmp.ne.s32.totalorder %s7512_s2, 0 }
0x1299   : > { %s7316_s13 = scalar_lea.hbm %s7513_s7, %s4518_s21  ;;  %p5757_p12 = scmp.lt.s32.totalorder %s5755_s9, %s5749_s24 }
0x129a   : > { %p5751_p1 = pnand %p5750_p5, %p7514_p10 }
0x129b   : > { %p5758_p3 = por %p5757_p12, %p5756_p7 }
0x129c   : > { %p5752_p9 = pneg %p5751_p1 }
0x129e   : > { %p5759_p2 = pnand %p5758_p3, %p5752_p9 }
0x12a0   : > { %5762 = shalt.err (!%p5759_p2)
}
0x12a1   : > { %s5763_s14 = scalar_lea.hbm %s7316_s13, 32  ;;  %s5767_s6 = scalar_lea.hbm %s7513_s7, 64 }
0x12a2   : > { %p5764_p13 = scmp.ne.s32.totalorder %s7316_s13, %s5763_s14  ;;  %p5768_p8 = scmp.lt.u32.totalorder %s7316_s13, %s7513_s7 }
0x12a3   : > { %p5769_p11 = scmp.lt.u32.totalorder %s5767_s6, %s5763_s14  ;;  %p5771_p5 = scmp.lt.u32.totalorder %s5763_s14, %s7316_s13 }
0x12a4   : > { %p5765_p4 = pnand %p5764_p13, %p7514_p10 }
0x12a5   : > { %p5770_p6 = por %p5769_p11, %p5768_p8 }
0x12a6   : > { %p5766_p0 = pneg %p5765_p4 }
0x12a7   : > { %p5772_p1 = por %p5771_p5, %p5770_p6 }
0x12a9   : > { %p5773_p9 = pnand %p5772_p1, %p5766_p0 }
0x12ab   : > { %5776 = shalt.err (!%p5773_p9)
}
0x12ac   : > { %5137 = dma.vmem_to_hbm [thread:$0]  (%p7514_p10), %s4061_s11, 32, %s7316_s13, %s4046_s20  }
0x12ad PF: > { %s7515_s18 = sld [smem:[#allocation31_spill]]  ;;  %s7516_s3 = sld [smem:[#allocation43_spill]] }
0x12ae   : > { %p5159_p7 = scmp.ge.s32.totalorder %s5887_s0, 2 }
0x12b3   : > { %s4072_s25 = sand.u32 1, %s7515_s18   ;;  %p7517_p12 = scmp.ne.s32.totalorder %s7516_s3, 0 }
0x12b4   : > { %s4073_s21 = scalar_lea.sflag [#allocation5], %s4072_s25 }
0x12b5   : > { %p5150_p3 = pnand %p5159_p7, %p7517_p12 }
0x12b7   : > { %5842 = dma.done.wait (!%p5150_p3), %s4073_s21, 32  }
0x12b8   : > { %5844 = vsyncadd (!%p5150_p3), %s4073_s21, 4294967264  ;;  %s34_s0 = sadd.s32 1, %s5887_s0   ;;  %s7518_s21 = sld [smem:[#allocation30_spill]] }
0x12b9   : > { %p31_p2 = scmp.ge.s32.totalorder %s34_s0, 8   ;;  %s7519_s17 = sld [smem:[#allocation39_spill]] }
0x12ba   : > { %s7520_s24 = sld [smem:[#allocation32_spill]]  ;;  %s7521_s2 = sld [smem:[#allocation40_spill]] }
0x12bb   : > { %s7522_s12 = sld [smem:[#allocation36_spill]]  ;;  %s7523_s13 = sld [smem:[#allocation37_spill]] }
0x12bc   : > { %s7524_s22 = smov %s5855_s23  ;;  %s7526_s25 = smov %s5867_s26 }
0x12bd   : > { %s7528_s27 = smov %s5879_s29  ;;  %s7529_s28 = smov %s5883_s30 }
0x12be   :  { %33 = sbr.rel (!%p31_p2) target bundleno = 28 (0x1c), region = 281 }
0x12bf   : > { %s7525_s23 = smov %s7519_s17 }
0x12c0   : > { %s7527_s26 = smov %s7521_s2 }
0x12c1   : > { %s7530_s29 = smov %s7522_s12  ;;  %s7531_s30 = smov %s7523_s13 }
0x12c5   :  { %4078 = vsyncpa [#allocation4], 1 }
0x12c6   :  { %4080 = vsyncpa [#allocation4 + $0x1], 1 }
0x12c7   :  { %4081 = vsyncpa [#allocation7], 1 }
0x12c8   :  { %4082 = vsyncpa [#allocation22], 1 }
0x12c9   :  { %4083 = vsyncpa [#allocation5], 1 }
0x12ca   :  { %4085 = vsyncpa [#allocation5 + $0x1], 1 }

</bundles_post_ra>
